<compile_context>
chip_gen: v6e
topology: v6e:2x2x1
jax: 0.10.0
libtpu: 0.0.40
codegen_flags: <defaults>
</compile_context>

<pallas_src>
import functools

import jax
import jax.numpy as jnp
from jax.experimental import pallas as pl
from jax.experimental.pallas import tpu as pltpu

# bf16 MXU operands roughly double matmul throughput on v5e/v6e/v7x (all MXUs
# are bf16-native); keep False for f32 parity with the reference. Attention
# logits / softmax always stay f32 regardless of this flag.
MXU_BF16 = False


def _mm(a, b):
    if MXU_BF16:
        a = a.astype(jnp.bfloat16)
        b = b.astype(jnp.bfloat16)
    return jnp.dot(a, b, preferred_element_type=jnp.float32)


# ----------------------------- Pallas kernel -------------------------------

def _fused_forward_kernel(*refs, heads, num_layers, neg_slope=0.2):
    """One graph's full forward pass (embed -> L x GAT -> MLP), VMEM resident.

    refs = (x, adj_int8, sel, avg_proj, embed_w, embed_b,
            [conv_w, conv_att, conv_b] * num_layers,
            out1_w, out1_b, out2_w_pad, out2_b_pad, out_ref)
    """
    x_ref, adj_ref, sel_ref, avg_ref, ew_ref, eb_ref = refs[:6]
    layer_refs = refs[6:6 + 3 * num_layers]
    o1w_ref, o1b_ref, o2w_ref, o2b_ref = refs[6 + 3 * num_layers:10 + 3 * num_layers]
    o_ref = refs[10 + 3 * num_layers]

    # Additive attention mask built in-kernel from the int8 adjacency
    # (no f32 mask array ever touches HBM).
    adj = adj_ref[...].astype(jnp.float32)                     # (N, N)
    mask = jnp.where(adj > 0, 0.0, -1e30)

    x = _mm(x_ref[...], ew_ref[...]) + eb_ref[...]             # (N, D) node embedding

    for l in range(num_layers):                                # static unroll (3 layers)
        w_ref, a_ref, b_ref = layer_refs[3 * l:3 * l + 3]
        concat = (l == num_layers - 1)

        h_all = _mm(x, w_ref[...])                             # (N, H*D) all heads, lane-dense
        # One MXU matmul with a block-diagonal attention matrix replaces 2*H
        # cross-lane (XLU) reductions:
        #   columns [0:H]  = a_src . h per head,  [H:2H] = a_dst . h per head.
        scores = _mm(h_all, a_ref[...])                        # (N, 2H)
        scores_t = jnp.transpose(scores)                       # (2H, N): ONE transpose/layer

        cat = jnp.zeros_like(h_all)                            # (N, H*D)
        for h in range(heads):                                 # static unroll, heads small
            s_dst = scores[:, heads + h:heads + h + 1]         # (N, 1)
            s_src_t = scores_t[h:h + 1, :]                     # (1, N)  (pre-transposed)
            # e[i, j] = LeakyReLU(a_dst . h_i + a_src . h_j) + mask[i, j]
            e = s_dst + s_src_t                                # (N, N)
            e = jnp.where(e > 0, e, neg_slope * e)             # LeakyReLU
            e = e + mask                                       # -1e30 on non-edges
            e = e - jnp.max(e, axis=-1, keepdims=True)         # softmax over neighbors j
            p = jnp.exp(e)
            alpha = p * pl.reciprocal(jnp.sum(p, axis=-1, keepdims=True), approx=True)
            # Lane-dense aggregation against the full (N, H*D) h_all, keeping this
            # head's block via a precomputed selector mask (no 32-lane matmuls, no
            # concatenate). A wash at D=32; see module TODO for the large-D variant.
            big = _mm(alpha, h_all)                            # (N, H*D)
            cat = cat + big * sel_ref[h:h + 1, :]

        if concat:                                             # last layer: concat heads
            x = jnp.maximum(cat + b_ref[...], 0.0)             # (N, H*D)
        else:                                                  # intermediate: average heads
            x = jnp.maximum(_mm(cat, avg_ref[...]) + b_ref[...], 0.0)   # (N, D)
        # F.dropout(..., training=False) -> identity

    # output MLP head (last linear zero-padded to 128 lanes -> unmasked stores)
    y = jnp.maximum(_mm(x, o1w_ref[...]) + o1b_ref[...], 0.0)
    y = _mm(y, o2w_ref[...]) + o2b_ref[...]                    # (N, F_PAD)
    o_ref[...] = y.astype(o_ref.dtype)


# ----------------------------- wrapper --------------------------------------

def graph_rl_forward(x, adj_i8, weights, *, heads, num_layers, f_pad):
    """x: (B, N, F_in) f32, adj_i8: (B, N, N) int8. Returns (B, N, f_pad) f32."""
    B, N, f_in = x.shape
    kernel = functools.partial(_fused_forward_kernel, heads=heads,
                               num_layers=num_layers)
    in_specs = [
        # per-graph blocks (leading graph dim squeezed out of the kernel refs)
        pl.BlockSpec((pl.Squeezed(), N, f_in), lambda b: (b, 0, 0)),
        pl.BlockSpec((pl.Squeezed(), N, N), lambda b: (b, 0, 0)),
    ] + [
        # weights: constant index_map -> fetched once, VMEM-resident across grid
        pl.BlockSpec(w.shape, lambda b: (0, 0)) for w in weights
    ]
    return pl.pallas_call(
        kernel,
        out_shape=jax.ShapeDtypeStruct((B, N, f_pad), jnp.float32),
        grid=(B,),
        in_specs=in_specs,
        out_specs=pl.BlockSpec((pl.Squeezed(), N, f_pad), lambda b: (b, 0, 0)),
        compiler_params=pltpu.CompilerParams(
            # graphs are independent -> shard across TensorCores (2x on v7x)
            dimension_semantics=("parallel",),
            # safe on v5e/v6e/v7x at this size; re-budget if N grows (see TODO)
            vmem_limit_bytes=32 * 1024 * 1024,
        ),
    )(x, adj_i8, *weights)


# ----------------------------- model ---------------------------------------

class GraphRLNetworkPallas:
    def __init__(self, node_feature_dim, hidden_dim, num_layers, heads, key):
        self.heads = heads
        self.hidden = hidden_dim
        self.num_layers = num_layers
        self.node_feature_dim = node_feature_dim
        # pad last linear to a lane-dense (>=128) output width
        self.f_pad = max(128, ((node_feature_dim + 127) // 128) * 128)
        ks = jax.random.split(key, 6 + num_layers)

        def init(k, shape, scale=0.1):
            return (scale * jax.random.normal(k, shape)).astype(jnp.float32)

        self.embed_w = init(ks[0], (node_feature_dim, hidden_dim))
        self.embed_b = init(ks[1], (1, hidden_dim))

        self.conv = []
        for l in range(num_layers):
            last = (l == num_layers - 1)
            kw, ka, kd, kb = jax.random.split(ks[2 + l], 4)
            bias_dim = hidden_dim * heads if last else hidden_dim
            a_src = init(ka, (heads, hidden_dim))
            a_dst = init(kd, (heads, hidden_dim))
            # Block-diagonal attention projection so scores = h_all @ att (one matmul):
            #   att[h*D+k, h]     = a_src[h, k]
            #   att[h*D+k, H + h] = a_dst[h, k]
            att = jnp.zeros((heads * hidden_dim, 2 * heads), jnp.float32)
            for h in range(heads):
                att = att.at[h * hidden_dim:(h + 1) * hidden_dim, h].set(a_src[h])
                att = att.at[h * hidden_dim:(h + 1) * hidden_dim, heads + h].set(a_dst[h])
            self.conv.append(dict(
                w=init(kw, (hidden_dim, heads * hidden_dim)),
                a_src=a_src, a_dst=a_dst, att=att,
                b=init(kb, (1, bias_dim)),
                concat=last,
            ))

        self.out1_w = init(ks[2 + num_layers], (hidden_dim * heads, hidden_dim))
        self.out1_b = init(ks[3 + num_layers], (1, hidden_dim))
        self.out2_w = init(ks[4 + num_layers], (hidden_dim, node_feature_dim))
        self.out2_b = init(ks[5 + num_layers], (1, node_feature_dim))
        # zero-padded copies for the kernel (lane-dense stores; extra lanes are 0)
        self.out2_w_pad = (jnp.zeros((hidden_dim, self.f_pad), jnp.float32)
                           .at[:, :node_feature_dim].set(self.out2_w))
        self.out2_b_pad = (jnp.zeros((1, self.f_pad), jnp.float32)
                           .at[:, :node_feature_dim].set(self.out2_b))

        # Per-head block selector (H, H*D): 1.0 on head h's lane block.
        lane = jnp.arange(heads * hidden_dim)
        self.sel = (lane[None, :] // hidden_dim ==
                    jnp.arange(heads)[:, None]).astype(jnp.float32)
        # Head-averaging projection (H*D, D): vstack of H identities / H.
        self.avg_proj = (jnp.tile(jnp.eye(hidden_dim, dtype=jnp.float32), (heads, 1))
                         / float(heads))

    def __call__(self, x, adj_i8):
        """x: (B, N, F_in) float32; adj_i8: (B, N, N) int8 (nonzero = edge,
        self-loops included). Mask construction happens inside the kernel."""
        weights = [self.sel, self.avg_proj, self.embed_w, self.embed_b]
        for layer in self.conv:
            weights += [layer["w"], layer["att"], layer["b"]]
        weights += [self.out1_w, self.out1_b, self.out2_w_pad, self.out2_b_pad]
        out = graph_rl_forward(x, adj_i8, weights, heads=self.heads,
                               num_layers=self.num_layers, f_pad=self.f_pad)
        return out[..., :self.node_feature_dim]

    # pure-JAX reference for sanity checking (single graph)
    def reference(self, x, adj):
        def gat_ref(x, layer):
            h_all = x @ layer["w"]
            outs = []
            for h in range(self.heads):
                hh = h_all[:, h * self.hidden:(h + 1) * self.hidden]
                s_src = jnp.sum(hh * layer["a_src"][h], -1)
                s_dst = jnp.sum(hh * layer["a_dst"][h], -1)
                e = s_dst[:, None] + s_src[None, :]
                e = jnp.where(e > 0, e, 0.2 * e)
                e = jnp.where(adj > 0, e, -1e30)
                alpha = jax.nn.softmax(e, axis=-1)
                outs.append(alpha @ hh)
            out = (jnp.concatenate(outs, -1) if layer["concat"]
                   else sum(outs) / self.heads) + layer["b"]
            return jnp.maximum(out, 0.0)

        x = x @ self.embed_w + self.embed_b
        for layer in self.conv:
            x = gat_ref(x, layer)
        x = jnp.maximum(x @ self.out1_w + self.out1_b, 0.0)
        return x @ self.out2_w + self.out2_b


# ----------------------------- main -----------------------------------------

if __name__ == "__main__":
    # Small config consistent with GraphConfig (scaled down), batched over graphs.
    NODE_FEAT = 16
    HIDDEN = 32
    HEADS = 4
    LAYERS = 3
    N = 32            # nodes per graph
    B = 8             # graphs per batched pallas_call (grid axis)
    # edge_attr exists in the PyG Batch but is unused by GATConv(x, edge_index).

    key = jax.random.PRNGKey(0)
    k_x, k_p = jax.random.split(key, 2)

    x = jax.random.normal(k_x, (B, N, NODE_FEAT), jnp.float32)

    # Deterministic per-graph ring graphs (varying stride), both directions,
    # plus self-loops (GATConv add_self_loops=True). Kernel input is int8.
    adjs = []
    for g in range(B):
        stride = 1 + (g % 3)
        src = jnp.concatenate([jnp.arange(N), (jnp.arange(N) + stride) % N])
        dst = jnp.concatenate([(jnp.arange(N) + stride) % N, jnp.arange(N)])
        a = jnp.zeros((N, N), jnp.float32).at[dst, src].set(1.0)
        a = jnp.maximum(a, jnp.eye(N, dtype=jnp.float32))
        adjs.append(a)
    adj_f = jnp.stack(adjs)                 # (B, N, N) float, for the reference
    adj_i8 = adj_f.astype(jnp.int8)         # (B, N, N) int8, kernel input

    model = GraphRLNetworkPallas(NODE_FEAT, HIDDEN, LAYERS, HEADS, k_p)

    out = model(x, adj_i8)
    out = jax.block_until_ready(out)

    ref = jnp.stack([model.reference(x[g], adj_f[g]) for g in range(B)])
    assert out.shape == (B, N, NODE_FEAT)
    assert jnp.allclose(out, ref, rtol=2e-2, atol=2e-2)

    print("KERNEL_OK")
</pallas_src>

<mosaic_0001>
module attributes {stable_mosaic.version = 11 : i64} {
  func.func @_fused_forward_kernel(%arg0: i32, %arg1: memref<1x32x16xf32, #tpu.memory_space<vmem>>, %arg2: memref<1x32x32xi8, #tpu.memory_space<vmem>>, %arg3: memref<4x128xf32, #tpu.memory_space<vmem>>, %arg4: memref<128x32xf32, #tpu.memory_space<vmem>>, %arg5: memref<16x32xf32, #tpu.memory_space<vmem>>, %arg6: memref<1x32xf32, #tpu.memory_space<vmem>>, %arg7: memref<32x128xf32, #tpu.memory_space<vmem>>, %arg8: memref<128x8xf32, #tpu.memory_space<vmem>>, %arg9: memref<1x32xf32, #tpu.memory_space<vmem>>, %arg10: memref<32x128xf32, #tpu.memory_space<vmem>>, %arg11: memref<128x8xf32, #tpu.memory_space<vmem>>, %arg12: memref<1x32xf32, #tpu.memory_space<vmem>>, %arg13: memref<32x128xf32, #tpu.memory_space<vmem>>, %arg14: memref<128x8xf32, #tpu.memory_space<vmem>>, %arg15: memref<1x128xf32, #tpu.memory_space<vmem>>, %arg16: memref<128x32xf32, #tpu.memory_space<vmem>>, %arg17: memref<1x32xf32, #tpu.memory_space<vmem>>, %arg18: memref<32x128xf32, #tpu.memory_space<vmem>>, %arg19: memref<1x128xf32, #tpu.memory_space<vmem>>, %arg20: memref<1x32x128xf32, #tpu.memory_space<vmem>>) attributes {dimension_semantics = [#tpu.dimension_semantics<parallel>], iteration_bounds = array<i64: 8>, scalar_prefetch = 0 : i64, scratch_operands = 0 : i64, tpu.core_type = #tpu.core_type<tc>, window_params = [{transform_indices = @transform_0, window_bounds = array<i64: 1, 32, 16>}, {transform_indices = @transform_1, window_bounds = array<i64: 1, 32, 32>}, {pipeline_mode = #tpu.pipeline_mode<synchronous>, transform_indices = @transform_2, window_bounds = array<i64: 4, 128>}, {pipeline_mode = #tpu.pipeline_mode<synchronous>, transform_indices = @transform_3, window_bounds = array<i64: 128, 32>}, {pipeline_mode = #tpu.pipeline_mode<synchronous>, transform_indices = @transform_4, window_bounds = array<i64: 16, 32>}, {pipeline_mode = #tpu.pipeline_mode<synchronous>, transform_indices = @transform_5, window_bounds = array<i64: 1, 32>}, {pipeline_mode = #tpu.pipeline_mode<synchronous>, transform_indices = @transform_6, window_bounds = array<i64: 32, 128>}, {pipeline_mode = #tpu.pipeline_mode<synchronous>, transform_indices = @transform_7, window_bounds = array<i64: 128, 8>}, {pipeline_mode = #tpu.pipeline_mode<synchronous>, transform_indices = @transform_8, window_bounds = array<i64: 1, 32>}, {pipeline_mode = #tpu.pipeline_mode<synchronous>, transform_indices = @transform_9, window_bounds = array<i64: 32, 128>}, {pipeline_mode = #tpu.pipeline_mode<synchronous>, transform_indices = @transform_10, window_bounds = array<i64: 128, 8>}, {pipeline_mode = #tpu.pipeline_mode<synchronous>, transform_indices = @transform_11, window_bounds = array<i64: 1, 32>}, {pipeline_mode = #tpu.pipeline_mode<synchronous>, transform_indices = @transform_12, window_bounds = array<i64: 32, 128>}, {pipeline_mode = #tpu.pipeline_mode<synchronous>, transform_indices = @transform_13, window_bounds = array<i64: 128, 8>}, {pipeline_mode = #tpu.pipeline_mode<synchronous>, transform_indices = @transform_14, window_bounds = array<i64: 1, 128>}, {pipeline_mode = #tpu.pipeline_mode<synchronous>, transform_indices = @transform_15, window_bounds = array<i64: 128, 32>}, {pipeline_mode = #tpu.pipeline_mode<synchronous>, transform_indices = @transform_16, window_bounds = array<i64: 1, 32>}, {pipeline_mode = #tpu.pipeline_mode<synchronous>, transform_indices = @transform_17, window_bounds = array<i64: 32, 128>}, {pipeline_mode = #tpu.pipeline_mode<synchronous>, transform_indices = @transform_18, window_bounds = array<i64: 1, 128>}, {transform_indices = @transform_19, window_bounds = array<i64: 1, 32, 128>}]} {
    %c0 = arith.constant 0 : index
    %c0_0 = arith.constant 0 : index
    %c0_1 = arith.constant 0 : index
    %0 = vector.load %arg2[%c0, %c0_0, %c0_1] : memref<1x32x32xi8, #tpu.memory_space<vmem>>, vector<1x32x32xi8>
    %1 = vector.shape_cast %0 : vector<1x32x32xi8> to vector<32x32xi8>
    %2 = arith.sitofp %1 : vector<32x32xi8> to vector<32x32xf32>
    %cst = arith.constant 0.000000e+00 : f32
    %3 = vector.broadcast %cst : f32 to vector<32x32xf32>
    %4 = arith.cmpf ogt, %2, %3 : vector<32x32xf32>
    %cst_2 = arith.constant 0.000000e+00 : f32
    %cst_3 = arith.constant -1.000000e+30 : f32
    %5 = vector.broadcast %cst_2 : f32 to vector<32x32xf32>
    %6 = vector.broadcast %cst_3 : f32 to vector<32x32xf32>
    %7 = arith.select %4, %5, %6 : vector<32x32xi1>, vector<32x32xf32>
    %c0_4 = arith.constant 0 : index
    %c0_5 = arith.constant 0 : index
    %c0_6 = arith.constant 0 : index
    %8 = vector.load %arg1[%c0_4, %c0_5, %c0_6] : memref<1x32x16xf32, #tpu.memory_space<vmem>>, vector<1x32x16xf32>
    %9 = vector.shape_cast %8 : vector<1x32x16xf32> to vector<32x16xf32>
    %c0_7 = arith.constant 0 : index
    %c0_8 = arith.constant 0 : index
    %10 = vector.load %arg5[%c0_7, %c0_8] : memref<16x32xf32, #tpu.memory_space<vmem>>, vector<16x32xf32>
    %cst_9 = arith.constant dense<0.000000e+00> : vector<32x32xf32>
    %11 = tpu.matmul %9, %10, %cst_9 {dimension_numbers = #tpu.dot_dimension_numbers<[1], [0], [0], [1], [0, 0, 1, 1], [], []>} : vector<32x16xf32>, vector<16x32xf32>, vector<32x32xf32> -> vector<32x32xf32>
    %c0_10 = arith.constant 0 : index
    %c0_11 = arith.constant 0 : index
    %12 = vector.load %arg6[%c0_10, %c0_11] : memref<1x32xf32, #tpu.memory_space<vmem>>, vector<1x32xf32>
    %13 = vector.broadcast %12 : vector<1x32xf32> to vector<32x32xf32>
    %14 = arith.addf %11, %13 : vector<32x32xf32>
    %c0_12 = arith.constant 0 : index
    %c0_13 = arith.constant 0 : index
    %15 = vector.load %arg7[%c0_12, %c0_13] : memref<32x128xf32, #tpu.memory_space<vmem>>, vector<32x128xf32>
    %cst_14 = arith.constant dense<0.000000e+00> : vector<32x128xf32>
    %16 = tpu.matmul %14, %15, %cst_14 {dimension_numbers = #tpu.dot_dimension_numbers<[1], [0], [0], [1], [0, 0, 1, 1], [], []>} : vector<32x32xf32>, vector<32x128xf32>, vector<32x128xf32> -> vector<32x128xf32>
    %c0_15 = arith.constant 0 : index
    %c0_16 = arith.constant 0 : index
    %17 = vector.load %arg8[%c0_15, %c0_16] : memref<128x8xf32, #tpu.memory_space<vmem>>, vector<128x8xf32>
    %cst_17 = arith.constant dense<0.000000e+00> : vector<32x8xf32>
    %18 = tpu.matmul %16, %17, %cst_17 {dimension_numbers = #tpu.dot_dimension_numbers<[1], [0], [0], [1], [0, 0, 1, 1], [], []>} : vector<32x128xf32>, vector<128x8xf32>, vector<32x8xf32> -> vector<32x8xf32>
    %19 = tpu.transpose %18, [1, 0] : vector<32x8xf32> -> vector<8x32xf32>
    %cst_18 = arith.constant 0.000000e+00 : f32
    %20 = vector.broadcast %cst_18 : f32 to vector<32x128xf32>
    %21 = vector.extract_strided_slice %18 {offsets = [0, 4], sizes = [32, 1], strides = [1, 1]} : vector<32x8xf32> to vector<32x1xf32>
    %22 = vector.extract_strided_slice %19 {offsets = [0, 0], sizes = [1, 32], strides = [1, 1]} : vector<8x32xf32> to vector<1x32xf32>
    %23 = vector.broadcast %21 : vector<32x1xf32> to vector<32x32xf32>
    %24 = vector.broadcast %22 : vector<1x32xf32> to vector<32x32xf32>
    %25 = arith.addf %23, %24 : vector<32x32xf32>
    %cst_19 = arith.constant 0.000000e+00 : f32
    %26 = vector.broadcast %cst_19 : f32 to vector<32x32xf32>
    %27 = arith.cmpf ogt, %25, %26 : vector<32x32xf32>
    %cst_20 = arith.constant 2.000000e-01 : f32
    %28 = vector.broadcast %cst_20 : f32 to vector<32x32xf32>
    %29 = arith.mulf %28, %25 : vector<32x32xf32>
    %30 = arith.select %27, %25, %29 : vector<32x32xi1>, vector<32x32xf32>
    %31 = arith.addf %30, %7 : vector<32x32xf32>
    %cst_21 = arith.constant dense<0xFF800000> : vector<32xf32>
    %32 = vector.multi_reduction <maximumf>, %31, %cst_21 [1] : vector<32x32xf32> to vector<32xf32>
    %33 = vector.shape_cast %32 : vector<32xf32> to vector<32x1xf32>
    %34 = vector.broadcast %33 : vector<32x1xf32> to vector<32x32xf32>
    %35 = arith.subf %31, %34 : vector<32x32xf32>
    %36 = math.exp %35 : vector<32x32xf32>
    %cst_22 = arith.constant dense<0.000000e+00> : vector<32xf32>
    %37 = vector.multi_reduction <add>, %36, %cst_22 [1] : vector<32x32xf32> to vector<32xf32>
    %38 = vector.shape_cast %37 : vector<32xf32> to vector<32x1xf32>
    %39 = tpu.reciprocal %38 {approx = true} : vector<32x1xf32> -> vector<32x1xf32>
    %40 = vector.broadcast %39 : vector<32x1xf32> to vector<32x32xf32>
    %41 = arith.mulf %36, %40 : vector<32x32xf32>
    %cst_23 = arith.constant dense<0.000000e+00> : vector<32x128xf32>
    %42 = tpu.matmul %41, %16, %cst_23 {dimension_numbers = #tpu.dot_dimension_numbers<[1], [0], [0], [1], [0, 0, 1, 1], [], []>} : vector<32x32xf32>, vector<32x128xf32>, vector<32x128xf32> -> vector<32x128xf32>
    %c0_24 = arith.constant 0 : index
    %c0_25 = arith.constant 0 : index
    %43 = vector.load %arg3[%c0_24, %c0_25] : memref<4x128xf32, #tpu.memory_space<vmem>>, vector<1x128xf32>
    %44 = vector.broadcast %43 : vector<1x128xf32> to vector<32x128xf32>
    %45 = arith.mulf %42, %44 : vector<32x128xf32>
    %46 = arith.addf %20, %45 : vector<32x128xf32>
    %47 = vector.extract_strided_slice %18 {offsets = [0, 5], sizes = [32, 1], strides = [1, 1]} : vector<32x8xf32> to vector<32x1xf32>
    %48 = vector.extract_strided_slice %19 {offsets = [1, 0], sizes = [1, 32], strides = [1, 1]} : vector<8x32xf32> to vector<1x32xf32>
    %49 = vector.broadcast %47 : vector<32x1xf32> to vector<32x32xf32>
    %50 = vector.broadcast %48 : vector<1x32xf32> to vector<32x32xf32>
    %51 = arith.addf %49, %50 : vector<32x32xf32>
    %cst_26 = arith.constant 0.000000e+00 : f32
    %52 = vector.broadcast %cst_26 : f32 to vector<32x32xf32>
    %53 = arith.cmpf ogt, %51, %52 : vector<32x32xf32>
    %cst_27 = arith.constant 2.000000e-01 : f32
    %54 = vector.broadcast %cst_27 : f32 to vector<32x32xf32>
    %55 = arith.mulf %54, %51 : vector<32x32xf32>
    %56 = arith.select %53, %51, %55 : vector<32x32xi1>, vector<32x32xf32>
    %57 = arith.addf %56, %7 : vector<32x32xf32>
    %cst_28 = arith.constant dense<0xFF800000> : vector<32xf32>
    %58 = vector.multi_reduction <maximumf>, %57, %cst_28 [1] : vector<32x32xf32> to vector<32xf32>
    %59 = vector.shape_cast %58 : vector<32xf32> to vector<32x1xf32>
    %60 = vector.broadcast %59 : vector<32x1xf32> to vector<32x32xf32>
    %61 = arith.subf %57, %60 : vector<32x32xf32>
    %62 = math.exp %61 : vector<32x32xf32>
    %cst_29 = arith.constant dense<0.000000e+00> : vector<32xf32>
    %63 = vector.multi_reduction <add>, %62, %cst_29 [1] : vector<32x32xf32> to vector<32xf32>
    %64 = vector.shape_cast %63 : vector<32xf32> to vector<32x1xf32>
    %65 = tpu.reciprocal %64 {approx = true} : vector<32x1xf32> -> vector<32x1xf32>
    %66 = vector.broadcast %65 : vector<32x1xf32> to vector<32x32xf32>
    %67 = arith.mulf %62, %66 : vector<32x32xf32>
    %cst_30 = arith.constant dense<0.000000e+00> : vector<32x128xf32>
    %68 = tpu.matmul %67, %16, %cst_30 {dimension_numbers = #tpu.dot_dimension_numbers<[1], [0], [0], [1], [0, 0, 1, 1], [], []>} : vector<32x32xf32>, vector<32x128xf32>, vector<32x128xf32> -> vector<32x128xf32>
    %c1 = arith.constant 1 : index
    %c0_31 = arith.constant 0 : index
    %69 = vector.load %arg3[%c1, %c0_31] : memref<4x128xf32, #tpu.memory_space<vmem>>, vector<1x128xf32>
    %70 = vector.broadcast %69 : vector<1x128xf32> to vector<32x128xf32>
    %71 = arith.mulf %68, %70 : vector<32x128xf32>
    %72 = arith.addf %46, %71 : vector<32x128xf32>
    %73 = vector.extract_strided_slice %18 {offsets = [0, 6], sizes = [32, 1], strides = [1, 1]} : vector<32x8xf32> to vector<32x1xf32>
    %74 = vector.extract_strided_slice %19 {offsets = [2, 0], sizes = [1, 32], strides = [1, 1]} : vector<8x32xf32> to vector<1x32xf32>
    %75 = vector.broadcast %73 : vector<32x1xf32> to vector<32x32xf32>
    %76 = vector.broadcast %74 : vector<1x32xf32> to vector<32x32xf32>
    %77 = arith.addf %75, %76 : vector<32x32xf32>
    %cst_32 = arith.constant 0.000000e+00 : f32
    %78 = vector.broadcast %cst_32 : f32 to vector<32x32xf32>
    %79 = arith.cmpf ogt, %77, %78 : vector<32x32xf32>
    %cst_33 = arith.constant 2.000000e-01 : f32
    %80 = vector.broadcast %cst_33 : f32 to vector<32x32xf32>
    %81 = arith.mulf %80, %77 : vector<32x32xf32>
    %82 = arith.select %79, %77, %81 : vector<32x32xi1>, vector<32x32xf32>
    %83 = arith.addf %82, %7 : vector<32x32xf32>
    %cst_34 = arith.constant dense<0xFF800000> : vector<32xf32>
    %84 = vector.multi_reduction <maximumf>, %83, %cst_34 [1] : vector<32x32xf32> to vector<32xf32>
    %85 = vector.shape_cast %84 : vector<32xf32> to vector<32x1xf32>
    %86 = vector.broadcast %85 : vector<32x1xf32> to vector<32x32xf32>
    %87 = arith.subf %83, %86 : vector<32x32xf32>
    %88 = math.exp %87 : vector<32x32xf32>
    %cst_35 = arith.constant dense<0.000000e+00> : vector<32xf32>
    %89 = vector.multi_reduction <add>, %88, %cst_35 [1] : vector<32x32xf32> to vector<32xf32>
    %90 = vector.shape_cast %89 : vector<32xf32> to vector<32x1xf32>
    %91 = tpu.reciprocal %90 {approx = true} : vector<32x1xf32> -> vector<32x1xf32>
    %92 = vector.broadcast %91 : vector<32x1xf32> to vector<32x32xf32>
    %93 = arith.mulf %88, %92 : vector<32x32xf32>
    %cst_36 = arith.constant dense<0.000000e+00> : vector<32x128xf32>
    %94 = tpu.matmul %93, %16, %cst_36 {dimension_numbers = #tpu.dot_dimension_numbers<[1], [0], [0], [1], [0, 0, 1, 1], [], []>} : vector<32x32xf32>, vector<32x128xf32>, vector<32x128xf32> -> vector<32x128xf32>
    %c2 = arith.constant 2 : index
    %c0_37 = arith.constant 0 : index
    %95 = vector.load %arg3[%c2, %c0_37] : memref<4x128xf32, #tpu.memory_space<vmem>>, vector<1x128xf32>
    %96 = vector.broadcast %95 : vector<1x128xf32> to vector<32x128xf32>
    %97 = arith.mulf %94, %96 : vector<32x128xf32>
    %98 = arith.addf %72, %97 : vector<32x128xf32>
    %99 = vector.extract_strided_slice %18 {offsets = [0, 7], sizes = [32, 1], strides = [1, 1]} : vector<32x8xf32> to vector<32x1xf32>
    %100 = vector.extract_strided_slice %19 {offsets = [3, 0], sizes = [1, 32], strides = [1, 1]} : vector<8x32xf32> to vector<1x32xf32>
    %101 = vector.broadcast %99 : vector<32x1xf32> to vector<32x32xf32>
    %102 = vector.broadcast %100 : vector<1x32xf32> to vector<32x32xf32>
    %103 = arith.addf %101, %102 : vector<32x32xf32>
    %cst_38 = arith.constant 0.000000e+00 : f32
    %104 = vector.broadcast %cst_38 : f32 to vector<32x32xf32>
    %105 = arith.cmpf ogt, %103, %104 : vector<32x32xf32>
    %cst_39 = arith.constant 2.000000e-01 : f32
    %106 = vector.broadcast %cst_39 : f32 to vector<32x32xf32>
    %107 = arith.mulf %106, %103 : vector<32x32xf32>
    %108 = arith.select %105, %103, %107 : vector<32x32xi1>, vector<32x32xf32>
    %109 = arith.addf %108, %7 : vector<32x32xf32>
    %cst_40 = arith.constant dense<0xFF800000> : vector<32xf32>
    %110 = vector.multi_reduction <maximumf>, %109, %cst_40 [1] : vector<32x32xf32> to vector<32xf32>
    %111 = vector.shape_cast %110 : vector<32xf32> to vector<32x1xf32>
    %112 = vector.broadcast %111 : vector<32x1xf32> to vector<32x32xf32>
    %113 = arith.subf %109, %112 : vector<32x32xf32>
    %114 = math.exp %113 : vector<32x32xf32>
    %cst_41 = arith.constant dense<0.000000e+00> : vector<32xf32>
    %115 = vector.multi_reduction <add>, %114, %cst_41 [1] : vector<32x32xf32> to vector<32xf32>
    %116 = vector.shape_cast %115 : vector<32xf32> to vector<32x1xf32>
    %117 = tpu.reciprocal %116 {approx = true} : vector<32x1xf32> -> vector<32x1xf32>
    %118 = vector.broadcast %117 : vector<32x1xf32> to vector<32x32xf32>
    %119 = arith.mulf %114, %118 : vector<32x32xf32>
    %cst_42 = arith.constant dense<0.000000e+00> : vector<32x128xf32>
    %120 = tpu.matmul %119, %16, %cst_42 {dimension_numbers = #tpu.dot_dimension_numbers<[1], [0], [0], [1], [0, 0, 1, 1], [], []>} : vector<32x32xf32>, vector<32x128xf32>, vector<32x128xf32> -> vector<32x128xf32>
    %c3 = arith.constant 3 : index
    %c0_43 = arith.constant 0 : index
    %121 = vector.load %arg3[%c3, %c0_43] : memref<4x128xf32, #tpu.memory_space<vmem>>, vector<1x128xf32>
    %122 = vector.broadcast %121 : vector<1x128xf32> to vector<32x128xf32>
    %123 = arith.mulf %120, %122 : vector<32x128xf32>
    %124 = arith.addf %98, %123 : vector<32x128xf32>
    %c0_44 = arith.constant 0 : index
    %c0_45 = arith.constant 0 : index
    %125 = vector.load %arg4[%c0_44, %c0_45] : memref<128x32xf32, #tpu.memory_space<vmem>>, vector<128x32xf32>
    %cst_46 = arith.constant dense<0.000000e+00> : vector<32x32xf32>
    %126 = tpu.matmul %124, %125, %cst_46 {dimension_numbers = #tpu.dot_dimension_numbers<[1], [0], [0], [1], [0, 0, 1, 1], [], []>} : vector<32x128xf32>, vector<128x32xf32>, vector<32x32xf32> -> vector<32x32xf32>
    %c0_47 = arith.constant 0 : index
    %c0_48 = arith.constant 0 : index
    %127 = vector.load %arg9[%c0_47, %c0_48] : memref<1x32xf32, #tpu.memory_space<vmem>>, vector<1x32xf32>
    %128 = vector.broadcast %127 : vector<1x32xf32> to vector<32x32xf32>
    %129 = arith.addf %126, %128 : vector<32x32xf32>
    %cst_49 = arith.constant 0.000000e+00 : f32
    %130 = vector.broadcast %cst_49 : f32 to vector<32x32xf32>
    %131 = arith.maximumf %129, %130 : vector<32x32xf32>
    %c0_50 = arith.constant 0 : index
    %c0_51 = arith.constant 0 : index
    %132 = vector.load %arg10[%c0_50, %c0_51] : memref<32x128xf32, #tpu.memory_space<vmem>>, vector<32x128xf32>
    %cst_52 = arith.constant dense<0.000000e+00> : vector<32x128xf32>
    %133 = tpu.matmul %131, %132, %cst_52 {dimension_numbers = #tpu.dot_dimension_numbers<[1], [0], [0], [1], [0, 0, 1, 1], [], []>} : vector<32x32xf32>, vector<32x128xf32>, vector<32x128xf32> -> vector<32x128xf32>
    %c0_53 = arith.constant 0 : index
    %c0_54 = arith.constant 0 : index
    %134 = vector.load %arg11[%c0_53, %c0_54] : memref<128x8xf32, #tpu.memory_space<vmem>>, vector<128x8xf32>
    %cst_55 = arith.constant dense<0.000000e+00> : vector<32x8xf32>
    %135 = tpu.matmul %133, %134, %cst_55 {dimension_numbers = #tpu.dot_dimension_numbers<[1], [0], [0], [1], [0, 0, 1, 1], [], []>} : vector<32x128xf32>, vector<128x8xf32>, vector<32x8xf32> -> vector<32x8xf32>
    %136 = tpu.transpose %135, [1, 0] : vector<32x8xf32> -> vector<8x32xf32>
    %cst_56 = arith.constant 0.000000e+00 : f32
    %137 = vector.broadcast %cst_56 : f32 to vector<32x128xf32>
    %138 = vector.extract_strided_slice %135 {offsets = [0, 4], sizes = [32, 1], strides = [1, 1]} : vector<32x8xf32> to vector<32x1xf32>
    %139 = vector.extract_strided_slice %136 {offsets = [0, 0], sizes = [1, 32], strides = [1, 1]} : vector<8x32xf32> to vector<1x32xf32>
    %140 = vector.broadcast %138 : vector<32x1xf32> to vector<32x32xf32>
    %141 = vector.broadcast %139 : vector<1x32xf32> to vector<32x32xf32>
    %142 = arith.addf %140, %141 : vector<32x32xf32>
    %cst_57 = arith.constant 0.000000e+00 : f32
    %143 = vector.broadcast %cst_57 : f32 to vector<32x32xf32>
    %144 = arith.cmpf ogt, %142, %143 : vector<32x32xf32>
    %cst_58 = arith.constant 2.000000e-01 : f32
    %145 = vector.broadcast %cst_58 : f32 to vector<32x32xf32>
    %146 = arith.mulf %145, %142 : vector<32x32xf32>
    %147 = arith.select %144, %142, %146 : vector<32x32xi1>, vector<32x32xf32>
    %148 = arith.addf %147, %7 : vector<32x32xf32>
    %cst_59 = arith.constant dense<0xFF800000> : vector<32xf32>
    %149 = vector.multi_reduction <maximumf>, %148, %cst_59 [1] : vector<32x32xf32> to vector<32xf32>
    %150 = vector.shape_cast %149 : vector<32xf32> to vector<32x1xf32>
    %151 = vector.broadcast %150 : vector<32x1xf32> to vector<32x32xf32>
    %152 = arith.subf %148, %151 : vector<32x32xf32>
    %153 = math.exp %152 : vector<32x32xf32>
    %cst_60 = arith.constant dense<0.000000e+00> : vector<32xf32>
    %154 = vector.multi_reduction <add>, %153, %cst_60 [1] : vector<32x32xf32> to vector<32xf32>
    %155 = vector.shape_cast %154 : vector<32xf32> to vector<32x1xf32>
    %156 = tpu.reciprocal %155 {approx = true} : vector<32x1xf32> -> vector<32x1xf32>
    %157 = vector.broadcast %156 : vector<32x1xf32> to vector<32x32xf32>
    %158 = arith.mulf %153, %157 : vector<32x32xf32>
    %cst_61 = arith.constant dense<0.000000e+00> : vector<32x128xf32>
    %159 = tpu.matmul %158, %133, %cst_61 {dimension_numbers = #tpu.dot_dimension_numbers<[1], [0], [0], [1], [0, 0, 1, 1], [], []>} : vector<32x32xf32>, vector<32x128xf32>, vector<32x128xf32> -> vector<32x128xf32>
    %c0_62 = arith.constant 0 : index
    %c0_63 = arith.constant 0 : index
    %160 = vector.load %arg3[%c0_62, %c0_63] : memref<4x128xf32, #tpu.memory_space<vmem>>, vector<1x128xf32>
    %161 = vector.broadcast %160 : vector<1x128xf32> to vector<32x128xf32>
    %162 = arith.mulf %159, %161 : vector<32x128xf32>
    %163 = arith.addf %137, %162 : vector<32x128xf32>
    %164 = vector.extract_strided_slice %135 {offsets = [0, 5], sizes = [32, 1], strides = [1, 1]} : vector<32x8xf32> to vector<32x1xf32>
    %165 = vector.extract_strided_slice %136 {offsets = [1, 0], sizes = [1, 32], strides = [1, 1]} : vector<8x32xf32> to vector<1x32xf32>
    %166 = vector.broadcast %164 : vector<32x1xf32> to vector<32x32xf32>
    %167 = vector.broadcast %165 : vector<1x32xf32> to vector<32x32xf32>
    %168 = arith.addf %166, %167 : vector<32x32xf32>
    %cst_64 = arith.constant 0.000000e+00 : f32
    %169 = vector.broadcast %cst_64 : f32 to vector<32x32xf32>
    %170 = arith.cmpf ogt, %168, %169 : vector<32x32xf32>
    %cst_65 = arith.constant 2.000000e-01 : f32
    %171 = vector.broadcast %cst_65 : f32 to vector<32x32xf32>
    %172 = arith.mulf %171, %168 : vector<32x32xf32>
    %173 = arith.select %170, %168, %172 : vector<32x32xi1>, vector<32x32xf32>
    %174 = arith.addf %173, %7 : vector<32x32xf32>
    %cst_66 = arith.constant dense<0xFF800000> : vector<32xf32>
    %175 = vector.multi_reduction <maximumf>, %174, %cst_66 [1] : vector<32x32xf32> to vector<32xf32>
    %176 = vector.shape_cast %175 : vector<32xf32> to vector<32x1xf32>
    %177 = vector.broadcast %176 : vector<32x1xf32> to vector<32x32xf32>
    %178 = arith.subf %174, %177 : vector<32x32xf32>
    %179 = math.exp %178 : vector<32x32xf32>
    %cst_67 = arith.constant dense<0.000000e+00> : vector<32xf32>
    %180 = vector.multi_reduction <add>, %179, %cst_67 [1] : vector<32x32xf32> to vector<32xf32>
    %181 = vector.shape_cast %180 : vector<32xf32> to vector<32x1xf32>
    %182 = tpu.reciprocal %181 {approx = true} : vector<32x1xf32> -> vector<32x1xf32>
    %183 = vector.broadcast %182 : vector<32x1xf32> to vector<32x32xf32>
    %184 = arith.mulf %179, %183 : vector<32x32xf32>
    %cst_68 = arith.constant dense<0.000000e+00> : vector<32x128xf32>
    %185 = tpu.matmul %184, %133, %cst_68 {dimension_numbers = #tpu.dot_dimension_numbers<[1], [0], [0], [1], [0, 0, 1, 1], [], []>} : vector<32x32xf32>, vector<32x128xf32>, vector<32x128xf32> -> vector<32x128xf32>
    %c1_69 = arith.constant 1 : index
    %c0_70 = arith.constant 0 : index
    %186 = vector.load %arg3[%c1_69, %c0_70] : memref<4x128xf32, #tpu.memory_space<vmem>>, vector<1x128xf32>
    %187 = vector.broadcast %186 : vector<1x128xf32> to vector<32x128xf32>
    %188 = arith.mulf %185, %187 : vector<32x128xf32>
    %189 = arith.addf %163, %188 : vector<32x128xf32>
    %190 = vector.extract_strided_slice %135 {offsets = [0, 6], sizes = [32, 1], strides = [1, 1]} : vector<32x8xf32> to vector<32x1xf32>
    %191 = vector.extract_strided_slice %136 {offsets = [2, 0], sizes = [1, 32], strides = [1, 1]} : vector<8x32xf32> to vector<1x32xf32>
    %192 = vector.broadcast %190 : vector<32x1xf32> to vector<32x32xf32>
    %193 = vector.broadcast %191 : vector<1x32xf32> to vector<32x32xf32>
    %194 = arith.addf %192, %193 : vector<32x32xf32>
    %cst_71 = arith.constant 0.000000e+00 : f32
    %195 = vector.broadcast %cst_71 : f32 to vector<32x32xf32>
    %196 = arith.cmpf ogt, %194, %195 : vector<32x32xf32>
    %cst_72 = arith.constant 2.000000e-01 : f32
    %197 = vector.broadcast %cst_72 : f32 to vector<32x32xf32>
    %198 = arith.mulf %197, %194 : vector<32x32xf32>
    %199 = arith.select %196, %194, %198 : vector<32x32xi1>, vector<32x32xf32>
    %200 = arith.addf %199, %7 : vector<32x32xf32>
    %cst_73 = arith.constant dense<0xFF800000> : vector<32xf32>
    %201 = vector.multi_reduction <maximumf>, %200, %cst_73 [1] : vector<32x32xf32> to vector<32xf32>
    %202 = vector.shape_cast %201 : vector<32xf32> to vector<32x1xf32>
    %203 = vector.broadcast %202 : vector<32x1xf32> to vector<32x32xf32>
    %204 = arith.subf %200, %203 : vector<32x32xf32>
    %205 = math.exp %204 : vector<32x32xf32>
    %cst_74 = arith.constant dense<0.000000e+00> : vector<32xf32>
    %206 = vector.multi_reduction <add>, %205, %cst_74 [1] : vector<32x32xf32> to vector<32xf32>
    %207 = vector.shape_cast %206 : vector<32xf32> to vector<32x1xf32>
    %208 = tpu.reciprocal %207 {approx = true} : vector<32x1xf32> -> vector<32x1xf32>
    %209 = vector.broadcast %208 : vector<32x1xf32> to vector<32x32xf32>
    %210 = arith.mulf %205, %209 : vector<32x32xf32>
    %cst_75 = arith.constant dense<0.000000e+00> : vector<32x128xf32>
    %211 = tpu.matmul %210, %133, %cst_75 {dimension_numbers = #tpu.dot_dimension_numbers<[1], [0], [0], [1], [0, 0, 1, 1], [], []>} : vector<32x32xf32>, vector<32x128xf32>, vector<32x128xf32> -> vector<32x128xf32>
    %c2_76 = arith.constant 2 : index
    %c0_77 = arith.constant 0 : index
    %212 = vector.load %arg3[%c2_76, %c0_77] : memref<4x128xf32, #tpu.memory_space<vmem>>, vector<1x128xf32>
    %213 = vector.broadcast %212 : vector<1x128xf32> to vector<32x128xf32>
    %214 = arith.mulf %211, %213 : vector<32x128xf32>
    %215 = arith.addf %189, %214 : vector<32x128xf32>
    %216 = vector.extract_strided_slice %135 {offsets = [0, 7], sizes = [32, 1], strides = [1, 1]} : vector<32x8xf32> to vector<32x1xf32>
    %217 = vector.extract_strided_slice %136 {offsets = [3, 0], sizes = [1, 32], strides = [1, 1]} : vector<8x32xf32> to vector<1x32xf32>
    %218 = vector.broadcast %216 : vector<32x1xf32> to vector<32x32xf32>
    %219 = vector.broadcast %217 : vector<1x32xf32> to vector<32x32xf32>
    %220 = arith.addf %218, %219 : vector<32x32xf32>
    %cst_78 = arith.constant 0.000000e+00 : f32
    %221 = vector.broadcast %cst_78 : f32 to vector<32x32xf32>
    %222 = arith.cmpf ogt, %220, %221 : vector<32x32xf32>
    %cst_79 = arith.constant 2.000000e-01 : f32
    %223 = vector.broadcast %cst_79 : f32 to vector<32x32xf32>
    %224 = arith.mulf %223, %220 : vector<32x32xf32>
    %225 = arith.select %222, %220, %224 : vector<32x32xi1>, vector<32x32xf32>
    %226 = arith.addf %225, %7 : vector<32x32xf32>
    %cst_80 = arith.constant dense<0xFF800000> : vector<32xf32>
    %227 = vector.multi_reduction <maximumf>, %226, %cst_80 [1] : vector<32x32xf32> to vector<32xf32>
    %228 = vector.shape_cast %227 : vector<32xf32> to vector<32x1xf32>
    %229 = vector.broadcast %228 : vector<32x1xf32> to vector<32x32xf32>
    %230 = arith.subf %226, %229 : vector<32x32xf32>
    %231 = math.exp %230 : vector<32x32xf32>
    %cst_81 = arith.constant dense<0.000000e+00> : vector<32xf32>
    %232 = vector.multi_reduction <add>, %231, %cst_81 [1] : vector<32x32xf32> to vector<32xf32>
    %233 = vector.shape_cast %232 : vector<32xf32> to vector<32x1xf32>
    %234 = tpu.reciprocal %233 {approx = true} : vector<32x1xf32> -> vector<32x1xf32>
    %235 = vector.broadcast %234 : vector<32x1xf32> to vector<32x32xf32>
    %236 = arith.mulf %231, %235 : vector<32x32xf32>
    %cst_82 = arith.constant dense<0.000000e+00> : vector<32x128xf32>
    %237 = tpu.matmul %236, %133, %cst_82 {dimension_numbers = #tpu.dot_dimension_numbers<[1], [0], [0], [1], [0, 0, 1, 1], [], []>} : vector<32x32xf32>, vector<32x128xf32>, vector<32x128xf32> -> vector<32x128xf32>
    %c3_83 = arith.constant 3 : index
    %c0_84 = arith.constant 0 : index
    %238 = vector.load %arg3[%c3_83, %c0_84] : memref<4x128xf32, #tpu.memory_space<vmem>>, vector<1x128xf32>
    %239 = vector.broadcast %238 : vector<1x128xf32> to vector<32x128xf32>
    %240 = arith.mulf %237, %239 : vector<32x128xf32>
    %241 = arith.addf %215, %240 : vector<32x128xf32>
    %c0_85 = arith.constant 0 : index
    %c0_86 = arith.constant 0 : index
    %242 = vector.load %arg4[%c0_85, %c0_86] : memref<128x32xf32, #tpu.memory_space<vmem>>, vector<128x32xf32>
    %cst_87 = arith.constant dense<0.000000e+00> : vector<32x32xf32>
    %243 = tpu.matmul %241, %242, %cst_87 {dimension_numbers = #tpu.dot_dimension_numbers<[1], [0], [0], [1], [0, 0, 1, 1], [], []>} : vector<32x128xf32>, vector<128x32xf32>, vector<32x32xf32> -> vector<32x32xf32>
    %c0_88 = arith.constant 0 : index
    %c0_89 = arith.constant 0 : index
    %244 = vector.load %arg12[%c0_88, %c0_89] : memref<1x32xf32, #tpu.memory_space<vmem>>, vector<1x32xf32>
    %245 = vector.broadcast %244 : vector<1x32xf32> to vector<32x32xf32>
    %246 = arith.addf %243, %245 : vector<32x32xf32>
    %cst_90 = arith.constant 0.000000e+00 : f32
    %247 = vector.broadcast %cst_90 : f32 to vector<32x32xf32>
    %248 = arith.maximumf %246, %247 : vector<32x32xf32>
    %c0_91 = arith.constant 0 : index
    %c0_92 = arith.constant 0 : index
    %249 = vector.load %arg13[%c0_91, %c0_92] : memref<32x128xf32, #tpu.memory_space<vmem>>, vector<32x128xf32>
    %cst_93 = arith.constant dense<0.000000e+00> : vector<32x128xf32>
    %250 = tpu.matmul %248, %249, %cst_93 {dimension_numbers = #tpu.dot_dimension_numbers<[1], [0], [0], [1], [0, 0, 1, 1], [], []>} : vector<32x32xf32>, vector<32x128xf32>, vector<32x128xf32> -> vector<32x128xf32>
    %c0_94 = arith.constant 0 : index
    %c0_95 = arith.constant 0 : index
    %251 = vector.load %arg14[%c0_94, %c0_95] : memref<128x8xf32, #tpu.memory_space<vmem>>, vector<128x8xf32>
    %cst_96 = arith.constant dense<0.000000e+00> : vector<32x8xf32>
    %252 = tpu.matmul %250, %251, %cst_96 {dimension_numbers = #tpu.dot_dimension_numbers<[1], [0], [0], [1], [0, 0, 1, 1], [], []>} : vector<32x128xf32>, vector<128x8xf32>, vector<32x8xf32> -> vector<32x8xf32>
    %253 = tpu.transpose %252, [1, 0] : vector<32x8xf32> -> vector<8x32xf32>
    %cst_97 = arith.constant 0.000000e+00 : f32
    %254 = vector.broadcast %cst_97 : f32 to vector<32x128xf32>
    %255 = vector.extract_strided_slice %252 {offsets = [0, 4], sizes = [32, 1], strides = [1, 1]} : vector<32x8xf32> to vector<32x1xf32>
    %256 = vector.extract_strided_slice %253 {offsets = [0, 0], sizes = [1, 32], strides = [1, 1]} : vector<8x32xf32> to vector<1x32xf32>
    %257 = vector.broadcast %255 : vector<32x1xf32> to vector<32x32xf32>
    %258 = vector.broadcast %256 : vector<1x32xf32> to vector<32x32xf32>
    %259 = arith.addf %257, %258 : vector<32x32xf32>
    %cst_98 = arith.constant 0.000000e+00 : f32
    %260 = vector.broadcast %cst_98 : f32 to vector<32x32xf32>
    %261 = arith.cmpf ogt, %259, %260 : vector<32x32xf32>
    %cst_99 = arith.constant 2.000000e-01 : f32
    %262 = vector.broadcast %cst_99 : f32 to vector<32x32xf32>
    %263 = arith.mulf %262, %259 : vector<32x32xf32>
    %264 = arith.select %261, %259, %263 : vector<32x32xi1>, vector<32x32xf32>
    %265 = arith.addf %264, %7 : vector<32x32xf32>
    %cst_100 = arith.constant dense<0xFF800000> : vector<32xf32>
    %266 = vector.multi_reduction <maximumf>, %265, %cst_100 [1] : vector<32x32xf32> to vector<32xf32>
    %267 = vector.shape_cast %266 : vector<32xf32> to vector<32x1xf32>
    %268 = vector.broadcast %267 : vector<32x1xf32> to vector<32x32xf32>
    %269 = arith.subf %265, %268 : vector<32x32xf32>
    %270 = math.exp %269 : vector<32x32xf32>
    %cst_101 = arith.constant dense<0.000000e+00> : vector<32xf32>
    %271 = vector.multi_reduction <add>, %270, %cst_101 [1] : vector<32x32xf32> to vector<32xf32>
    %272 = vector.shape_cast %271 : vector<32xf32> to vector<32x1xf32>
    %273 = tpu.reciprocal %272 {approx = true} : vector<32x1xf32> -> vector<32x1xf32>
    %274 = vector.broadcast %273 : vector<32x1xf32> to vector<32x32xf32>
    %275 = arith.mulf %270, %274 : vector<32x32xf32>
    %cst_102 = arith.constant dense<0.000000e+00> : vector<32x128xf32>
    %276 = tpu.matmul %275, %250, %cst_102 {dimension_numbers = #tpu.dot_dimension_numbers<[1], [0], [0], [1], [0, 0, 1, 1], [], []>} : vector<32x32xf32>, vector<32x128xf32>, vector<32x128xf32> -> vector<32x128xf32>
    %c0_103 = arith.constant 0 : index
    %c0_104 = arith.constant 0 : index
    %277 = vector.load %arg3[%c0_103, %c0_104] : memref<4x128xf32, #tpu.memory_space<vmem>>, vector<1x128xf32>
    %278 = vector.broadcast %277 : vector<1x128xf32> to vector<32x128xf32>
    %279 = arith.mulf %276, %278 : vector<32x128xf32>
    %280 = arith.addf %254, %279 : vector<32x128xf32>
    %281 = vector.extract_strided_slice %252 {offsets = [0, 5], sizes = [32, 1], strides = [1, 1]} : vector<32x8xf32> to vector<32x1xf32>
    %282 = vector.extract_strided_slice %253 {offsets = [1, 0], sizes = [1, 32], strides = [1, 1]} : vector<8x32xf32> to vector<1x32xf32>
    %283 = vector.broadcast %281 : vector<32x1xf32> to vector<32x32xf32>
    %284 = vector.broadcast %282 : vector<1x32xf32> to vector<32x32xf32>
    %285 = arith.addf %283, %284 : vector<32x32xf32>
    %cst_105 = arith.constant 0.000000e+00 : f32
    %286 = vector.broadcast %cst_105 : f32 to vector<32x32xf32>
    %287 = arith.cmpf ogt, %285, %286 : vector<32x32xf32>
    %cst_106 = arith.constant 2.000000e-01 : f32
    %288 = vector.broadcast %cst_106 : f32 to vector<32x32xf32>
    %289 = arith.mulf %288, %285 : vector<32x32xf32>
    %290 = arith.select %287, %285, %289 : vector<32x32xi1>, vector<32x32xf32>
    %291 = arith.addf %290, %7 : vector<32x32xf32>
    %cst_107 = arith.constant dense<0xFF800000> : vector<32xf32>
    %292 = vector.multi_reduction <maximumf>, %291, %cst_107 [1] : vector<32x32xf32> to vector<32xf32>
    %293 = vector.shape_cast %292 : vector<32xf32> to vector<32x1xf32>
    %294 = vector.broadcast %293 : vector<32x1xf32> to vector<32x32xf32>
    %295 = arith.subf %291, %294 : vector<32x32xf32>
    %296 = math.exp %295 : vector<32x32xf32>
    %cst_108 = arith.constant dense<0.000000e+00> : vector<32xf32>
    %297 = vector.multi_reduction <add>, %296, %cst_108 [1] : vector<32x32xf32> to vector<32xf32>
    %298 = vector.shape_cast %297 : vector<32xf32> to vector<32x1xf32>
    %299 = tpu.reciprocal %298 {approx = true} : vector<32x1xf32> -> vector<32x1xf32>
    %300 = vector.broadcast %299 : vector<32x1xf32> to vector<32x32xf32>
    %301 = arith.mulf %296, %300 : vector<32x32xf32>
    %cst_109 = arith.constant dense<0.000000e+00> : vector<32x128xf32>
    %302 = tpu.matmul %301, %250, %cst_109 {dimension_numbers = #tpu.dot_dimension_numbers<[1], [0], [0], [1], [0, 0, 1, 1], [], []>} : vector<32x32xf32>, vector<32x128xf32>, vector<32x128xf32> -> vector<32x128xf32>
    %c1_110 = arith.constant 1 : index
    %c0_111 = arith.constant 0 : index
    %303 = vector.load %arg3[%c1_110, %c0_111] : memref<4x128xf32, #tpu.memory_space<vmem>>, vector<1x128xf32>
    %304 = vector.broadcast %303 : vector<1x128xf32> to vector<32x128xf32>
    %305 = arith.mulf %302, %304 : vector<32x128xf32>
    %306 = arith.addf %280, %305 : vector<32x128xf32>
    %307 = vector.extract_strided_slice %252 {offsets = [0, 6], sizes = [32, 1], strides = [1, 1]} : vector<32x8xf32> to vector<32x1xf32>
    %308 = vector.extract_strided_slice %253 {offsets = [2, 0], sizes = [1, 32], strides = [1, 1]} : vector<8x32xf32> to vector<1x32xf32>
    %309 = vector.broadcast %307 : vector<32x1xf32> to vector<32x32xf32>
    %310 = vector.broadcast %308 : vector<1x32xf32> to vector<32x32xf32>
    %311 = arith.addf %309, %310 : vector<32x32xf32>
    %cst_112 = arith.constant 0.000000e+00 : f32
    %312 = vector.broadcast %cst_112 : f32 to vector<32x32xf32>
    %313 = arith.cmpf ogt, %311, %312 : vector<32x32xf32>
    %cst_113 = arith.constant 2.000000e-01 : f32
    %314 = vector.broadcast %cst_113 : f32 to vector<32x32xf32>
    %315 = arith.mulf %314, %311 : vector<32x32xf32>
    %316 = arith.select %313, %311, %315 : vector<32x32xi1>, vector<32x32xf32>
    %317 = arith.addf %316, %7 : vector<32x32xf32>
    %cst_114 = arith.constant dense<0xFF800000> : vector<32xf32>
    %318 = vector.multi_reduction <maximumf>, %317, %cst_114 [1] : vector<32x32xf32> to vector<32xf32>
    %319 = vector.shape_cast %318 : vector<32xf32> to vector<32x1xf32>
    %320 = vector.broadcast %319 : vector<32x1xf32> to vector<32x32xf32>
    %321 = arith.subf %317, %320 : vector<32x32xf32>
    %322 = math.exp %321 : vector<32x32xf32>
    %cst_115 = arith.constant dense<0.000000e+00> : vector<32xf32>
    %323 = vector.multi_reduction <add>, %322, %cst_115 [1] : vector<32x32xf32> to vector<32xf32>
    %324 = vector.shape_cast %323 : vector<32xf32> to vector<32x1xf32>
    %325 = tpu.reciprocal %324 {approx = true} : vector<32x1xf32> -> vector<32x1xf32>
    %326 = vector.broadcast %325 : vector<32x1xf32> to vector<32x32xf32>
    %327 = arith.mulf %322, %326 : vector<32x32xf32>
    %cst_116 = arith.constant dense<0.000000e+00> : vector<32x128xf32>
    %328 = tpu.matmul %327, %250, %cst_116 {dimension_numbers = #tpu.dot_dimension_numbers<[1], [0], [0], [1], [0, 0, 1, 1], [], []>} : vector<32x32xf32>, vector<32x128xf32>, vector<32x128xf32> -> vector<32x128xf32>
    %c2_117 = arith.constant 2 : index
    %c0_118 = arith.constant 0 : index
    %329 = vector.load %arg3[%c2_117, %c0_118] : memref<4x128xf32, #tpu.memory_space<vmem>>, vector<1x128xf32>
    %330 = vector.broadcast %329 : vector<1x128xf32> to vector<32x128xf32>
    %331 = arith.mulf %328, %330 : vector<32x128xf32>
    %332 = arith.addf %306, %331 : vector<32x128xf32>
    %333 = vector.extract_strided_slice %252 {offsets = [0, 7], sizes = [32, 1], strides = [1, 1]} : vector<32x8xf32> to vector<32x1xf32>
    %334 = vector.extract_strided_slice %253 {offsets = [3, 0], sizes = [1, 32], strides = [1, 1]} : vector<8x32xf32> to vector<1x32xf32>
    %335 = vector.broadcast %333 : vector<32x1xf32> to vector<32x32xf32>
    %336 = vector.broadcast %334 : vector<1x32xf32> to vector<32x32xf32>
    %337 = arith.addf %335, %336 : vector<32x32xf32>
    %cst_119 = arith.constant 0.000000e+00 : f32
    %338 = vector.broadcast %cst_119 : f32 to vector<32x32xf32>
    %339 = arith.cmpf ogt, %337, %338 : vector<32x32xf32>
    %cst_120 = arith.constant 2.000000e-01 : f32
    %340 = vector.broadcast %cst_120 : f32 to vector<32x32xf32>
    %341 = arith.mulf %340, %337 : vector<32x32xf32>
    %342 = arith.select %339, %337, %341 : vector<32x32xi1>, vector<32x32xf32>
    %343 = arith.addf %342, %7 : vector<32x32xf32>
    %cst_121 = arith.constant dense<0xFF800000> : vector<32xf32>
    %344 = vector.multi_reduction <maximumf>, %343, %cst_121 [1] : vector<32x32xf32> to vector<32xf32>
    %345 = vector.shape_cast %344 : vector<32xf32> to vector<32x1xf32>
    %346 = vector.broadcast %345 : vector<32x1xf32> to vector<32x32xf32>
    %347 = arith.subf %343, %346 : vector<32x32xf32>
    %348 = math.exp %347 : vector<32x32xf32>
    %cst_122 = arith.constant dense<0.000000e+00> : vector<32xf32>
    %349 = vector.multi_reduction <add>, %348, %cst_122 [1] : vector<32x32xf32> to vector<32xf32>
    %350 = vector.shape_cast %349 : vector<32xf32> to vector<32x1xf32>
    %351 = tpu.reciprocal %350 {approx = true} : vector<32x1xf32> -> vector<32x1xf32>
    %352 = vector.broadcast %351 : vector<32x1xf32> to vector<32x32xf32>
    %353 = arith.mulf %348, %352 : vector<32x32xf32>
    %cst_123 = arith.constant dense<0.000000e+00> : vector<32x128xf32>
    %354 = tpu.matmul %353, %250, %cst_123 {dimension_numbers = #tpu.dot_dimension_numbers<[1], [0], [0], [1], [0, 0, 1, 1], [], []>} : vector<32x32xf32>, vector<32x128xf32>, vector<32x128xf32> -> vector<32x128xf32>
    %c3_124 = arith.constant 3 : index
    %c0_125 = arith.constant 0 : index
    %355 = vector.load %arg3[%c3_124, %c0_125] : memref<4x128xf32, #tpu.memory_space<vmem>>, vector<1x128xf32>
    %356 = vector.broadcast %355 : vector<1x128xf32> to vector<32x128xf32>
    %357 = arith.mulf %354, %356 : vector<32x128xf32>
    %358 = arith.addf %332, %357 : vector<32x128xf32>
    %c0_126 = arith.constant 0 : index
    %c0_127 = arith.constant 0 : index
    %359 = vector.load %arg15[%c0_126, %c0_127] : memref<1x128xf32, #tpu.memory_space<vmem>>, vector<1x128xf32>
    %360 = vector.broadcast %359 : vector<1x128xf32> to vector<32x128xf32>
    %361 = arith.addf %358, %360 : vector<32x128xf32>
    %cst_128 = arith.constant 0.000000e+00 : f32
    %362 = vector.broadcast %cst_128 : f32 to vector<32x128xf32>
    %363 = arith.maximumf %361, %362 : vector<32x128xf32>
    %c0_129 = arith.constant 0 : index
    %c0_130 = arith.constant 0 : index
    %364 = vector.load %arg16[%c0_129, %c0_130] : memref<128x32xf32, #tpu.memory_space<vmem>>, vector<128x32xf32>
    %cst_131 = arith.constant dense<0.000000e+00> : vector<32x32xf32>
    %365 = tpu.matmul %363, %364, %cst_131 {dimension_numbers = #tpu.dot_dimension_numbers<[1], [0], [0], [1], [0, 0, 1, 1], [], []>} : vector<32x128xf32>, vector<128x32xf32>, vector<32x32xf32> -> vector<32x32xf32>
    %c0_132 = arith.constant 0 : index
    %c0_133 = arith.constant 0 : index
    %366 = vector.load %arg17[%c0_132, %c0_133] : memref<1x32xf32, #tpu.memory_space<vmem>>, vector<1x32xf32>
    %367 = vector.broadcast %366 : vector<1x32xf32> to vector<32x32xf32>
    %368 = arith.addf %365, %367 : vector<32x32xf32>
    %cst_134 = arith.constant 0.000000e+00 : f32
    %369 = vector.broadcast %cst_134 : f32 to vector<32x32xf32>
    %370 = arith.maximumf %368, %369 : vector<32x32xf32>
    %c0_135 = arith.constant 0 : index
    %c0_136 = arith.constant 0 : index
    %371 = vector.load %arg18[%c0_135, %c0_136] : memref<32x128xf32, #tpu.memory_space<vmem>>, vector<32x128xf32>
    %cst_137 = arith.constant dense<0.000000e+00> : vector<32x128xf32>
    %372 = tpu.matmul %370, %371, %cst_137 {dimension_numbers = #tpu.dot_dimension_numbers<[1], [0], [0], [1], [0, 0, 1, 1], [], []>} : vector<32x32xf32>, vector<32x128xf32>, vector<32x128xf32> -> vector<32x128xf32>
    %c0_138 = arith.constant 0 : index
    %c0_139 = arith.constant 0 : index
    %373 = vector.load %arg19[%c0_138, %c0_139] : memref<1x128xf32, #tpu.memory_space<vmem>>, vector<1x128xf32>
    %374 = vector.broadcast %373 : vector<1x128xf32> to vector<32x128xf32>
    %375 = arith.addf %372, %374 : vector<32x128xf32>
    %c0_140 = arith.constant 0 : index
    %c0_141 = arith.constant 0 : index
    %c0_142 = arith.constant 0 : index
    %376 = vector.load %arg20[%c0_140, %c0_141, %c0_142] : memref<1x32x128xf32, #tpu.memory_space<vmem>>, vector<1x32x128xf32>
    %377 = vector.shape_cast %376 : vector<1x32x128xf32> to vector<32x128xf32>
    %378 = vector.shape_cast %375 : vector<32x128xf32> to vector<1x32x128xf32>
    tpu.vector_store %arg20[%c0_140, %c0_141, %c0_142], %378 {strides = array<i32>} : memref<1x32x128xf32, #tpu.memory_space<vmem>>, vector<1x32x128xf32>,
    return
  }
  func.func @transform_0(%arg0: i32) -> (i32, i32, i32) {
    %c0_i32 = arith.constant 0 : i32
    %c0_i32_0 = arith.constant 0 : i32
    %c0_i32_1 = arith.constant 0 : i32
    return %arg0, %c0_i32, %c0_i32_0 : i32, i32, i32
  }
  func.func @transform_1(%arg0: i32) -> (i32, i32, i32) {
    %c0_i32 = arith.constant 0 : i32
    %c0_i32_0 = arith.constant 0 : i32
    %c0_i32_1 = arith.constant 0 : i32
    return %arg0, %c0_i32, %c0_i32_0 : i32, i32, i32
  }
  func.func @transform_2(%arg0: i32) -> (i32, i32) {
    %c0_i32 = arith.constant 0 : i32
    %c0_i32_0 = arith.constant 0 : i32
    %c0_i32_1 = arith.constant 0 : i32
    return %c0_i32, %c0_i32_0 : i32, i32
  }
  func.func @transform_3(%arg0: i32) -> (i32, i32) {
    %c0_i32 = arith.constant 0 : i32
    %c0_i32_0 = arith.constant 0 : i32
    %c0_i32_1 = arith.constant 0 : i32
    return %c0_i32, %c0_i32_0 : i32, i32
  }
  func.func @transform_4(%arg0: i32) -> (i32, i32) {
    %c0_i32 = arith.constant 0 : i32
    %c0_i32_0 = arith.constant 0 : i32
    %c0_i32_1 = arith.constant 0 : i32
    return %c0_i32, %c0_i32_0 : i32, i32
  }
  func.func @transform_5(%arg0: i32) -> (i32, i32) {
    %c0_i32 = arith.constant 0 : i32
    %c0_i32_0 = arith.constant 0 : i32
    %c0_i32_1 = arith.constant 0 : i32
    return %c0_i32, %c0_i32_0 : i32, i32
  }
  func.func @transform_6(%arg0: i32) -> (i32, i32) {
    %c0_i32 = arith.constant 0 : i32
    %c0_i32_0 = arith.constant 0 : i32
    %c0_i32_1 = arith.constant 0 : i32
    return %c0_i32, %c0_i32_0 : i32, i32
  }
  func.func @transform_7(%arg0: i32) -> (i32, i32) {
    %c0_i32 = arith.constant 0 : i32
    %c0_i32_0 = arith.constant 0 : i32
    %c0_i32_1 = arith.constant 0 : i32
    return %c0_i32, %c0_i32_0 : i32, i32
  }
  func.func @transform_8(%arg0: i32) -> (i32, i32) {
    %c0_i32 = arith.constant 0 : i32
    %c0_i32_0 = arith.constant 0 : i32
    %c0_i32_1 = arith.constant 0 : i32
    return %c0_i32, %c0_i32_0 : i32, i32
  }
  func.func @transform_9(%arg0: i32) -> (i32, i32) {
    %c0_i32 = arith.constant 0 : i32
    %c0_i32_0 = arith.constant 0 : i32
    %c0_i32_1 = arith.constant 0 : i32
    return %c0_i32, %c0_i32_0 : i32, i32
  }
  func.func @transform_10(%arg0: i32) -> (i32, i32) {
    %c0_i32 = arith.constant 0 : i32
    %c0_i32_0 = arith.constant 0 : i32
    %c0_i32_1 = arith.constant 0 : i32
    return %c0_i32, %c0_i32_0 : i32, i32
  }
  func.func @transform_11(%arg0: i32) -> (i32, i32) {
    %c0_i32 = arith.constant 0 : i32
    %c0_i32_0 = arith.constant 0 : i32
    %c0_i32_1 = arith.constant 0 : i32
    return %c0_i32, %c0_i32_0 : i32, i32
  }
  func.func @transform_12(%arg0: i32) -> (i32, i32) {
    %c0_i32 = arith.constant 0 : i32
    %c0_i32_0 = arith.constant 0 : i32
    %c0_i32_1 = arith.constant 0 : i32
    return %c0_i32, %c0_i32_0 : i32, i32
  }
  func.func @transform_13(%arg0: i32) -> (i32, i32) {
    %c0_i32 = arith.constant 0 : i32
    %c0_i32_0 = arith.constant 0 : i32
    %c0_i32_1 = arith.constant 0 : i32
    return %c0_i32, %c0_i32_0 : i32, i32
  }
  func.func @transform_14(%arg0: i32) -> (i32, i32) {
    %c0_i32 = arith.constant 0 : i32
    %c0_i32_0 = arith.constant 0 : i32
    %c0_i32_1 = arith.constant 0 : i32
    return %c0_i32, %c0_i32_0 : i32, i32
  }
  func.func @transform_15(%arg0: i32) -> (i32, i32) {
    %c0_i32 = arith.constant 0 : i32
    %c0_i32_0 = arith.constant 0 : i32
    %c0_i32_1 = arith.constant 0 : i32
    return %c0_i32, %c0_i32_0 : i32, i32
  }
  func.func @transform_16(%arg0: i32) -> (i32, i32) {
    %c0_i32 = arith.constant 0 : i32
    %c0_i32_0 = arith.constant 0 : i32
    %c0_i32_1 = arith.constant 0 : i32
    return %c0_i32, %c0_i32_0 : i32, i32
  }
  func.func @transform_17(%arg0: i32) -> (i32, i32) {
    %c0_i32 = arith.constant 0 : i32
    %c0_i32_0 = arith.constant 0 : i32
    %c0_i32_1 = arith.constant 0 : i32
    return %c0_i32, %c0_i32_0 : i32, i32
  }
  func.func @transform_18(%arg0: i32) -> (i32, i32) {
    %c0_i32 = arith.constant 0 : i32
    %c0_i32_0 = arith.constant 0 : i32
    %c0_i32_1 = arith.constant 0 : i32
    return %c0_i32, %c0_i32_0 : i32, i32
  }
  func.func @transform_19(%arg0: i32) -> (i32, i32, i32) {
    %c0_i32 = arith.constant 0 : i32
    %c0_i32_0 = arith.constant 0 : i32
    %c0_i32_1 = arith.constant 0 : i32
    return %arg0, %c0_i32, %c0_i32_0 : i32, i32, i32
  }
}

</mosaic_0001>

<bundles_post_ra>
// kernel: tpu_custom_call.1
= control target key start
LH: loop header
LB: loop body
LE: loop exit
PB: predicated region body
PF: predicated region fallthrough
CT: control target
= control target key end

     0   :  { %s7015_s0 = inlined_call_operand.vmem [shape: f32[8,32,16], index: 0, kind: input, shape index: {}]   ;;  %s7016_s1 = inlined_call_operand.vmem [shape: s8[8,32,32], index: 1, kind: input, shape index: {}]   ;;  %s7017_s2 = inlined_call_operand.vmem [shape: f32[4,128], index: 2, kind: input, shape index: {}]   ;;  %s7018_s3 = inlined_call_operand.vmem [shape: f32[128,32], index: 3, kind: input, shape index: {}]   ;;  %s7019_s4 = inlined_call_operand.vmem [shape: f32[16,32], index: 4, kind: input, shape index: {}]   ;;  %s7020_s5 = inlined_call_operand.vmem [shape: f32[1,32], index: 5, kind: input, shape index: {}]   ;;  %s7021_s6 = inlined_call_operand.vmem [shape: f32[32,128], index: 6, kind: input, shape index: {}]   ;;  %s7022_s7 = inlined_call_operand.vmem [shape: f32[128,8], index: 7, kind: input, shape index: {}]   ;;  %s7023_s8 = inlined_call_operand.vmem [shape: f32[1,32], index: 8, kind: input, shape index: {}]   ;;  %s7024_s9 = inlined_call_operand.vmem [shape: f32[32,128], index: 9, kind: input, shape index: {}]   ;;  %s7025_s10 = inlined_call_operand.vmem [shape: f32[128,8], index: 10, kind: input, shape index: {}]   ;;  %s7026_s11 = inlined_call_operand.vmem [shape: f32[1,32], index: 11, kind: input, shape index: {}]   ;;  %s7027_s12 = inlined_call_operand.vmem [shape: f32[32,128], index: 12, kind: input, shape index: {}]   ;;  %s7028_s13 = inlined_call_operand.vmem [shape: f32[128,8], index: 13, kind: input, shape index: {}]   ;;  %s7029_s14 = inlined_call_operand.vmem [shape: f32[1,128], index: 14, kind: input, shape index: {}]   ;;  %s7030_s15 = inlined_call_operand.vmem [shape: f32[128,32], index: 15, kind: input, shape index: {}]   ;;  %s7031_s16 = inlined_call_operand.vmem [shape: f32[1,32], index: 16, kind: input, shape index: {}]   ;;  %s7032_s17 = inlined_call_operand.vmem [shape: f32[32,128], index: 17, kind: input, shape index: {}]   ;;  %s7033_s18 = inlined_call_operand.vmem [shape: f32[1,128], index: 18, kind: input, shape index: {}]   ;;  %s7034_s19 = inlined_call_operand.hbm [shape: f32[8,32,128], index: 19, kind: output, shape index: {}]  }
   0x1   :  { %7041 = sst [smem:[#allocation8_spill]] %s7015_s0 }
   0x2   :  { %7042 = sst [smem:[#allocation9_spill]] %s7016_s1 }
   0x3   :  { %7043 = sst [smem:[#allocation10_spill]] %s7017_s2 }
   0x4   :  { %7044 = sst [smem:[#allocation11_spill]] %s7018_s3 }
   0x5   :  { %7045 = sst [smem:[#allocation12_spill]] %s7019_s4 }
   0x6   :  { %7046 = sst [smem:[#allocation13_spill]] %s7020_s5 }
   0x7   :  { %7047 = sst [smem:[#allocation14_spill]] %s7021_s6 }
   0x8   :  { %24 = vsyncpa [#allocation3], 0 }
   0x9   :  { %26 = vsyncpa [#allocation3 + $0x1], 0  ;;  %s5571_s0 = smov 0   ;;  %s5573_s30 = smov 0  }
   0xa   :  { %s5575_s20 = smov 0   ;;  %s5577_s21 = smov 0  }
   0xb LB: > { %7048 = sst [smem:[#allocation5_spill]] %s5457_s20  ;;  %s5592_s1 = sadd.s32 4294967295, %s5461_s21   ;;  %s5461_s21 = sphi %s5577_s21, %s7060_s21   ;;  %s5457_s20 = sphi %s5575_s20, %s7062_s20   ;;  %s5453_s30 = sphi %s5573_s30, %s7064_s30   ;;  %s5449_s0 = sphi %s5571_s0, %s7063_s0  }
   0xc   : > { %s4284_s22 = sadd.s32 4294967294, %s5461_s21   ;;  %s5596_s2 = sadd.s32 1, %s5461_s21  }
   0xd   : > { %7049 = sst [smem:[#allocation6_spill]] %s5596_s2  ;;  %s448_s23 = sadd.s32 1, %s5457_s20 }
   0xe   : > { %s445_s24 = ssub.s32 %s5461_s21, %s5596_s2  ;;  %p458_p0 = scmp.ne.s32.totalorder %s5457_s20, %s5453_s30 }
   0xf   : > { %p446_p1 = scmp.eq.s32.totalorder %s445_s24, 0  ;;  %p459_p2 = scmp.eq.s32.totalorder %s5592_s1, 7 }
  0x10   : > { %p464_p3 = scmp.ne.s32.totalorder %s5453_s30, %s5449_s0  ;;  %p465_p4 = scmp.eq.s32.totalorder %s4284_s22, 7 }
  0x11   : > { %s5607_s25 = scalar_select %p446_p1, %s5457_s20, %s448_s23  }
  0x12   : > { %p5609_p5 = por %p459_p2, %p458_p0  ;;  %p5613_p6 = por %p465_p4, %p464_p3 }
  0x13   : > { %7050 = sst [smem:[#allocation7_spill]] %s5607_s25  ;;  %p4287_p7 = scmp.ge.s32.totalorder %s5461_s21, 1 }
  0x14   : > { %p549_p8 = scmp.lt.s32.totalorder %s5461_s21, 9 }
  0x16   : > { %p550_p9 = pnand %p4287_p7, %p549_p8 }
  0x17   : > { %s7053_s4 = sld [smem:[#allocation12_spill]] (!%p550_p9)  ;;  %p609_p10 = scmp.lt.s32.totalorder (!%p550_p9), %s5592_s1, 7 }
  0x18   : > { %553 = sbr.rel (%p550_p9) target bundleno = 4523 (0x11ab), region = 96  ;;  %s7054_s6 = sld [smem:[#allocation14_spill]] (!%p550_p9) }
  0x19   : > { %s7055_s29 = sld [smem:[#allocation8_spill]] (!%p550_p9)  ;;  %s4376_s24 = sshll.u32 (!%p550_p9), %s5592_s1, 9 }
  0x1a   : > { %s7056_s5 = sld [smem:[#allocation13_spill]] (!%p550_p9) }
  0x1d   : > { %v640_v0 = vld [vmem:[%s7053_s4 + $0x8] sm:$0xff]  ;;  %v639_v1 = vld [vmem:[%s7053_s4] sm:$0xff]  ;;  %s5630_s25 = scalar_select %p609_p10, %s5592_s1, 7  ;;  %vm648_vm0 = vcmask 130048   ;;  %v863_v10 = vld [vmem:[%s7022_s7 + $0x78] sm:$0xff]  ;;  %vm750_vm1 = vcmask 261120   ;;  %v1001_v59 = vlaneseq }
  0x1e   : > { %4631 = vmatprep.subr.mxu0 %v640_v0  ;;  %v749_v2 = vld [vmem:[%s7054_s6 + $0x18] sm:$0xff]  ;;  %v748_v7 = vld [vmem:[%s7054_s6 + $0x10] sm:$0xff]  ;;  %v747_v8 = vld [vmem:[%s7054_s6 + $0x8] sm:$0xff]  ;;  %v5463_v35 = vmov 5   ;;  %v5464_v36 = vmov 4   ;;  %v5465_v42 = vmov 7  }
  0x1f   : > { %4632 = vmatpush3.msra.mxu0 %v640_v0  ;;  %4641 = vmatprep.subr.mxu1 %v749_v2  ;;  %s4375_s27 = sshll.u32 %s5630_s25, 5  ;;  %v746_v9 = vld [vmem:[%s7054_s6] sm:$0xff]  ;;  %v862_v11 = vld [vmem:[%s7022_s7 + $0x70] sm:$0xff]  ;;  %v861_v12 = vld [vmem:[%s7022_s7 + $0x68] sm:$0xff]  ;;  %v5466_v43 = vmov 6   ;;  %s4291_s20 = sshll.u32 %s5630_s25, 3 }
  0x20   : > { %4633 = vmatprep.subr.mxu0 %v639_v1  ;;  %4642 = vmatpush3.msra.mxu1 %v749_v2  ;;  %s613_s22 = scalar_lea.vmem %s7055_s29, %s4375_s27  ;;  %v860_v13 = vld [vmem:[%s7022_s7 + $0x60] sm:$0xff]  ;;  %v859_v14 = vld [vmem:[%s7022_s7 + $0x58] sm:$0xff]  ;;  %v858_v15 = vld [vmem:[%s7022_s7 + $0x50] sm:$0xff]  ;;  %s7057_s29 = sld [smem:[#allocation9_spill]] }
  0x21   : > { %4634 = vmatpush3.msra.mxu0 %v639_v1  ;;  %v635_v3 = vld [vmem:[%s613_s22] sm:$0xff]  ;;  %v636_v4 = vld [vmem:[%s613_s22 + $0x8] sm:$0xff]  ;;  %v637_v5 = vld [vmem:[%s613_s22 + $0x10] sm:$0xff]  ;;  %4643 = vmatprep.subr.mxu1 %v748_v7  ;;  %v1002_v1 = vshrl.u32 %v1001_v59, 7  ;;  %s7058_s4 = sld [smem:[#allocation11_spill]]  ;;  %s606_s27 = sand.u32 1, %s5453_s30  }
  0x22   : > { %4635 = vmatprep.mubr.msk.f32.mxu0 %vm648_vm0, %v635_v3  ;;  %v638_v6 = vld [vmem:[%s613_s22 + $0x18] sm:$0xff]  ;;  %4644 = vmatpush3.msra.mxu1 %v748_v7  ;;  %v857_v16 = vld [vmem:[%s7022_s7 + $0x48] sm:$0xff]  ;;  %v856_v17 = vld [vmem:[%s7022_s7 + $0x40] sm:$0xff]  ;;  %s7059_s25 = sld [smem:[#allocation10_spill]]  ;;  %s4288_s28 = sshll.u32 %s606_s27, 5 }
  0x23   : > { %4636 = vmatmul.mubr.msk.f32.vlgmr.msra.gmra.mxu0 %vm648_vm0, %v636_v4  ;;  %4645 = vmatprep.subr.mxu1 %v747_v8  ;;  %v855_v18 = vld [vmem:[%s7022_s7 + $0x38] sm:$0xff]  ;;  %v854_v19 = vld [vmem:[%s7022_s7 + $0x30] sm:$0xff]  ;;  %v853_v20 = vld [vmem:[%s7022_s7 + $0x28] sm:$0xff]  ;;  %v5767_v7 = vsub.s32 0, %v1002_v1  ;;  %s608_s23 = scalar_lea.vmem [#allocation2], %s4288_s28  ;;  %s6973_s28 = scalar_lea.hbm %s7034_s19, %s4376_s24 }
  0x24   : > { %4638 = vmatprep.mubr.msk.f32.mxu0 %vm648_vm0, %v637_v5  ;;  %4646 = vmatpush3.msra.mxu1 %v747_v8  ;;  %v852_v21 = vld [vmem:[%s7022_s7 + $0x20] sm:$0xff]  ;;  %v851_v22 = vld [vmem:[%s7022_s7 + $0x18] sm:$0xff]  ;;  %v850_v23 = vld [vmem:[%s7022_s7 + $0x10] sm:$0xff]  ;;  %v5769_v8 = vsub.s32 1, %v1002_v1  ;;  %s4210_s2 = sshll.u32 %s608_s23, 4  ;;  %s5468_s1 = smov [#allocation2]   ;;  %s6968_s2 = int_to_ptr.vmem [resolvable:$true] %s4210_s2 }
  0x25   : > { %4647 = vmatprep.subr.mxu1 %v746_v9  ;;  %4655 = vmatprep.subr.mxu0 %v863_v10  ;;  %v4292_v25 = vld [vmem:[%s7056_s5] ss:$0 sm:$0xff]  ;;  %v849_v33 = vld [vmem:[%s7022_s7 + $0x8] sm:$0xff]  ;;  %s5405_s5 = sshll.u32 %s5468_s1, 4  ;;  %s5406_s5 = int_to_ptr.vmem [resolvable:$false] %s5405_s5 }
  0x26   : > { %4648 = vmatpush3.msra.mxu1 %v746_v9  ;;  %4656 = vmatpush3.msra.mxu0 %v863_v10  ;;  %v848_v34 = vld [vmem:[%s7022_s7] sm:$0xff]  ;;  %s617_s22 = scalar_lea.vmem %s7057_s29, %s4291_s20  ;;  %v5771_v9 = vsub.s32 2, %v1002_v1  ;;  %v5773_v10 = vsub.s32 3, %v1002_v1  ;;  %s5407_s6 = scalar_lea.vmem %s5406_s5, 1024 }
  0x27   : > { %4639 = vmatmul.mubr.msk.f32.gmra.mxu0 %vm648_vm0, %v638_v6  ;;  %4657 = vmatprep.subr.mxu0 %v862_v11  ;;  %v5754_v58 = vld [vmem:[%s617_s22] sm:$0xff]  ;;  %s6975_s22 = scalar_lea.sflag [#allocation3], %s606_s27  ;;  %p5408_p0 = scmp.lt.s32.totalorder %s6968_s2, %s5406_s5 }
  0x28   : > { %4658 = vmatpush3.msra.mxu0 %v862_v11  ;;  %5141 = vset.pattern.permute.xlu1 %v5463_v35  ;;  %v619_v62 = vunpack.c.0.s8 %v5754_v58  ;;  %v620_v63 = vunpack.c.1.s8 %v5754_v58  ;;  %v622_v0 = vunpack.c.3.s8 %v5754_v58 }
  0x29   : > { %4659 = vmatprep.subr.mxu0 %v861_v12  ;;  %5140 = vset.pattern.permute.xlu0 %v5464_v36 }
  0x2a   : > { %4660 = vmatpush3.msra.mxu0 %v861_v12  ;;  %v623_v2 = vcvt.s32.f32 %v619_v62  ;;  %v624_v3 = vcvt.s32.f32 %v620_v63  ;;  %v626_v4 = vcvt.s32.f32 %v622_v0 }
  0x2b   : > { %4661 = vmatprep.subr.mxu0 %v860_v13 }
  0x2c   : > { %4662 = vmatpush3.msra.mxu0 %v860_v13  ;;  %vm627_vm2 = vcmp.gt.f32.partialorder %v623_v2, 0.0  ;;  %vm628_vm3 = vcmp.gt.f32.partialorder %v624_v3, 0.0  ;;  %vm630_vm4 = vcmp.gt.f32.partialorder %v626_v4, 0.0 }
  0x2d   : > { %4663 = vmatprep.subr.mxu0 %v859_v14 }
  0x2e   : > { %4664 = vmatpush3.msra.mxu0 %v859_v14 }
  0x2f   : > { %4665 = vmatprep.subr.mxu0 %v858_v15 }
  0x30   : > { %4666 = vmatpush3.msra.mxu0 %v858_v15 }
  0x31   : > { %4667 = vmatprep.subr.mxu0 %v857_v16 }
  0x32   : > { %4668 = vmatpush3.msra.mxu0 %v857_v16  ;;  %v5467_v16 = vmov -1e+30  }
  0x33   : > { %4669 = vmatprep.subr.mxu0 %v856_v17 }
  0x34   : > { %4670 = vmatpush3.msra.mxu0 %v856_v17  ;;  %v5788_v17 = vsel %vm627_vm2, 0.0, %v5467_v16 }
  0x35   : > { %4671 = vmatprep.subr.mxu0 %v855_v18 }
  0x36   : > { %4672 = vmatpush3.msra.mxu0 %v855_v18 }
  0x37   : > { %4673 = vmatprep.subr.mxu0 %v854_v19 }
  0x38   : > { %4674 = vmatpush3.msra.mxu0 %v854_v19 }
  0x39   : > { %4675 = vmatprep.subr.mxu0 %v853_v20 }
  0x3a   : > { %4676 = vmatpush3.msra.mxu0 %v853_v20 }
  0x3b   : > { %4677 = vmatprep.subr.mxu0 %v852_v21 }
  0x3c   : > { %4678 = vmatpush3.msra.mxu0 %v852_v21 }
  0x3d   : > { %4679 = vmatprep.subr.mxu0 %v851_v22 }
  0x3e   : > { %4680 = vmatpush3.msra.mxu0 %v851_v22 }
  0x3f   : > { %4681 = vmatprep.subr.mxu0 %v850_v23 }
  0x40   : > { %4682 = vmatpush3.msra.mxu0 %v850_v23  ;;  %v5795_v23 = vsel %vm628_vm3, 0.0, %v5467_v16 }
  0x41   : > { %4683 = vmatprep.subr.mxu0 %v849_v33 }
  0x42   : > { %4684 = vmatpush3.msra.mxu0 %v849_v33 }
  0x43   : > { %4685 = vmatprep.subr.mxu0 %v848_v34 }
  0x44   : > { %4686 = vmatpush3.msra.mxu0 %v848_v34 }
  0xe3   : > { %v4637_v24 = vpop.f32.mrf.mxu0 }
  0xe4   : > { %v733_v28 = vadd.f32 %v4637_v24, %v4292_v25  ;;  %v5798_v24 = vsel %vm630_vm4, 0.0, %v5467_v16 }
  0xe5   : > { %v727_v26 = vpop.f32.mrf.mxu0 }
  0xe6   : > { %v728_v27 = vadd.f32 %v4292_v25, %v727_v26 }
  0xe7   : > { %v4640_v29 = vpop.f32.mrf.mxu0 }
  0xe8   : > { %4649 = vmatprep.mubr.msk.f32.mxu1 %vm750_vm1, %v728_v27  ;;  %v743_v30 = vadd.f32 %v4640_v29, %v4292_v25 }
  0xe9   : > { %v737_v31 = vpop.f32.mrf.mxu0  ;;  %4650 = vmatmul.mubr.msk.f32.vlgmr.msra.gmra.mxu1 %vm750_vm1, %v733_v28 }
  0xea   : > { %v738_v32 = vadd.f32 %v4292_v25, %v737_v31 }
  0xec   : > { %4652 = vmatprep.mubr.msk.f32.mxu1 %vm750_vm1, %v738_v32 }
  0xed   : > { %4653 = vmatmul.mubr.msk.f32.gmra.mxu1 %vm750_vm1, %v743_v30 }
 0x1a9   : > { %v5702_v37 = vpop.f32.mrf.mxu1 }
 0x1ab   : > { %v5704_v38 = vpop.f32.mrf.mxu1 }
 0x1ac   : > { %4687 = vmatprep.mubr.f32.mxu0 %v5704_v38 }
 0x1ad   : > { %v5707_v39 = vpop.f32.mrf.mxu1  ;;  %4688 = vmatmul.mubr.f32.vlgmr.msra.gmra.mxu0 %v5702_v37 }
 0x1ae   : > { %4693 = vmatprep.subr.mxu1 %v5707_v39 }
 0x1af   : > { %v5711_v40 = vpop.f32.mrf.mxu1  ;;  %4694 = vmatpush3.msra.mxu1 %v5707_v39 }
 0x1b0   : > { %4695 = vmatprep.subr.mxu1 %v5711_v40  ;;  %4690 = vmatprep.mubr.f32.mxu0 %v5711_v40 }
 0x1b1   : > { %4696 = vmatpush3.msra.mxu1 %v5711_v40  ;;  %4691 = vmatmul.mubr.f32.gmra.mxu0 %v5707_v39 }
 0x1b2   : > { %4697 = vmatprep.subr.mxu1 %v5702_v37 }
 0x1b3   : > { %4698 = vmatpush3.msra.mxu1 %v5702_v37 }
 0x1b4   : > { %4699 = vmatprep.subr.mxu1 %v5704_v38 }
 0x1b5   : > { %4700 = vmatpush3.msra.mxu1 %v5704_v38 }
 0x1b6   : > { %4707 = vmatprep.subr.mxu1 %v5707_v39 }
 0x26d   : > { %v4689_v41 = vpop.f32.mrf.mxu0 }
 0x26e   : > { %1184 = vperm.xlu1 %5141, %v4689_v41   ;;  %988 = vperm.xlu0 %5140, %v4689_v41  }
 0x26f   : > { %v930_v44 = vpop.f32.mrf.mxu0 }
 0x271   : > { %v4692_v45 = vpop.f32.mrf.mxu0 }
 0x272   : > { %5143 = vset.pattern.permute.xlu1 %v5465_v42  ;;  %5142 = vset.pattern.permute.xlu0 %v5466_v43 }
 0x273   : > { %1572 = vperm.xlu1 %5143, %v4689_v41   ;;  %1378 = vperm.xlu0 %5142, %v4689_v41   ;;  %v940_v46 = vpop.f32.mrf.mxu0 }
 0x277   : > { %5146 = vset.pattern.permute.xlu1 %v5466_v43  ;;  %5144 = vset.pattern.permute.xlu0 %v5464_v36 }
 0x278   : > { %1374 = vperm.xlu1 %5146, %v930_v44   ;;  %983 = vperm.xlu0 %5144, %v930_v44  }
 0x27c   : > { %5148 = vset.pattern.permute.xlu1 %v5464_v36  ;;  %5145 = vset.pattern.permute.xlu0 %v5463_v35 }
 0x27d   : > { %1180 = vperm.xlu0 %5145, %v930_v44   ;;  %998 = vperm.xlu1 %5148, %v4692_v45  }
 0x281   : > { %5147 = vset.pattern.permute.xlu0 %v5465_v42  ;;  %5150 = vset.pattern.permute.xlu1 %v5466_v43 }
 0x282   : > { %1568 = vperm.xlu0 %5147, %v930_v44   ;;  %1386 = vperm.xlu1 %5150, %v4692_v45  }
 0x286   : > { %5149 = vset.pattern.permute.xlu0 %v5463_v35  ;;  %5151 = vset.pattern.permute.xlu1 %v5464_v36 }
 0x287   : > { %1192 = vperm.xlu0 %5149, %v4692_v45   ;;  %993 = vperm.xlu1 %5151, %v940_v46  }
 0x28b   : > { %5154 = vset.pattern.permute.xlu0 %v5465_v42  ;;  %5152 = vset.pattern.permute.xlu1 %v5463_v35 }
 0x28c   : > { %1576 = vperm.xlu0 %5154, %v940_v46   ;;  %1188 = vperm.xlu1 %5152, %v940_v46  }
 0x290   : > { %1580 = vperm.xlu0 %5154, %v4692_v45   ;;  %5153 = vset.pattern.permute.xlu1 %v5466_v43 }
 0x291   : > { %1382 = vperm.xlu1 %5153, %v940_v46  }
 0x294   : > { %5157 = vset.pattern.permute.xlu0 %v5466_v43 }
 0x2ba   : > { %949 = vxpose.xlu1.b32.start [1/4] (short) (narrow) %v930_v44, 8 }
 0x2be   : > { %950 = vxpose.xlu1.b32.cont [2/4] (short) (narrow) %v4689_v41, 8 }
 0x2c2   : > { %951 = vxpose.xlu1.b32.cont [3/4] (short) (narrow) %v940_v46, 8 }
 0x2c6   : > { %952 = vxpose.xlu1.b32.end [4/4] (short) (narrow) %v4692_v45, 8 }
 0x2e4   : > { %5155 = vset.pattern.permute.xlu1 %v5464_v36 }
 0x2e9   : > { %v1185_v47 = vpop.permute.xlu1 %1184  ;;  %v989_v48 = vpop.permute.xlu0 %988 }
 0x2ee   : > { %v5738_v49 = vpop.permute.xlu1 %1572  ;;  %v1379_v50 = vpop.permute.xlu0 %1378 }
 0x2f3   : > { %v5740_v51 = vpop.permute.xlu1 %1374  ;;  %v984_v52 = vpop.permute.xlu0 %983 }
 0x2f8   : > { %v5742_v53 = vpop.permute.xlu1 %998  ;;  %v1181_v54 = vpop.permute.xlu0 %1180 }
 0x2fd   : > { %v5744_v55 = vpop.permute.xlu1 %1386  ;;  %v5747_v56 = vpop.permute.xlu0 %1568 }
 0x302   : > { %v5749_v57 = vpop.permute.xlu1 %993  ;;  %v5756_v60 = vpop.permute.xlu0 %1192 }
 0x307   : > { %v5758_v61 = vpop.permute.xlu1 %1188  ;;  %v5763_v5 = vpop.permute.xlu0 %1576 }
 0x30b   : > { %v1581_v18 = vpop.permute.xlu0 %1580 }
 0x30c   : > { %v5765_v6 = vpop.permute.xlu1 %1382 }
 0x336   : > { %v965_v11 = vpop.trf.xlu1 }
 0x337   : > { %v5776_v12 = vrot.slane %v965_v11, %v5767_v7  ;;  %v5779_v13 = vrot.slane %v965_v11, %v5769_v8  ;;  %v5782_v14 = vrot.slane %v965_v11, %v5771_v9  ;;  %v5785_v15 = vrot.slane %v965_v11, %v5773_v10 }
 0x339   : > { %v1199_v19 = vadd.f32 %v5779_v13, %v1181_v54  ;;  %v1006_v20 = vadd.f32 %v5776_v12, %v989_v48  ;;  %v1590_v21 = vadd.f32 %v5785_v15, %v1581_v18  ;;  %v1005_v22 = vadd.f32 %v5776_v12, %v984_v52 }
 0x33a   : > { %v1200_v25 = vadd.f32 %v5779_v13, %v1185_v47  ;;  %v1394_v26 = vadd.f32 %v5782_v14, %v1379_v50  ;;  %v1393_v59 = vadd.f32 %v5782_v14, %v5740_v51  ;;  %v1008_v3 = vadd.f32 %v5776_v12, %v5742_v53 }
 0x33b   : > { %vm1203_vm5 = vcmp.gt.f32.partialorder %v1199_v19, 0.0  ;;  %v1207_v27 = vmul.f32 0.2, %v1199_v19  ;;  %vm1010_vm6 = vcmp.gt.f32.partialorder %v1006_v20, 0.0  ;;  %v1014_v28 = vmul.f32 0.2, %v1006_v20 }
 0x33c   : > { %vm1594_vm7 = vcmp.gt.f32.partialorder %v1590_v21, 0.0  ;;  %v1598_v29 = vmul.f32 0.2, %v1590_v21  ;;  %vm1009_vm8 = vcmp.gt.f32.partialorder %v1005_v22, 0.0  ;;  %v1013_v30 = vmul.f32 0.2, %v1005_v22 }
 0x33d   : > { %v1211_v31 = vsel %vm1203_vm5, %v1199_v19, %v1207_v27  ;;  %v1018_v32 = vsel %vm1010_vm6, %v1006_v20, %v1014_v28  ;;  %vm1204_vm9 = vcmp.gt.f32.partialorder %v1200_v25, 0.0  ;;  %v1208_v33 = vmul.f32 0.2, %v1200_v25 }
 0x33e   : > { %v5803_v34 = vadd.f32 %v1211_v31, %v5788_v17  ;;  %v5806_v41 = vadd.f32 %v1018_v32, %v5795_v23  ;;  %v1602_v44 = vsel %vm1594_vm7, %v1590_v21, %v1598_v29  ;;  %v1017_v45 = vsel %vm1009_vm8, %v1005_v22, %v1013_v30 }
 0x33f   : > { %v5813_v48 = vadd.f32 %v1602_v44, %v5798_v24  ;;  %v5816_v50 = vadd.f32 %v1017_v45, %v5788_v17  ;;  %v1212_v52 = vsel %vm1204_vm9, %v1200_v25, %v1208_v33  ;;  %v1402_v54 = vmul.f32 0.2, %v1394_v26 }
 0x340   : > { %v1219_v46 = vsel %vm750_vm1, %v5803_v34, -inf  ;;  %v1028_v47 = vsel %vm750_vm1, %v5806_v41, -inf  ;;  %vm1398_vm10 = vcmp.gt.f32.partialorder %v1394_v26, 0.0  ;;  %v5825_v0 = vadd.f32 %v1212_v52, %v5795_v23 }
 0x341   : > { %1220 = vmax.xlane.f32.xlu1 %v1219_v46  ;;  %1029 = vmax.xlane.f32.xlu0 %v1028_v47  ;;  %v1616_v62 = vsel %vm750_vm1, %v5813_v48, -inf  ;;  %v1025_v63 = vsel %vm750_vm1, %v5816_v50, -inf  ;;  %v1406_v1 = vsel %vm1398_vm10, %v1394_v26, %v1402_v54  ;;  %v1401_v2 = vmul.f32 0.2, %v1393_v59 }
 0x342   : > { %vm1397_vm11 = vcmp.gt.f32.partialorder %v1393_v59, 0.0  ;;  %v1222_v51 = vsel %vm750_vm1, %v5825_v0, -inf  ;;  %v5832_v4 = vadd.f32 %v1406_v1, %v5795_v23  ;;  %v1016_v18 = vmul.f32 0.2, %v1008_v3 }
 0x343   : > { %v1405_v11 = vsel %vm1397_vm11, %v1393_v59, %v1401_v2  ;;  %v1202_v19 = vadd.f32 %v5779_v13, %v5756_v60  ;;  %v621_v20 = vunpack.c.2.s8 %v5754_v58  ;;  %vm1012_vm12 = vcmp.gt.f32.partialorder %v1008_v3, 0.0 }
 0x344   : > { %v1416_v21 = vsel %vm750_vm1, %v5832_v4, -inf  ;;  %v5840_v53 = vadd.f32 %v1405_v11, %v5788_v17  ;;  %v1020_v22 = vsel %vm1012_vm12, %v1008_v3, %v1016_v18  ;;  %v1007_v26 = vadd.f32 %v5776_v12, %v5749_v57 }
 0x345   : > { %1617 = vmax.xlane.f32.xlu1 %v1616_v62  ;;  %1026 = vmax.xlane.f32.xlu0 %v1025_v63  ;;  %v1210_v25 = vmul.f32 0.2, %v1202_v19  ;;  %v625_v27 = vcvt.s32.f32 %v621_v20  ;;  %vm1206_vm13 = vcmp.gt.f32.partialorder %v1202_v19, 0.0  ;;  %v5847_v58 = vadd.f32 %v1020_v22, %v5798_v24 }
 0x346   : > { %v1413_v60 = vsel %vm750_vm1, %v5840_v53, -inf  ;;  %v1015_v29 = vmul.f32 0.2, %v1007_v26  ;;  %v1396_v30 = vadd.f32 %v5782_v14, %v5744_v55  ;;  %vm1011_vm15 = vcmp.gt.f32.partialorder %v1007_v26, 0.0 }
 0x347   : > { %v1214_v28 = vsel %vm1206_vm13, %v1202_v19, %v1210_v25  ;;  %vm629_vm14 = vcmp.gt.f32.partialorder %v625_v27, 0.0  ;;  %v1034_v31 = vsel %vm750_vm1, %v5847_v58, -inf  ;;  %v1201_v44 = vadd.f32 %v5779_v13, %v5758_v61 }
 0x348   : > { %v5854_v57 = vadd.f32 %v1214_v28, %v5798_v24  ;;  %v5857_v12 = vsel %vm629_vm14, 0.0, %v5467_v16  ;;  %v1019_v32 = vsel %vm1011_vm15, %v1007_v26, %v1015_v29  ;;  %v1404_v33 = vmul.f32 0.2, %v1396_v30 }
 0x349   : > { %1223 = vmax.xlane.f32.xlu0 %v1222_v51  ;;  %vm1400_vm0 = vcmp.gt.f32.partialorder %v1396_v30, 0.0  ;;  %v5864_v45 = vadd.f32 %v1019_v32, %v5857_v12  ;;  %v1209_v47 = vmul.f32 0.2, %v1201_v44  ;;  %v1587_v16 = vadd.f32 %v5785_v15, %v5747_v56 }
 0x34a   : > { %v1228_v55 = vsel %vm750_vm1, %v5854_v57, -inf  ;;  %v1408_v46 = vsel %vm1400_vm0, %v1396_v30, %v1404_v33  ;;  %vm1205_vm2 = vcmp.gt.f32.partialorder %v1201_v44, 0.0  ;;  %v1395_v59 = vadd.f32 %v5782_v14, %v5765_v6 }
 0x34b   : > { %v1031_v52 = vsel %vm750_vm1, %v5864_v45, -inf  ;;  %v5871_v54 = vadd.f32 %v1408_v46, %v5798_v24  ;;  %v1213_v61 = vsel %vm1205_vm2, %v1201_v44, %v1209_v47  ;;  %v1595_v13 = vmul.f32 0.2, %v1587_v16 }
 0x34c   : > { %vm1591_vm3 = vcmp.gt.f32.partialorder %v1587_v16, 0.0  ;;  %v5878_v63 = vadd.f32 %v1213_v61, %v5857_v12  ;;  %v1403_v1 = vmul.f32 0.2, %v1395_v59  ;;  %v1588_v2 = vadd.f32 %v5785_v15, %v5738_v49 }
 0x34d   : > { %1417 = vmax.xlane.f32.xlu0 %v1416_v21  ;;  %v1422_v62 = vsel %vm750_vm1, %v5871_v54, -inf  ;;  %v1599_v56 = vsel %vm1591_vm3, %v1587_v16, %v1595_v13  ;;  %vm1399_vm4 = vcmp.gt.f32.partialorder %v1395_v59, 0.0  ;;  %v1589_v11 = vadd.f32 %v5785_v15, %v5763_v5 }
 0x34e   : > { %v1225_v3 = vsel %vm750_vm1, %v5878_v63, -inf  ;;  %v5885_v51 = vadd.f32 %v1599_v56, %v5788_v17  ;;  %v1407_v6 = vsel %vm1399_vm4, %v1395_v59, %v1403_v1  ;;  %v1596_v14 = vmul.f32 0.2, %v1588_v2 }
 0x34f   : > { %vm1592_vm5 = vcmp.gt.f32.partialorder %v1588_v2, 0.0  ;;  %v5892_v19 = vadd.f32 %v1407_v6, %v5857_v12  ;;  %v1597_v20 = vmul.f32 0.2, %v1589_v11  ;;  %vm1593_vm6 = vcmp.gt.f32.partialorder %v1589_v11, 0.0 }
 0x350   : > { %v1607_v18 = vsel %vm750_vm1, %v5885_v51, -inf  ;;  %v1600_v49 = vsel %vm1592_vm5, %v1588_v2, %v1596_v14 }
 0x351   : > { %1414 = vmax.xlane.f32.xlu0 %v1413_v60  ;;  %v1419_v21 = vsel %vm750_vm1, %v5892_v19, -inf  ;;  %v5897_v22 = vadd.f32 %v1600_v49, %v5795_v23  ;;  %v1601_v25 = vsel %vm1593_vm6, %v1589_v11, %v1597_v20 }
 0x352   : > { %v5902_v15 = vadd.f32 %v1601_v25, %v5857_v12 }
 0x353   : > { %v1610_v5 = vsel %vm750_vm1, %v5897_v22, -inf }
 0x354   : > { %v1613_v26 = vsel %vm750_vm1, %v5902_v15, -inf }
 0x355   : > { %1035 = vmax.xlane.f32.xlu0 %v1034_v31 }
 0x359   : > { %1229 = vmax.xlane.f32.xlu0 %v1228_v55 }
 0x35d   : > { %1032 = vmax.xlane.f32.xlu0 %v1031_v52 }
 0x361   : > { %1423 = vmax.xlane.f32.xlu0 %v1422_v62 }
 0x365   : > { %1226 = vmax.xlane.f32.xlu0 %v1225_v3 }
 0x369   : > { %1608 = vmax.xlane.f32.xlu0 %v1607_v18 }
 0x36d   : > { %1420 = vmax.xlane.f32.xlu0 %v1419_v21 }
 0x371   : > { %1611 = vmax.xlane.f32.xlu0 %v1610_v5 }
 0x375   : > { %1614 = vmax.xlane.f32.xlu0 %v1613_v26 }
 0x3ca   : > { %v1030_v27 = vpop.xlane.xlu0 %1029 }
 0x3cb   : > { %v1038_v60 = vsub.f32 %v5806_v41, %v1030_v27 }
 0x3cd   : > { %v1043_v28 = vmul.f32 1.442695, %v1038_v60 }
 0x3ce   : > { %v1027_v29 = vpop.xlane.xlu0 %1026 }
 0x3cf   : > { %v1037_v30 = vsub.f32 %v5816_v50, %v1027_v29  ;;  %5185 = vpow2.f32 %v1043_v28  ;;  %v1221_v50 = vpop.xlane.xlu1 %1220 }
 0x3d0   : > { %v1231_v56 = vsub.f32 %v5803_v34, %v1221_v50 }
 0x3d1   : > { %v1041_v31 = vmul.f32 1.442695, %v1037_v30 }
 0x3d2   : > { %v1224_v32 = vpop.xlane.xlu0 %1223  ;;  %v1235_v6 = vmul.f32 1.442695, %v1231_v56 }
 0x3d3   : > { %5187 = vpow2.f32 %v1041_v31  ;;  %v1232_v46 = vsub.f32 %v5825_v0, %v1224_v32  ;;  %v1618_v27 = vpop.xlane.xlu1 %1617 }
 0x3d4   : > { %v1622_v31 = vsub.f32 %v5813_v48, %v1618_v27 }
 0x3d5   : > { %v1237_v61 = vmul.f32 1.442695, %v1232_v46 }
 0x3d6   : > { %v1418_v33 = vpop.xlane.xlu0 %1417 }
 0x3d7   : > { %v1426_v1 = vsub.f32 %v5832_v4, %v1418_v33 }
 0x3d9   : > { %v1431_v14 = vmul.f32 1.442695, %v1426_v1 }
 0x3da   : > { %v1415_v44 = vpop.xlane.xlu0 %1414 }
 0x3dc   : > { %v5908_v55 = vpop.eup %5185 }
 0x3dd   : > { %v1052_v47 = vsel %vm750_vm1, %v5908_v55, 0.0 }
 0x3de   : > { %v1036_v16 = vpop.xlane.xlu0 %1035  ;;  %1053 = vadd.xlane.f32.xlu1 %v1052_v47 }
 0x3df   : > { %v1040_v41 = vsub.f32 %v5847_v58, %v1036_v16 }
 0x3e0   : > { %v5914_v52 = vpop.eup %5187 }
 0x3e1   : > { %v1047_v13 = vmul.f32 1.442695, %v1040_v41  ;;  %v1049_v59 = vsel %vm750_vm1, %v5914_v52, 0.0  ;;  %v1629_v41 = vmul.f32 1.442695, %v1622_v31 }
 0x3e2   : > { %v1230_v62 = vpop.xlane.xlu0 %1229  ;;  %1050 = vadd.xlane.f32.xlu0 %v1049_v59 }
 0x3e3   : > { %5189 = vpow2.f32 %v1047_v13  ;;  %v1234_v0 = vsub.f32 %v5854_v57, %v1230_v62  ;;  %v1425_v57 = vsub.f32 %v5840_v53, %v1415_v44 }
 0x3e4   : > { %5191 = vpow2.f32 %v1237_v61 }
 0x3e5   : > { %v1241_v2 = vmul.f32 1.442695, %v1234_v0  ;;  %v1429_v25 = vmul.f32 1.442695, %v1425_v57 }
 0x3e6   : > { %v1033_v58 = vpop.xlane.xlu0 %1032 }
 0x3e7   : > { %v1039_v3 = vsub.f32 %v5864_v45, %v1033_v58  ;;  %5193 = vpow2.f32 %v1241_v2 }
 0x3e9   : > { %v1045_v11 = vmul.f32 1.442695, %v1039_v3 }
 0x3ea   : > { %v1424_v18 = vpop.xlane.xlu0 %1423 }
 0x3eb   : > { %5195 = vpow2.f32 %v1045_v11  ;;  %v1428_v49 = vsub.f32 %v5871_v54, %v1424_v18 }
 0x3ec   : > { %5197 = vpow2.f32 %v1235_v6 }
 0x3ed   : > { %5199 = vpow2.f32 %v1431_v14  ;;  %v1435_v34 = vmul.f32 1.442695, %v1428_v49 }
 0x3ee   : > { %v1227_v20 = vpop.xlane.xlu0 %1226 }
 0x3ef   : > { %v1233_v4 = vsub.f32 %v5878_v63, %v1227_v20  ;;  %5201 = vpow2.f32 %v1435_v34 }
 0x3f0   : > { %v5925_v21 = vpop.eup %5189 }
 0x3f1   : > { %v1239_v45 = vmul.f32 1.442695, %v1233_v4  ;;  %v1058_v5 = vsel %vm750_vm1, %v5925_v21, 0.0  ;;  %v5929_v26 = vpop.eup %5191 }
 0x3f2   : > { %1059 = vadd.xlane.f32.xlu1 %v1058_v5  ;;  %v1609_v54 = vpop.xlane.xlu0 %1608  ;;  %v1246_v63 = vsel %vm750_vm1, %v5929_v26, 0.0 }
 0x3f3   : > { %5203 = vpow2.f32 %v1239_v45  ;;  %v1619_v53 = vsub.f32 %v5885_v51, %v1609_v54 }
 0x3f4   : > { %5205 = vpow2.f32 %v1429_v25  ;;  %v5934_v60 = vpop.eup %5193 }
 0x3f5   : > { %v1623_v33 = vmul.f32 1.442695, %v1619_v53  ;;  %v1252_v51 = vsel %vm750_vm1, %v5934_v60, 0.0 }
 0x3f6   : > { %1247 = vadd.xlane.f32.xlu1 %v1246_v63  ;;  %v1421_v28 = vpop.xlane.xlu0 %1420 }
 0x3f7   : > { %v1427_v29 = vsub.f32 %v5892_v19, %v1421_v28 }
 0x3f8   : > { %v5937_v30 = vpop.eup %5195 }
 0x3f9   : > { %v5940_v32 = vpop.eup %5197  ;;  %v1433_v44 = vmul.f32 1.442695, %v1427_v29  ;;  %v1055_v46 = vsel %vm750_vm1, %v5937_v30, 0.0 }
 0x3fa   : > { %v5946_v47 = vpop.eup %5199  ;;  %1253 = vadd.xlane.f32.xlu1 %v1252_v51  ;;  %1056 = vadd.xlane.f32.xlu0 %v1055_v46  ;;  %v1612_v16 = vpop.xlane.xlu0 %1611  ;;  %v1243_v61 = vsel %vm750_vm1, %v5940_v32, 0.0 }
 0x3fb   : > { %5207 = vpow2.f32 %v1433_v44  ;;  %v1620_v19 = vsub.f32 %v5897_v22, %v1612_v16  ;;  %v1440_v50 = vsel %vm750_vm1, %v5946_v47, 0.0 }
 0x3fc   : > { %5209 = vpow2.f32 %v1623_v33  ;;  %v5953_v13 = vpop.eup %5201 }
 0x3fd   : > { %v1625_v48 = vmul.f32 1.442695, %v1620_v19  ;;  %v1446_v56 = vsel %vm750_vm1, %v5953_v13, 0.0 }
 0x3fe   : > { %1441 = vadd.xlane.f32.xlu1 %v1440_v50  ;;  %1244 = vadd.xlane.f32.xlu0 %v1243_v61  ;;  %v1615_v59 = vpop.xlane.xlu0 %1614 }
 0x3ff   : > { %5211 = vpow2.f32 %v1625_v48  ;;  %v1621_v62 = vsub.f32 %v5902_v15, %v1615_v59 }
 0x400   : > { %v5956_v0 = vpop.eup %5203  ;;  %5213 = vpow2.f32 %v1629_v41 }
 0x401   : > { %v1627_v22 = vmul.f32 1.442695, %v1621_v62  ;;  %v1249_v1 = vsel %vm750_vm1, %v5956_v0, 0.0  ;;  %v5962_v2 = vpop.eup %5205 }
 0x402   : > { %1447 = vadd.xlane.f32.xlu1 %v1446_v56  ;;  %1250 = vadd.xlane.f32.xlu0 %v1249_v1  ;;  %v1437_v58 = vsel %vm750_vm1, %v5962_v2, 0.0 }
 0x403   : > { %5215 = vpow2.f32 %v1627_v22 }
 0x406   : > { %1438 = vadd.xlane.f32.xlu0 %v1437_v58 }
 0x408   : > { %v5966_v15 = vpop.eup %5207 }
 0x409   : > { %v1443_v3 = vsel %vm750_vm1, %v5966_v15, 0.0  ;;  %v5970_v6 = vpop.eup %5209 }
 0x40a   : > { %1444 = vadd.xlane.f32.xlu0 %v1443_v3  ;;  %v1631_v11 = vsel %vm750_vm1, %v5970_v6, 0.0 }
 0x40c   : > { %v5972_v14 = vpop.eup %5211 }
 0x40d   : > { %v1634_v18 = vsel %vm750_vm1, %v5972_v14, 0.0  ;;  %v5978_v49 = vpop.eup %5213 }
 0x40e   : > { %1632 = vadd.xlane.f32.xlu0 %v1631_v11  ;;  %1635 = vadd.xlane.f32.xlu1 %v1634_v18  ;;  %v1640_v34 = vsel %vm750_vm1, %v5978_v49, 0.0 }
 0x410   : > { %v5980_v57 = vpop.eup %5215 }
 0x411   : > { %v1637_v20 = vsel %vm750_vm1, %v5980_v57, 0.0 }
 0x412   : > { %1641 = vadd.xlane.f32.xlu1 %v1640_v34  ;;  %1638 = vadd.xlane.f32.xlu0 %v1637_v20 }
 0x467   : > { %v1054_v4 = vpop.xlane.xlu1 %1053 }
 0x468   : > { %5217 = vrcp.f32 %v1054_v4 }
 0x46b   : > { %v1051_v25 = vpop.xlane.xlu0 %1050 }
 0x46c   : > { %5219 = vrcp.f32 %v1051_v25  ;;  %v1771_v25 = vld [vmem:[%s7058_s4 + $0x50] sm:$0xff] }
 0x475   : > { %v5218_v45 = vpop.eup %5217 }
 0x476   : > { %v1066_v53 = vmul.f32 %v5218_v45, %v5908_v55  ;;  %v1770_v45 = vld [vmem:[%s7058_s4 + $0x48] sm:$0xff] }
 0x479   : > { %v5220_v5 = vpop.eup %5219 }
 0x47a   : > { %v1065_v27 = vmul.f32 %v5220_v5, %v5914_v52  ;;  %v1769_v5 = vld [vmem:[%s7058_s4 + $0x40] sm:$0xff] }
 0x47b   : > { %v1060_v54 = vpop.xlane.xlu1 %1059 }
 0x47c   : > { %4701 = vmatprep.mubr.msk.f32.mxu1 %vm750_vm1, %v1065_v27  ;;  %5221 = vrcp.f32 %v1060_v54  ;;  %v1768_v54 = vld [vmem:[%s7058_s4 + $0x38] sm:$0xff]  ;;  %v1767_v27 = vld [vmem:[%s7058_s4 + $0x30] sm:$0xff] }
 0x47d   : > { %4702 = vmatmul.mubr.msk.f32.vlgmr.msra.gmra.mxu1 %vm750_vm1, %v1066_v53  ;;  %v1766_v53 = vld [vmem:[%s7058_s4 + $0x28] sm:$0xff] }
 0x47e   : > { %4708 = vmatpush3.msra.mxu1 %v5707_v39 }
 0x47f   : > { %v1248_v63 = vpop.xlane.xlu1 %1247  ;;  %4709 = vmatprep.subr.mxu1 %v5711_v40 }
 0x480   : > { %4710 = vmatpush3.msra.mxu1 %v5711_v40 }
 0x481   : > { %4711 = vmatprep.subr.mxu1 %v5702_v37 }
 0x482   : > { %4712 = vmatpush3.msra.mxu1 %v5702_v37 }
 0x483   : > { %v1057_v28 = vpop.xlane.xlu0 %1056  ;;  %4713 = vmatprep.subr.mxu1 %v5704_v38  ;;  %v1254_v55 = vpop.xlane.xlu1 %1253 }
 0x484   : > { %4714 = vmatpush3.msra.mxu1 %v5704_v38  ;;  %5223 = vrcp.f32 %v1057_v28  ;;  %v1764_v28 = vld [vmem:[%s7058_s4 + $0x18] sm:$0xff] }
 0x485   : > { %4721 = vmatprep.subr.mxu1 %v5707_v39  ;;  %5225 = vrcp.f32 %v1248_v63  ;;  %v1765_v63 = vld [vmem:[%s7058_s4 + $0x20] sm:$0xff] }
 0x487   : > { %v1245_v52 = vpop.xlane.xlu0 %1244  ;;  %v1442_v29 = vpop.xlane.xlu1 %1441 }
 0x488   : > { %5227 = vrcp.f32 %v1245_v52  ;;  %v1762_v52 = vld [vmem:[%s7058_s4 + $0x8] sm:$0xff] }
 0x489   : > { %5229 = vrcp.f32 %v1254_v55  ;;  %v5222_v51 = vpop.eup %5221  ;;  %v1763_v55 = vld [vmem:[%s7058_s4 + $0x10] sm:$0xff] }
 0x48a   : > { %v1068_v41 = vmul.f32 %v5222_v51, %v5925_v21 }
 0x48b   : > { %v1251_v31 = vpop.xlane.xlu0 %1250  ;;  %v1448_v44 = vpop.xlane.xlu1 %1447 }
 0x48c   : > { %5231 = vrcp.f32 %v1251_v31  ;;  %v1876_v31 = vld [vmem:[%s7024_s9 + $0x18] sm:$0xff] }
 0x48d   : > { %5233 = vrcp.f32 %v1442_v29  ;;  %v1761_v29 = vld [vmem:[%s7058_s4] sm:$0xff] }
 0x48f   : > { %v1439_v33 = vpop.xlane.xlu0 %1438 }
 0x490   : > { %5235 = vrcp.f32 %v1439_v33 }
 0x491   : > { %v5224_v46 = vpop.eup %5223  ;;  %5237 = vrcp.f32 %v1448_v44 }
 0x492   : > { %v1067_v19 = vmul.f32 %v5224_v46, %v5937_v30  ;;  %v5226_v48 = vpop.eup %5225 }
 0x493   : > { %v1445_v16 = vpop.xlane.xlu0 %1444  ;;  %v1260_v22 = vmul.f32 %v5226_v48, %v5929_v26 }
 0x494   : > { %5239 = vrcp.f32 %v1445_v16  ;;  %4704 = vmatprep.mubr.msk.f32.mxu1 %vm750_vm1, %v1067_v19 }
 0x495   : > { %v5228_v50 = vpop.eup %5227  ;;  %4705 = vmatmul.mubr.msk.f32.gmra.mxu1 %vm750_vm1, %v1068_v41 }
 0x496   : > { %v1259_v62 = vmul.f32 %v5228_v50, %v5940_v32  ;;  %v5230_v56 = vpop.eup %5229 }
 0x497   : > { %v1636_v61 = vpop.xlane.xlu1 %1635  ;;  %v1633_v59 = vpop.xlane.xlu0 %1632  ;;  %v1262_v26 = vmul.f32 %v5230_v56, %v5934_v60 }
 0x498   : > { %5241 = vrcp.f32 %v1636_v61  ;;  %4715 = vmatprep.mubr.msk.f32.mxu1 %vm750_vm1, %v1259_v62 }
 0x499   : > { %5243 = vrcp.f32 %v1633_v59  ;;  %v5232_v30 = vpop.eup %5231  ;;  %4716 = vmatmul.mubr.msk.f32.vlgmr.msra.gmra.mxu1 %vm750_vm1, %v1260_v22  ;;  %v4310_v59 = vld [vmem:[%s7059_s25 + $0x1] ss:$0 sm:$0xff]  ;;  %v4305_v22 = vld [vmem:[%s7059_s25] ss:$0 sm:$0xff] }
 0x49a   : > { %4722 = vmatpush3.msra.mxu1 %v5707_v39  ;;  %v1261_v58 = vmul.f32 %v5232_v30, %v5956_v0  ;;  %v5234_v3 = vpop.eup %5233  ;;  %v4315_v30 = vld [vmem:[%s7059_s25 + $0x2] ss:$0 sm:$0xff] }
 0x49b   : > { %v1642_v21 = vpop.xlane.xlu1 %1641  ;;  %v1639_v1 = vpop.xlane.xlu0 %1638  ;;  %4723 = vmatprep.subr.mxu1 %v5711_v40  ;;  %v1454_v18 = vmul.f32 %v5234_v3, %v5946_v47 }
 0x49c   : > { %5245 = vrcp.f32 %v1642_v21  ;;  %4724 = vmatpush3.msra.mxu1 %v5711_v40  ;;  %4718 = vmatprep.mubr.msk.f32.mxu1 %vm750_vm1, %v1261_v58 }
 0x49d   : > { %v5236_v32 = vpop.eup %5235  ;;  %5247 = vrcp.f32 %v1639_v1  ;;  %4725 = vmatprep.subr.mxu1 %v5702_v37  ;;  %4719 = vmatmul.mubr.msk.f32.gmra.mxu1 %vm750_vm1, %v1262_v26  ;;  %v4320_v26 = vld [vmem:[%s7059_s25 + $0x3] ss:$0 sm:$0xff] }
 0x49e   : > { %v1453_v11 = vmul.f32 %v5236_v32, %v5962_v2  ;;  %4726 = vmatpush3.msra.mxu1 %v5702_v37  ;;  %v5238_v0 = vpop.eup %5237 }
 0x49f   : > { %4727 = vmatprep.subr.mxu1 %v5704_v38  ;;  %v1456_v47 = vmul.f32 %v5238_v0, %v5953_v13 }
 0x4a0   : > { %4729 = vmatprep.mubr.msk.f32.mxu1 %vm750_vm1, %v1453_v11  ;;  %4728 = vmatpush3.msra.mxu1 %v5704_v38 }
 0x4a1   : > { %v5240_v60 = vpop.eup %5239  ;;  %4735 = vmatprep.subr.mxu1 %v5707_v39  ;;  %4730 = vmatmul.mubr.msk.f32.vlgmr.msra.gmra.mxu1 %vm750_vm1, %v1454_v18 }
 0x4a2   : > { %v1455_v34 = vmul.f32 %v5240_v60, %v5966_v15  ;;  %4736 = vmatpush3.msra.mxu1 %v5707_v39 }
 0x4a3   : > { %4737 = vmatprep.subr.mxu1 %v5711_v40 }
 0x4a4   : > { %4732 = vmatprep.mubr.msk.f32.mxu1 %vm750_vm1, %v1455_v34  ;;  %4738 = vmatpush3.msra.mxu1 %v5711_v40 }
 0x4a5   : > { %v5242_v2 = vpop.eup %5241  ;;  %4739 = vmatprep.subr.mxu1 %v5702_v37  ;;  %4733 = vmatmul.mubr.msk.f32.gmra.mxu1 %vm750_vm1, %v1456_v47 }
 0x4a6   : > { %v5244_v20 = vpop.eup %5243  ;;  %v1648_v4 = vmul.f32 %v5242_v2, %v5972_v14  ;;  %4740 = vmatpush3.msra.mxu1 %v5702_v37  ;;  %v1776_v37 = vld [vmem:[%s7058_s4 + $0x78] sm:$0xff] }
 0x4a7   : > { %v1647_v39 = vmul.f32 %v5244_v20, %v5970_v6  ;;  %4741 = vmatprep.subr.mxu1 %v5704_v38  ;;  %4749 = vmatprep.subr.mxu0 %v1776_v37  ;;  %v1774_v6 = vld [vmem:[%s7058_s4 + $0x68] sm:$0xff] }
 0x4a8   : > { %4742 = vmatpush3.msra.mxu1 %v5704_v38  ;;  %v1775_v38 = vld [vmem:[%s7058_s4 + $0x70] sm:$0xff]  ;;  %4750 = vmatpush3.msra.mxu0 %v1776_v37 }
 0x4a9   : > { %v5246_v15 = vpop.eup %5245  ;;  %4743 = vmatprep.mubr.msk.f32.mxu1 %vm750_vm1, %v1647_v39  ;;  %4751 = vmatprep.subr.mxu0 %v1775_v38 }
 0x4aa   : > { %v5248_v13 = vpop.eup %5247  ;;  %4744 = vmatmul.mubr.msk.f32.vlgmr.msra.gmra.mxu1 %vm750_vm1, %v1648_v4  ;;  %v1650_v40 = vmul.f32 %v5246_v15, %v5978_v49  ;;  %4752 = vmatpush3.msra.mxu0 %v1775_v38  ;;  %v1773_v49 = vld [vmem:[%s7058_s4 + $0x60] sm:$0xff] }
 0x4ab   : > { %v1649_v14 = vmul.f32 %v5248_v13, %v5980_v57  ;;  %4753 = vmatprep.subr.mxu0 %v1774_v6  ;;  %v1772_v57 = vld [vmem:[%s7058_s4 + $0x58] sm:$0xff]  ;;  %4787 = vmatprep.subr.mxu1 %v1876_v31 }
 0x4ac   : > { %4754 = vmatpush3.msra.mxu0 %v1774_v6  ;;  %4788 = vmatpush3.msra.mxu1 %v1876_v31  ;;  %v1989_v31 = vld [vmem:[%s7025_s10 + $0x78] sm:$0xff] }
 0x4ad   : > { %4746 = vmatprep.mubr.msk.f32.mxu1 %vm750_vm1, %v1649_v14  ;;  %4755 = vmatprep.subr.mxu0 %v1773_v49 }
 0x4ae   : > { %4747 = vmatmul.mubr.msk.f32.gmra.mxu1 %vm750_vm1, %v1650_v40  ;;  %4756 = vmatpush3.msra.mxu0 %v1773_v49 }
 0x4af   : > { %4757 = vmatprep.subr.mxu0 %v1772_v57 }
 0x4b0   : > { %4758 = vmatpush3.msra.mxu0 %v1772_v57 }
 0x4b1   : > { %4759 = vmatprep.subr.mxu0 %v1771_v25 }
 0x4b2   : > { %4760 = vmatpush3.msra.mxu0 %v1771_v25 }
 0x4b3   : > { %4761 = vmatprep.subr.mxu0 %v1770_v45 }
 0x4b4   : > { %4762 = vmatpush3.msra.mxu0 %v1770_v45 }
 0x4b5   : > { %4763 = vmatprep.subr.mxu0 %v1769_v5 }
 0x4b6   : > { %4764 = vmatpush3.msra.mxu0 %v1769_v5 }
 0x4b7   : > { %4765 = vmatprep.subr.mxu0 %v1768_v54 }
 0x4b8   : > { %4766 = vmatpush3.msra.mxu0 %v1768_v54 }
 0x4b9   : > { %4767 = vmatprep.subr.mxu0 %v1767_v27 }
 0x4ba   : > { %4768 = vmatpush3.msra.mxu0 %v1767_v27 }
 0x4bb   : > { %4769 = vmatprep.subr.mxu0 %v1766_v53 }
 0x4bc   : > { %4770 = vmatpush3.msra.mxu0 %v1766_v53 }
 0x4bd   : > { %4771 = vmatprep.subr.mxu0 %v1765_v63 }
 0x4be   : > { %4772 = vmatpush3.msra.mxu0 %v1765_v63 }
 0x4bf   : > { %4773 = vmatprep.subr.mxu0 %v1764_v28 }
 0x4c0   : > { %4774 = vmatpush3.msra.mxu0 %v1764_v28 }
 0x4c1   : > { %4775 = vmatprep.subr.mxu0 %v1763_v55 }
 0x4c2   : > { %4776 = vmatpush3.msra.mxu0 %v1763_v55  ;;  %v1875_v55 = vld [vmem:[%s7024_s9 + $0x10] sm:$0xff] }
 0x4c3   : > { %4777 = vmatprep.subr.mxu0 %v1762_v52  ;;  %4789 = vmatprep.subr.mxu1 %v1875_v55 }
 0x4c4   : > { %4778 = vmatpush3.msra.mxu0 %v1762_v52  ;;  %4790 = vmatpush3.msra.mxu1 %v1875_v55  ;;  %v1874_v52 = vld [vmem:[%s7024_s9 + $0x8] sm:$0xff] }
 0x4c5   : > { %4779 = vmatprep.subr.mxu0 %v1761_v29  ;;  %4791 = vmatprep.subr.mxu1 %v1874_v52 }
 0x4c6   : > { %4780 = vmatpush3.msra.mxu0 %v1761_v29  ;;  %4792 = vmatpush3.msra.mxu1 %v1874_v52  ;;  %v1873_v29 = vld [vmem:[%s7024_s9] sm:$0xff] }
 0x4c7   : > { %4793 = vmatprep.subr.mxu1 %v1873_v29 }
 0x4c8   : > { %4794 = vmatpush3.msra.mxu1 %v1873_v29 }
 0x4c9   : > { %4801 = vmatprep.subr.mxu1 %v1989_v31 }
 0x53d   : > { %v4703_v33 = vpop.f32.mrf.mxu1 }
 0x53e   : > { %v1172_v32 = vmul.f32 %v4703_v33, %v4305_v22  ;;  %v4321_v33 = vld [vmem:[%s7023_s8] ss:$0 sm:$0xff] }
 0x53f   : > { %v1147_v44 = vpop.f32.mrf.mxu1 }
 0x540   : > { %v1171_v58 = vmul.f32 %v4305_v22, %v1147_v44 }
 0x555   : > { %v4706_v51 = vpop.f32.mrf.mxu1 }
 0x556   : > { %v1174_v40 = vmul.f32 %v4706_v51, %v4305_v22 }
 0x557   : > { %v1157_v46 = vpop.f32.mrf.mxu1 }
 0x558   : > { %v1173_v4 = vmul.f32 %v4305_v22, %v1157_v46 }
 0x559   : > { %v4717_v16 = vpop.f32.mrf.mxu1 }
 0x55a   : > { %v1366_v21 = vmul.f32 %v4717_v16, %v4310_v59 }
 0x55b   : > { %v1341_v19 = vpop.f32.mrf.mxu1 }
 0x55c   : > { %v1365_v56 = vmul.f32 %v4310_v59, %v1341_v19  ;;  %v1370_v34 = vadd.f32 %v1366_v21, %v1172_v32  ;;  %v1986_v21 = vld [vmem:[%s7025_s10 + $0x60] sm:$0xff]  ;;  %v1981_v32 = vld [vmem:[%s7025_s10 + $0x38] sm:$0xff] }
 0x55d   : > { %v4720_v41 = vpop.f32.mrf.mxu1 }
 0x55e   : > { %v1369_v18 = vadd.f32 %v1365_v56, %v1171_v58  ;;  %v1368_v47 = vmul.f32 %v4720_v41, %v4310_v59  ;;  %v1987_v56 = vld [vmem:[%s7025_s10 + $0x68] sm:$0xff]  ;;  %v1984_v58 = vld [vmem:[%s7025_s10 + $0x50] sm:$0xff] }
 0x55f   : > { %v1351_v48 = vpop.f32.mrf.mxu1 }
 0x560   : > { %v1367_v60 = vmul.f32 %v4310_v59, %v1351_v48  ;;  %v1372_v57 = vadd.f32 %v1368_v47, %v1174_v40  ;;  %v1975_v47 = vld [vmem:[%s7025_s10 + $0x8] sm:$0xff] }
 0x561   : > { %v4731_v50 = vpop.f32.mrf.mxu1 }
 0x562   : > { %v1560_v11 = vmul.f32 %v4731_v50, %v4315_v30  ;;  %v1371_v6 = vadd.f32 %v1367_v60, %v1173_v4  ;;  %v1977_v60 = vld [vmem:[%s7025_s10 + $0x18] sm:$0xff] }
 0x563   : > { %v1535_v61 = vpop.f32.mrf.mxu1 }
 0x564   : > { %v1559_v3 = vmul.f32 %v4315_v30, %v1535_v61  ;;  %v1564_v14 = vadd.f32 %v1560_v11, %v1370_v34  ;;  %v1980_v11 = vld [vmem:[%s7025_s10 + $0x30] sm:$0xff] }
 0x565   : > { %v4734_v62 = vpop.f32.mrf.mxu1  ;;  %v1976_v34 = vld [vmem:[%s7025_s10 + $0x10] sm:$0xff] }
 0x566   : > { %v1563_v39 = vadd.f32 %v1559_v3, %v1369_v18  ;;  %v1562_v37 = vmul.f32 %v4734_v62, %v4315_v30  ;;  %v1988_v62 = vld [vmem:[%s7025_s10 + $0x70] sm:$0xff]  ;;  %v1983_v3 = vld [vmem:[%s7025_s10 + $0x48] sm:$0xff]  ;;  %v1978_v18 = vld [vmem:[%s7025_s10 + $0x20] sm:$0xff] }
 0x567   : > { %v1545_v1 = vpop.f32.mrf.mxu1 }
 0x568   : > { %v1561_v15 = vmul.f32 %v4315_v30, %v1545_v1  ;;  %v1566_v53 = vadd.f32 %v1562_v37, %v1372_v57  ;;  %v1985_v1 = vld [vmem:[%s7025_s10 + $0x58] sm:$0xff] }
 0x56a   : > { %v4745_v0 = vpop.f32.mrf.mxu1  ;;  %v1565_v54 = vadd.f32 %v1561_v15, %v1371_v6 }
 0x56b   : > { %v1754_v2 = vmul.f32 %v4745_v0, %v4320_v26  ;;  %v1979_v0 = vld [vmem:[%s7025_s10 + $0x28] sm:$0xff] }
 0x56c   : > { %v1729_v20 = vpop.f32.mrf.mxu1 }
 0x56d   : > { %v1753_v13 = vmul.f32 %v4320_v26, %v1729_v20  ;;  %v1758_v25 = vadd.f32 %v1754_v2, %v1564_v14  ;;  %v1974_v2 = vld [vmem:[%s7025_s10] sm:$0xff] }
 0x56e   : > { %v4748_v38 = vpop.f32.mrf.mxu1 }
 0x56f   : > { %v1757_v49 = vadd.f32 %v1753_v13, %v1563_v39  ;;  %v1756_v45 = vmul.f32 %v4748_v38, %v4320_v26 }
 0x570   : > { %v1739_v5 = vpop.f32.mrf.mxu1 }
 0x571   : > { %v1755_v27 = vmul.f32 %v4320_v26, %v1739_v5  ;;  %4781 = vmatprep.mubr.f32.mxu0 %v1757_v49  ;;  %v1760_v28 = vadd.f32 %v1756_v45, %v1566_v53  ;;  %v1982_v26 = vld [vmem:[%s7025_s10 + $0x40] sm:$0xff] }
 0x572   : > { %4782 = vmatmul.mubr.f32.vlgmr.msra.gmra.mxu0 %v1758_v25 }
 0x573   : > { %v1759_v63 = vadd.f32 %v1755_v27, %v1565_v54 }
 0x575   : > { %4784 = vmatprep.mubr.f32.mxu0 %v1759_v63 }
 0x576   : > { %4785 = vmatmul.mubr.f32.gmra.mxu0 %v1760_v28 }
 0x632   : > { %v4783_v44 = vpop.f32.mrf.mxu0 }
 0x633   : > { %v1856_v51 = vadd.f32 %v4783_v44, %v4321_v33 }
 0x634   : > { %v1850_v46 = vpop.f32.mrf.mxu0 }
 0x635   : > { %v1851_v16 = vadd.f32 %v4321_v33, %v1850_v46  ;;  %v1870_v48 = vmax.f32 %v1856_v51, 0.0 }
 0x636   : > { %v4786_v19 = vpop.f32.mrf.mxu0 }
 0x637   : > { %v1869_v41 = vmax.f32 %v1851_v16, 0.0  ;;  %v1866_v50 = vadd.f32 %v4786_v19, %v4321_v33 }
 0x638   : > { %v1860_v61 = vpop.f32.mrf.mxu0 }
 0x639   : > { %v1861_v59 = vadd.f32 %v4321_v33, %v1860_v61  ;;  %4795 = vmatprep.mubr.msk.f32.mxu1 %vm750_vm1, %v1869_v41  ;;  %v1872_v30 = vmax.f32 %v1866_v50, 0.0 }
 0x63a   : > { %4796 = vmatmul.mubr.msk.f32.vlgmr.msra.gmra.mxu1 %vm750_vm1, %v1870_v48 }
 0x63b   : > { %v1871_v22 = vmax.f32 %v1861_v59, 0.0  ;;  %4802 = vmatpush3.msra.mxu1 %v1989_v31 }
 0x63c   : > { %4803 = vmatprep.subr.mxu1 %v1988_v62 }
 0x63d   : > { %4798 = vmatprep.mubr.msk.f32.mxu1 %vm750_vm1, %v1871_v22  ;;  %4804 = vmatpush3.msra.mxu1 %v1988_v62 }
 0x63e   : > { %4799 = vmatmul.mubr.msk.f32.gmra.mxu1 %vm750_vm1, %v1872_v30  ;;  %4805 = vmatprep.subr.mxu1 %v1987_v56 }
 0x63f   : > { %4806 = vmatpush3.msra.mxu1 %v1987_v56 }
 0x640   : > { %4807 = vmatprep.subr.mxu1 %v1986_v21 }
 0x641   : > { %4808 = vmatpush3.msra.mxu1 %v1986_v21 }
 0x642   : > { %4809 = vmatprep.subr.mxu1 %v1985_v1 }
 0x643   : > { %4810 = vmatpush3.msra.mxu1 %v1985_v1 }
 0x644   : > { %4811 = vmatprep.subr.mxu1 %v1984_v58 }
 0x645   : > { %4812 = vmatpush3.msra.mxu1 %v1984_v58 }
 0x646   : > { %4813 = vmatprep.subr.mxu1 %v1983_v3 }
 0x647   : > { %4814 = vmatpush3.msra.mxu1 %v1983_v3 }
 0x648   : > { %4815 = vmatprep.subr.mxu1 %v1982_v26 }
 0x649   : > { %4816 = vmatpush3.msra.mxu1 %v1982_v26 }
 0x64a   : > { %4817 = vmatprep.subr.mxu1 %v1981_v32 }
 0x64b   : > { %4818 = vmatpush3.msra.mxu1 %v1981_v32 }
 0x64c   : > { %4819 = vmatprep.subr.mxu1 %v1980_v11 }
 0x64d   : > { %4820 = vmatpush3.msra.mxu1 %v1980_v11 }
 0x64e   : > { %4821 = vmatprep.subr.mxu1 %v1979_v0 }
 0x64f   : > { %4822 = vmatpush3.msra.mxu1 %v1979_v0 }
 0x650   : > { %4823 = vmatprep.subr.mxu1 %v1978_v18 }
 0x651   : > { %4824 = vmatpush3.msra.mxu1 %v1978_v18 }
 0x652   : > { %4825 = vmatprep.subr.mxu1 %v1977_v60 }
 0x653   : > { %4826 = vmatpush3.msra.mxu1 %v1977_v60 }
 0x654   : > { %4827 = vmatprep.subr.mxu1 %v1976_v34 }
 0x655   : > { %4828 = vmatpush3.msra.mxu1 %v1976_v34 }
 0x656   : > { %4829 = vmatprep.subr.mxu1 %v1975_v47 }
 0x657   : > { %4830 = vmatpush3.msra.mxu1 %v1975_v47 }
 0x658   : > { %4831 = vmatprep.subr.mxu1 %v1974_v2 }
 0x659   : > { %4832 = vmatpush3.msra.mxu1 %v1974_v2 }
 0x6fa   : > { %v6168_v20 = vpop.f32.mrf.mxu1 }
 0x6fc   : > { %v6170_v4 = vpop.f32.mrf.mxu1 }
 0x6fd   : > { %4833 = vmatprep.mubr.f32.mxu1 %v6170_v4 }
 0x6fe   : > { %v6173_v39 = vpop.f32.mrf.mxu1  ;;  %4834 = vmatmul.mubr.f32.vlgmr.msra.gmra.mxu1 %v6168_v20 }
 0x6ff   : > { %4839 = vmatprep.subr.mxu1 %v6173_v39  ;;  %4853 = vmatprep.subr.mxu0 %v6173_v39 }
 0x700   : > { %v6178_v15 = vpop.f32.mrf.mxu1  ;;  %4840 = vmatpush3.msra.mxu1 %v6173_v39  ;;  %4854 = vmatpush3.msra.mxu0 %v6173_v39 }
 0x701   : > { %4836 = vmatprep.mubr.f32.mxu1 %v6178_v15  ;;  %4841 = vmatprep.subr.mxu1 %v6178_v15 }
 0x702   : > { %4855 = vmatprep.subr.mxu0 %v6178_v15  ;;  %4837 = vmatmul.mubr.f32.gmra.mxu1 %v6173_v39 }
 0x703   : > { %4842 = vmatpush3.msra.mxu1 %v6178_v15  ;;  %4856 = vmatpush3.msra.mxu0 %v6178_v15 }
 0x704   : > { %4843 = vmatprep.subr.mxu1 %v6168_v20  ;;  %4857 = vmatprep.subr.mxu0 %v6168_v20 }
 0x705   : > { %4844 = vmatpush3.msra.mxu1 %v6168_v20  ;;  %4858 = vmatpush3.msra.mxu0 %v6168_v20 }
 0x706   : > { %4845 = vmatprep.subr.mxu1 %v6170_v4  ;;  %4859 = vmatprep.subr.mxu0 %v6170_v4 }
 0x707   : > { %4846 = vmatpush3.msra.mxu1 %v6170_v4  ;;  %4860 = vmatpush3.msra.mxu0 %v6170_v4 }
 0x708   : > { %4867 = vmatprep.subr.mxu1 %v6173_v39  ;;  %4881 = vmatprep.subr.mxu0 %v6173_v39 }
 0x7be   : > { %v4835_v13 = vpop.f32.mrf.mxu1 }
 0x7bf   : > { %2494 = vperm.xlu0 %5157, %v4835_v13   ;;  %2114 = vperm.xlu1 %5155, %v4835_v13  }
 0x7c0   : > { %v2056_v40 = vpop.f32.mrf.mxu1 }
 0x7c2   : > { %v4838_v14 = vpop.f32.mrf.mxu1 }
 0x7c3   : > { %5159 = vset.pattern.permute.xlu0 %v5464_v36  ;;  %5156 = vset.pattern.permute.xlu1 %v5463_v35 }
 0x7c4   : > { %2305 = vperm.xlu1 %5156, %v4835_v13   ;;  %2109 = vperm.xlu0 %5159, %v2056_v40   ;;  %v2066_v37 = vpop.f32.mrf.mxu1 }
 0x7c8   : > { %5158 = vset.pattern.permute.xlu1 %v5465_v42  ;;  %5169 = vset.pattern.permute.xlu0 %v5466_v43 }
 0x7c9   : > { %2683 = vperm.xlu1 %5158, %v4835_v13   ;;  %2498 = vperm.xlu0 %5169, %v2066_v37  }
 0x7cd   : > { %5160 = vset.pattern.permute.xlu1 %v5463_v35  ;;  %5170 = vset.pattern.permute.xlu0 %v5465_v42 }
 0x7ce   : > { %2301 = vperm.xlu1 %5160, %v2056_v40   ;;  %2687 = vperm.xlu0 %5170, %v2066_v37  }
 0x7d2   : > { %5161 = vset.pattern.permute.xlu1 %v5466_v43  ;;  %5174 = vset.pattern.permute.xlu0 %v5464_v36 }
 0x7d3   : > { %2490 = vperm.xlu1 %5161, %v2056_v40  }
 0x7d7   : > { %5162 = vset.pattern.permute.xlu1 %v5465_v42 }
 0x7d8   : > { %2679 = vperm.xlu1 %5162, %v2056_v40  }
 0x7dc   : > { %5163 = vset.pattern.permute.xlu1 %v5464_v36 }
 0x7dd   : > { %2124 = vperm.xlu1 %5163, %v4838_v14  }
 0x7e1   : > { %5164 = vset.pattern.permute.xlu1 %v5463_v35 }
 0x7e2   : > { %2313 = vperm.xlu1 %5164, %v4838_v14  }
 0x7e6   : > { %5165 = vset.pattern.permute.xlu1 %v5466_v43 }
 0x7e7   : > { %2502 = vperm.xlu1 %5165, %v4838_v14  }
 0x7eb   : > { %5166 = vset.pattern.permute.xlu1 %v5465_v42 }
 0x7ec   : > { %2691 = vperm.xlu1 %5166, %v4838_v14  }
 0x7f0   : > { %5167 = vset.pattern.permute.xlu1 %v5464_v36 }
 0x7f1   : > { %2119 = vperm.xlu1 %5167, %v2066_v37  }
 0x7f5   : > { %5168 = vset.pattern.permute.xlu1 %v5463_v35 }
 0x7f6   : > { %2309 = vperm.xlu1 %5168, %v2066_v37  }
 0x81f   : > { %2075 = vxpose.xlu1.b32.start [1/4] (short) (narrow) %v2056_v40, 8 }
 0x823   : > { %2076 = vxpose.xlu1.b32.cont [2/4] (short) (narrow) %v4835_v13, 8 }
 0x827   : > { %2077 = vxpose.xlu1.b32.cont [3/4] (short) (narrow) %v2066_v37, 8 }
 0x82b   : > { %2078 = vxpose.xlu1.b32.end [4/4] (short) (narrow) %v4838_v14, 8 }
 0x83a   : > { %v2115_v38 = vpop.permute.xlu1 %2114  ;;  %v2495_v28 = vpop.permute.xlu0 %2494 }
 0x83f   : > { %v2306_v6 = vpop.permute.xlu1 %2305  ;;  %v2110_v33 = vpop.permute.xlu0 %2109 }
 0x844   : > { %v6214_v49 = vpop.permute.xlu1 %2683 }
 0x849   : > { %5171 = vset.pattern.permute.xlu1 %v5464_v36  ;;  %v2302_v57 = vpop.permute.xlu1 %2301 }
 0x84e   : > { %v2491_v25 = vpop.permute.xlu1 %2490 }
 0x853   : > { %v2680_v45 = vpop.permute.xlu1 %2679 }
 0x858   : > { %v2125_v5 = vpop.permute.xlu1 %2124 }
 0x85d   : > { %v2314_v54 = vpop.permute.xlu1 %2313 }
 0x862   : > { %v6216_v27 = vpop.permute.xlu1 %2502 }
 0x867   : > { %v6218_v53 = vpop.permute.xlu1 %2691 }
 0x86c   : > { %v6220_v63 = vpop.permute.xlu1 %2119 }
 0x871   : > { %v6222_v55 = vpop.permute.xlu1 %2309 }
 0x89b   : > { %v2091_v52 = vpop.trf.xlu1 }
 0x89c   : > { %v6225_v29 = vrot.slane %v2091_v52, %v5767_v7  ;;  %v6228_v31 = vrot.slane %v2091_v52, %v5769_v8  ;;  %v6249_v3 = vrot.slane %v2091_v52, %v5771_v9  ;;  %v2697_v40 = vrot.slane %v2091_v52, %v5773_v10 }
 0x89e   : > { %v2323_v44 = vadd.f32 %v6228_v31, %v2314_v54  ;;  %v2132_v51 = vadd.f32 %v6225_v29, %v2115_v38  ;;  %v2321_v46 = vadd.f32 %v6228_v31, %v2306_v6  ;;  %v2131_v16 = vadd.f32 %v6225_v29, %v2110_v33 }
 0x89f   : > { %v2320_v62 = vadd.f32 %v6228_v31, %v2302_v57  ;;  %v2134_v11 = vadd.f32 %v6225_v29, %v2125_v5  ;;  %v2509_v47 = vadd.f32 %v6249_v3, %v2491_v25  ;;  %v2510_v38 = vadd.f32 %v6249_v3, %v2495_v28 }
 0x8a0   : > { %vm2327_vm7 = vcmp.gt.f32.partialorder %v2323_v44, 0.0  ;;  %v2331_v19 = vmul.f32 0.2, %v2323_v44  ;;  %vm2136_vm8 = vcmp.gt.f32.partialorder %v2132_v51, 0.0  ;;  %v2140_v41 = vmul.f32 0.2, %v2132_v51 }
 0x8a1   : > { %vm2325_vm9 = vcmp.gt.f32.partialorder %v2321_v46, 0.0  ;;  %v2329_v48 = vmul.f32 0.2, %v2321_v46  ;;  %v2139_v59 = vmul.f32 0.2, %v2131_v16  ;;  %vm2135_vm10 = vcmp.gt.f32.partialorder %v2131_v16, 0.0 }
 0x8a2   : > { %v2335_v50 = vsel %vm2327_vm7, %v2323_v44, %v2331_v19  ;;  %v2144_v61 = vsel %vm2136_vm8, %v2132_v51, %v2140_v41  ;;  %v2328_v32 = vmul.f32 0.2, %v2320_v62  ;;  %vm2324_vm11 = vcmp.gt.f32.partialorder %v2320_v62, 0.0 }
 0x8a3   : > { %v6236_v22 = vadd.f32 %v2335_v50, %v5798_v24  ;;  %v6239_v56 = vadd.f32 %v2144_v61, %v5795_v23  ;;  %v2333_v30 = vsel %vm2325_vm9, %v2321_v46, %v2329_v48  ;;  %v2143_v26 = vsel %vm2135_vm10, %v2131_v16, %v2139_v59 }
 0x8a4   : > { %v6246_v58 = vadd.f32 %v2333_v30, %v5795_v23  ;;  %v6255_v18 = vadd.f32 %v2143_v26, %v5788_v17  ;;  %v2332_v60 = vsel %vm2324_vm11, %v2320_v62, %v2328_v32  ;;  %v2142_v34 = vmul.f32 0.2, %v2134_v11  ;;  %v2499_v26 = vpop.permute.xlu0 %2498 }
 0x8a5   : > { %v2349_v21 = vsel %vm750_vm1, %v6236_v22, -inf  ;;  %v2154_v1 = vsel %vm750_vm1, %v6239_v56, -inf  ;;  %vm2138_vm12 = vcmp.gt.f32.partialorder %v2134_v11, 0.0  ;;  %v6261_v13 = vadd.f32 %v2332_v60, %v5788_v17 }
 0x8a6   : > { %2350 = vmax.xlane.f32.xlu1 %v2349_v21  ;;  %2155 = vmax.xlane.f32.xlu0 %v2154_v1  ;;  %v2343_v0 = vsel %vm750_vm1, %v6246_v58, -inf  ;;  %v2151_v2 = vsel %vm750_vm1, %v6255_v18, -inf  ;;  %v2146_v14 = vsel %vm2138_vm12, %v2134_v11, %v2142_v34  ;;  %v2517_v37 = vmul.f32 0.2, %v2509_v47 }
 0x8a7   : > { %vm2513_vm13 = vcmp.gt.f32.partialorder %v2509_v47, 0.0  ;;  %v2340_v6 = vsel %vm750_vm1, %v6261_v13, -inf  ;;  %v6268_v57 = vadd.f32 %v2146_v14, %v5798_v24  ;;  %v2518_v5 = vmul.f32 0.2, %v2510_v38 }
 0x8a8   : > { %v2521_v25 = vsel %vm2513_vm13, %v2509_v47, %v2517_v37  ;;  %v2698_v54 = vadd.f32 %v2697_v40, %v2680_v45  ;;  %vm2514_vm14 = vcmp.gt.f32.partialorder %v2510_v38, 0.0  ;;  %v2699_v51 = vadd.f32 %v2697_v40, %v6214_v49  ;;  %v2688_v60 = vpop.permute.xlu0 %2687 }
 0x8a9   : > { %v2160_v52 = vsel %vm750_vm1, %v6268_v57, -inf  ;;  %v6273_v33 = vadd.f32 %v2521_v25, %v5788_v17  ;;  %v2522_v28 = vsel %vm2514_vm14, %v2510_v38, %v2518_v5  ;;  %v2512_v41 = vadd.f32 %v6249_v3, %v6216_v27 }
 0x8aa   : > { %2344 = vmax.xlane.f32.xlu0 %v2343_v0  ;;  %v2706_v44 = vmul.f32 0.2, %v2698_v54  ;;  %vm2702_vm15 = vcmp.gt.f32.partialorder %v2698_v54, 0.0  ;;  %v6279_v16 = vadd.f32 %v2522_v28, %v5795_v23  ;;  %v2707_v19 = vmul.f32 0.2, %v2699_v51 }
 0x8ab   : > { %v2529_v46 = vsel %vm750_vm1, %v6273_v33, -inf  ;;  %vm2703_vm0 = vcmp.gt.f32.partialorder %v2699_v51, 0.0  ;;  %v2520_v61 = vmul.f32 0.2, %v2512_v41  ;;  %v2133_v59 = vadd.f32 %v6225_v29, %v6220_v63 }
 0x8ac   : > { %v2710_v45 = vsel %vm2702_vm15, %v2698_v54, %v2706_v44  ;;  %v2532_v48 = vsel %vm750_vm1, %v6279_v16, -inf  ;;  %v2711_v49 = vsel %vm2703_vm0, %v2699_v51, %v2707_v19  ;;  %vm2516_vm2 = vcmp.gt.f32.partialorder %v2512_v41, 0.0 }
 0x8ad   : > { %v6286_v50 = vadd.f32 %v2710_v45, %v5788_v17  ;;  %v6293_v30 = vadd.f32 %v2711_v49, %v5795_v23  ;;  %v2524_v27 = vsel %vm2516_vm2, %v2512_v41, %v2520_v61  ;;  %v2141_v21 = vmul.f32 0.2, %v2133_v59 }
 0x8ae   : > { %2152 = vmax.xlane.f32.xlu0 %v2151_v2  ;;  %v2322_v1 = vadd.f32 %v6228_v31, %v6222_v55  ;;  %vm2137_vm3 = vcmp.gt.f32.partialorder %v2133_v59, 0.0  ;;  %v6300_v63 = vadd.f32 %v2524_v27, %v5798_v24  ;;  %v2511_v0 = vadd.f32 %v6249_v3, %v2499_v26 }
 0x8af   : > { %v2718_v62 = vsel %vm750_vm1, %v6286_v50, -inf  ;;  %v2721_v32 = vsel %vm750_vm1, %v6293_v30, -inf  ;;  %v2145_v29 = vsel %vm2137_vm3, %v2133_v59, %v2141_v21  ;;  %v2700_v2 = vadd.f32 %v2697_v40, %v2688_v60 }
 0x8b0   : > { %v2330_v11 = vmul.f32 0.2, %v2322_v1  ;;  %vm2326_vm4 = vcmp.gt.f32.partialorder %v2322_v1, 0.0  ;;  %v2538_v34 = vsel %vm750_vm1, %v6300_v63, -inf  ;;  %v6306_v55 = vadd.f32 %v2145_v29, %v5857_v12 }
 0x8b1   : > { %v2519_v47 = vmul.f32 0.2, %v2511_v0  ;;  %vm2515_vm5 = vcmp.gt.f32.partialorder %v2511_v0, 0.0  ;;  %v2708_v38 = vmul.f32 0.2, %v2700_v2  ;;  %vm2704_vm6 = vcmp.gt.f32.partialorder %v2700_v2, 0.0 }
 0x8b2   : > { %2341 = vmax.xlane.f32.xlu0 %v2340_v6  ;;  %v2334_v31 = vsel %vm2326_vm4, %v2322_v1, %v2330_v11  ;;  %v2157_v14 = vsel %vm750_vm1, %v6306_v55, -inf  ;;  %v2701_v6 = vadd.f32 %v2697_v40, %v6218_v53 }
 0x8b3   : > { %v6311_v37 = vadd.f32 %v2334_v31, %v5857_v12  ;;  %v2523_v3 = vsel %vm2515_vm5, %v2511_v0, %v2519_v47  ;;  %v2712_v54 = vsel %vm2704_vm6, %v2700_v2, %v2708_v38 }
 0x8b4   : > { %v6317_v5 = vadd.f32 %v2523_v3, %v5857_v12  ;;  %vm2705_vm7 = vcmp.gt.f32.partialorder %v2701_v6, 0.0  ;;  %v6322_v44 = vadd.f32 %v2712_v54, %v5857_v12 }
 0x8b5   : > { %v2346_v25 = vsel %vm750_vm1, %v6311_v37, -inf }
 0x8b6   : > { %2161 = vmax.xlane.f32.xlu0 %v2160_v52  ;;  %v2709_v52 = vmul.f32 0.2, %v2701_v6  ;;  %v2535_v28 = vsel %vm750_vm1, %v6317_v5, -inf  ;;  %v2724_v53 = vsel %vm750_vm1, %v6322_v44, -inf }
 0x8b8   : > { %v2713_v51 = vsel %vm2705_vm7, %v2701_v6, %v2709_v52 }
 0x8b9   : > { %v6327_v40 = vadd.f32 %v2713_v51, %v5798_v24 }
 0x8ba   : > { %2530 = vmax.xlane.f32.xlu0 %v2529_v46 }
 0x8bb   : > { %v2727_v46 = vsel %vm750_vm1, %v6327_v40, -inf }
 0x8be   : > { %2533 = vmax.xlane.f32.xlu0 %v2532_v48 }
 0x8c2   : > { %2719 = vmax.xlane.f32.xlu0 %v2718_v62 }
 0x8c6   : > { %2722 = vmax.xlane.f32.xlu0 %v2721_v32 }
 0x8ca   : > { %2539 = vmax.xlane.f32.xlu0 %v2538_v34 }
 0x8ce   : > { %2158 = vmax.xlane.f32.xlu0 %v2157_v14 }
 0x8d2   : > { %2347 = vmax.xlane.f32.xlu0 %v2346_v25 }
 0x8d6   : > { %2536 = vmax.xlane.f32.xlu0 %v2535_v28 }
 0x8da   : > { %2725 = vmax.xlane.f32.xlu0 %v2724_v53 }
 0x8de   : > { %2728 = vmax.xlane.f32.xlu0 %v2727_v46 }
 0x92f   : > { %v2156_v45 = vpop.xlane.xlu0 %2155 }
 0x930   : > { %v2164_v19 = vsub.f32 %v6239_v56, %v2156_v45 }
 0x932   : > { %v2169_v41 = vmul.f32 1.442695, %v2164_v19 }
 0x933   : > { %v2345_v48 = vpop.xlane.xlu0 %2344 }
 0x934   : > { %v2353_v49 = vsub.f32 %v6246_v58, %v2345_v48  ;;  %5249 = vpow2.f32 %v2169_v41 }
 0x936   : > { %v2358_v61 = vmul.f32 1.442695, %v2353_v49 }
 0x937   : > { %v2153_v59 = vpop.xlane.xlu0 %2152 }
 0x938   : > { %5251 = vpow2.f32 %v2358_v61  ;;  %v2163_v62 = vsub.f32 %v6255_v18, %v2153_v59 }
 0x93a   : > { %v2167_v27 = vmul.f32 1.442695, %v2163_v62 }
 0x93b   : > { %v2342_v21 = vpop.xlane.xlu0 %2341 }
 0x93c   : > { %5253 = vpow2.f32 %v2167_v27  ;;  %v2352_v1 = vsub.f32 %v6261_v13, %v2342_v21 }
 0x93e   : > { %v2356_v26 = vmul.f32 1.442695, %v2352_v1 }
 0x93f   : > { %v2162_v32 = vpop.xlane.xlu0 %2161 }
 0x940   : > { %5255 = vpow2.f32 %v2356_v26  ;;  %v2166_v38 = vsub.f32 %v6268_v57, %v2162_v32 }
 0x941   : > { %v6335_v29 = vpop.eup %5249 }
 0x942   : > { %v2178_v56 = vsel %vm750_vm1, %v6335_v29, 0.0  ;;  %v2173_v51 = vmul.f32 1.442695, %v2166_v38 }
 0x943   : > { %v2531_v58 = vpop.xlane.xlu0 %2530  ;;  %2179 = vadd.xlane.f32.xlu1 %v2178_v56 }
 0x944   : > { %v2541_v11 = vsub.f32 %v6273_v33, %v2531_v58 }
 0x945   : > { %v6340_v0 = vpop.eup %5251 }
 0x946   : > { %v2545_v18 = vmul.f32 1.442695, %v2541_v11  ;;  %v2367_v60 = vsel %vm750_vm1, %v6340_v0, 0.0 }
 0x947   : > { %v2534_v34 = vpop.xlane.xlu0 %2533  ;;  %2368 = vadd.xlane.f32.xlu1 %v2367_v60 }
 0x948   : > { %5257 = vpow2.f32 %v2545_v18  ;;  %v2542_v13 = vsub.f32 %v6279_v16, %v2534_v34  ;;  %v2351_v16 = vpop.xlane.xlu1 %2350 }
 0x949   : > { %v6345_v31 = vpop.eup %5253  ;;  %v2355_v28 = vsub.f32 %v6236_v22, %v2351_v16 }
 0x94a   : > { %v2547_v47 = vmul.f32 1.442695, %v2542_v13  ;;  %v2175_v2 = vsel %vm750_vm1, %v6345_v31, 0.0 }
 0x94b   : > { %2176 = vadd.xlane.f32.xlu0 %v2175_v2  ;;  %v2720_v14 = vpop.xlane.xlu0 %2719  ;;  %v2362_v45 = vmul.f32 1.442695, %v2355_v28 }
 0x94c   : > { %5259 = vpow2.f32 %v2547_v47  ;;  %v2730_v33 = vsub.f32 %v6286_v50, %v2720_v14 }
 0x94d   : > { %v6350_v3 = vpop.eup %5255 }
 0x94e   : > { %v2734_v6 = vmul.f32 1.442695, %v2730_v33  ;;  %v2364_v25 = vsel %vm750_vm1, %v6350_v3, 0.0 }
 0x94f   : > { %2365 = vadd.xlane.f32.xlu0 %v2364_v25  ;;  %v2723_v54 = vpop.xlane.xlu0 %2722 }
 0x950   : > { %5261 = vpow2.f32 %v2734_v6  ;;  %v2731_v52 = vsub.f32 %v6293_v30, %v2723_v54 }
 0x952   : > { %v2736_v53 = vmul.f32 1.442695, %v2731_v52 }
 0x953   : > { %v2540_v46 = vpop.xlane.xlu0 %2539 }
 0x954   : > { %5263 = vpow2.f32 %v2736_v53  ;;  %v2544_v57 = vsub.f32 %v6300_v63, %v2540_v46 }
 0x955   : > { %v6357_v50 = vpop.eup %5257  ;;  %5265 = vpow2.f32 %v2173_v51 }
 0x956   : > { %v2553_v19 = vsel %vm750_vm1, %v6357_v50, 0.0  ;;  %5267 = vpow2.f32 %v2362_v45  ;;  %v2551_v22 = vmul.f32 1.442695, %v2544_v57 }
 0x957   : > { %2554 = vadd.xlane.f32.xlu0 %v2553_v19  ;;  %v2159_v41 = vpop.xlane.xlu0 %2158 }
 0x958   : > { %v2165_v48 = vsub.f32 %v6306_v55, %v2159_v41 }
 0x959   : > { %v6363_v30 = vpop.eup %5259 }
 0x95a   : > { %v2171_v49 = vmul.f32 1.442695, %v2165_v48  ;;  %v2556_v61 = vsel %vm750_vm1, %v6363_v30, 0.0 }
 0x95b   : > { %2557 = vadd.xlane.f32.xlu1 %v2556_v61  ;;  %v2348_v59 = vpop.xlane.xlu0 %2347 }
 0x95c   : > { %5269 = vpow2.f32 %v2171_v49  ;;  %v2354_v63 = vsub.f32 %v6311_v37, %v2348_v59 }
 0x95d   : > { %v6368_v62 = vpop.eup %5261  ;;  %5271 = vpow2.f32 %v2551_v22 }
 0x95e   : > { %v2360_v27 = vmul.f32 1.442695, %v2354_v63  ;;  %v2742_v55 = vsel %vm750_vm1, %v6368_v62, 0.0 }
 0x95f   : > { %2743 = vadd.xlane.f32.xlu0 %v2742_v55  ;;  %v2537_v21 = vpop.xlane.xlu0 %2536 }
 0x960   : > { %5273 = vpow2.f32 %v2360_v27  ;;  %v2543_v1 = vsub.f32 %v6317_v5, %v2537_v21 }
 0x961   : > { %v6373_v26 = vpop.eup %5263 }
 0x962   : > { %v2549_v32 = vmul.f32 1.442695, %v2543_v1  ;;  %v2745_v56 = vsel %vm750_vm1, %v6373_v26, 0.0  ;;  %v6377_v58 = vpop.eup %5265 }
 0x963   : > { %2746 = vadd.xlane.f32.xlu1 %v2745_v56  ;;  %v2726_v37 = vpop.xlane.xlu0 %2725  ;;  %v2184_v60 = vsel %vm750_vm1, %v6377_v58, 0.0  ;;  %v6382_v34 = vpop.eup %5267 }
 0x964   : > { %5275 = vpow2.f32 %v2549_v32  ;;  %v2732_v11 = vsub.f32 %v6322_v44, %v2726_v37  ;;  %v2373_v14 = vsel %vm750_vm1, %v6382_v34, 0.0 }
 0x966   : > { %v2738_v18 = vmul.f32 1.442695, %v2732_v11 }
 0x967   : > { %2185 = vadd.xlane.f32.xlu1 %v2184_v60  ;;  %v2729_v5 = vpop.xlane.xlu0 %2728 }
 0x968   : > { %5277 = vpow2.f32 %v2738_v18  ;;  %v2733_v13 = vsub.f32 %v6327_v40, %v2729_v5 }
 0x969   : > { %v6385_v47 = vpop.eup %5269 }
 0x96a   : > { %v2740_v2 = vmul.f32 1.442695, %v2733_v13  ;;  %v2181_v44 = vsel %vm750_vm1, %v6385_v47, 0.0  ;;  %v6391_v33 = vpop.eup %5271 }
 0x96b   : > { %2374 = vadd.xlane.f32.xlu1 %v2373_v14  ;;  %2182 = vadd.xlane.f32.xlu0 %v2181_v44  ;;  %v2562_v6 = vsel %vm750_vm1, %v6391_v33, 0.0 }
 0x96c   : > { %5279 = vpow2.f32 %v2740_v2 }
 0x96d   : > { %v6393_v38 = vpop.eup %5273 }
 0x96e   : > { %v2370_v40 = vsel %vm750_vm1, %v6393_v38, 0.0 }
 0x96f   : > { %2563 = vadd.xlane.f32.xlu1 %v2562_v6  ;;  %2371 = vadd.xlane.f32.xlu0 %v2370_v40 }
 0x971   : > { %v6399_v25 = vpop.eup %5275 }
 0x972   : > { %v2559_v16 = vsel %vm750_vm1, %v6399_v25, 0.0 }
 0x973   : > { %2560 = vadd.xlane.f32.xlu0 %v2559_v16 }
 0x975   : > { %v6403_v54 = vpop.eup %5277 }
 0x976   : > { %v2748_v52 = vsel %vm750_vm1, %v6403_v54, 0.0 }
 0x977   : > { %2749 = vadd.xlane.f32.xlu0 %v2748_v52 }
 0x979   : > { %v6407_v28 = vpop.eup %5279 }
 0x97a   : > { %v2751_v51 = vsel %vm750_vm1, %v6407_v28, 0.0 }
 0x97b   : > { %2752 = vadd.xlane.f32.xlu1 %v2751_v51 }
 0x9cc   : > { %v2180_v53 = vpop.xlane.xlu1 %2179 }
 0x9cd   : > { %5281 = vrcp.f32 %v2180_v53  ;;  %v5380_v53 = vld [vmem:[%s7058_s4 + $0x60] sm:$0xff] }
 0x9d0   : > { %v2369_v45 = vpop.xlane.xlu1 %2368 }
 0x9d4   : > { %v2177_v46 = vpop.xlane.xlu0 %2176 }
 0x9d5   : > { %5283 = vrcp.f32 %v2177_v46 }
 0x9d6   : > { %5285 = vrcp.f32 %v2369_v45  ;;  %v5382_v45 = vld [vmem:[%s7058_s4 + $0x50] sm:$0xff] }
 0x9d8   : > { %v2366_v57 = vpop.xlane.xlu0 %2365 }
 0x9d9   : > { %5287 = vrcp.f32 %v2366_v57  ;;  %v5383_v57 = vld [vmem:[%s7058_s4 + $0x48] sm:$0xff] }
 0x9da   : > { %v5282_v19 = vpop.eup %5281 }
 0x9db   : > { %v2192_v22 = vmul.f32 %v5282_v19, %v6335_v29  ;;  %v5385_v19 = vld [vmem:[%s7058_s4 + $0x38] sm:$0xff] }
 0x9e0   : > { %v2555_v29 = vpop.xlane.xlu0 %2554 }
 0x9e1   : > { %5289 = vrcp.f32 %v2555_v29 }
 0x9e2   : > { %v5284_v41 = vpop.eup %5283 }
 0x9e3   : > { %v2191_v48 = vmul.f32 %v5284_v41, %v6345_v31  ;;  %v5286_v49 = vpop.eup %5285  ;;  %v5377_v31 = vld [vmem:[%s7058_s4 + $0x78] sm:$0xff]  ;;  %v5386_v41 = vld [vmem:[%s7058_s4 + $0x30] sm:$0xff] }
 0x9e4   : > { %v2381_v63 = vmul.f32 %v5286_v49, %v6340_v0  ;;  %v2558_v27 = vpop.xlane.xlu1 %2557  ;;  %v5389_v49 = vld [vmem:[%s7058_s4 + $0x18] sm:$0xff] }
 0x9e5   : > { %4847 = vmatprep.mubr.msk.f32.mxu1 %vm750_vm1, %v2191_v48  ;;  %v5387_v48 = vld [vmem:[%s7058_s4 + $0x28] sm:$0xff] }
 0x9e6   : > { %v5288_v61 = vpop.eup %5287  ;;  %4848 = vmatmul.mubr.msk.f32.vlgmr.msra.gmra.mxu1 %vm750_vm1, %v2192_v22  ;;  %v5388_v22 = vld [vmem:[%s7058_s4 + $0x20] sm:$0xff] }
 0x9e7   : > { %4868 = vmatpush3.msra.mxu1 %v6173_v39  ;;  %v2380_v59 = vmul.f32 %v5288_v61, %v6350_v3  ;;  %v5390_v61 = vld [vmem:[%s7058_s4 + $0x10] sm:$0xff] }
 0x9e8   : > { %4869 = vmatprep.subr.mxu1 %v6178_v15 }
 0x9e9   : > { %4870 = vmatpush3.msra.mxu1 %v6178_v15  ;;  %4861 = vmatprep.mubr.msk.f32.mxu0 %vm750_vm1, %v2380_v59  ;;  %v5391_v59 = vld [vmem:[%s7058_s4 + $0x8] sm:$0xff] }
 0x9ea   : > { %4871 = vmatprep.subr.mxu1 %v6168_v20  ;;  %4862 = vmatmul.mubr.msk.f32.vlgmr.msra.gmra.mxu0 %vm750_vm1, %v2381_v63  ;;  %v5392_v63 = vld [vmem:[%s7058_s4] sm:$0xff] }
 0x9eb   : > { %4872 = vmatpush3.msra.mxu1 %v6168_v20  ;;  %4882 = vmatpush3.msra.mxu0 %v6173_v39  ;;  %v2744_v39 = vpop.xlane.xlu0 %2743 }
 0x9ec   : > { %4873 = vmatprep.subr.mxu1 %v6170_v4  ;;  %4883 = vmatprep.subr.mxu0 %v6178_v15  ;;  %v2747_v0 = vpop.xlane.xlu1 %2746 }
 0x9ed   : > { %4874 = vmatpush3.msra.mxu1 %v6170_v4  ;;  %4884 = vmatpush3.msra.mxu0 %v6178_v15 }
 0x9ee   : > { %4885 = vmatprep.subr.mxu0 %v6168_v20  ;;  %4895 = vmatprep.subr.mxu1 %v5377_v31  ;;  %v5290_v56 = vpop.eup %5289 }
 0x9ef   : > { %4886 = vmatpush3.msra.mxu0 %v6168_v20  ;;  %v2569_v14 = vmul.f32 %v5290_v56, %v6357_v50 }
 0x9f0   : > { %4887 = vmatprep.subr.mxu0 %v6170_v4  ;;  %v2186_v3 = vpop.xlane.xlu1 %2185 }
 0x9f1   : > { %4888 = vmatpush3.msra.mxu0 %v6170_v4  ;;  %5291 = vrcp.f32 %v2186_v3 }
 0x9f4   : > { %v2375_v55 = vpop.xlane.xlu1 %2374  ;;  %v2183_v21 = vpop.xlane.xlu0 %2182 }
 0x9f5   : > { %5293 = vrcp.f32 %v2183_v21 }
 0x9f6   : > { %5295 = vrcp.f32 %v2558_v27  ;;  %v2966_v27 = vld [vmem:[%s7027_s12 + $0x18] sm:$0xff] }
 0x9f7   : > { %5297 = vrcp.f32 %v2744_v39  ;;  %4933 = vmatprep.subr.mxu0 %v2966_v27 }
 0x9f8   : > { %v2372_v15 = vpop.xlane.xlu0 %2371  ;;  %5299 = vrcp.f32 %v2375_v55  ;;  %v2564_v1 = vpop.xlane.xlu1 %2563 }
 0x9f9   : > { %5301 = vrcp.f32 %v2372_v15 }
 0x9fa   : > { %5303 = vrcp.f32 %v2747_v0 }
 0x9fb   : > { %5305 = vrcp.f32 %v2564_v1  ;;  %v5393_v1 = vld [vmem:[%s7059_s25 + $0x1] ss:$0 sm:$0xff] }
 0x9fc   : > { %v2561_v20 = vpop.xlane.xlu0 %2560 }
 0x9fd   : > { %5307 = vrcp.f32 %v2561_v20 }
 0x9fe   : > { %v5292_v37 = vpop.eup %5291 }
 0x9ff   : > { %v2194_v13 = vmul.f32 %v5292_v37, %v6377_v58 }
 0xa00   : > { %v2750_v32 = vpop.xlane.xlu0 %2749 }
 0xa01   : > { %5309 = vrcp.f32 %v2750_v32 }
 0xa02   : > { %v5294_v4 = vpop.eup %5293 }
 0xa03   : > { %v5296_v11 = vpop.eup %5295  ;;  %v2193_v60 = vmul.f32 %v5294_v4, %v6385_v47  ;;  %v5394_v4 = vld [vmem:[%s7059_s25] ss:$0 sm:$0xff] }
 0xa04   : > { %v2753_v18 = vpop.xlane.xlu1 %2752  ;;  %v5298_v5 = vpop.eup %5297  ;;  %v2570_v47 = vmul.f32 %v5296_v11, %v6363_v30 }
 0xa05   : > { %5311 = vrcp.f32 %v2753_v18  ;;  %v5300_v2 = vpop.eup %5299  ;;  %4850 = vmatprep.mubr.msk.f32.mxu1 %vm750_vm1, %v2193_v60  ;;  %v2758_v58 = vmul.f32 %v5298_v5, %v6368_v62  ;;  %v5395_v18 = vld [vmem:[%s7059_s25 + $0x2] ss:$0 sm:$0xff] }
 0xa06   : > { %v5302_v44 = vpop.eup %5301  ;;  %4851 = vmatmul.mubr.msk.f32.gmra.mxu1 %vm750_vm1, %v2194_v13  ;;  %v2383_v52 = vmul.f32 %v5300_v2, %v6382_v34  ;;  %v5378_v34 = vld [vmem:[%s7058_s4 + $0x70] sm:$0xff] }
 0xa07   : > { %v5304_v6 = vpop.eup %5303  ;;  %4875 = vmatprep.mubr.msk.f32.mxu1 %vm750_vm1, %v2569_v14  ;;  %v2382_v40 = vmul.f32 %v5302_v44, %v6393_v38 }
 0xa08   : > { %v5306_v16 = vpop.eup %5305  ;;  %v2759_v38 = vmul.f32 %v5304_v6, %v6373_v26  ;;  %v5379_v26 = vld [vmem:[%s7058_s4 + $0x68] sm:$0xff] }
 0xa09   : > { %4864 = vmatprep.mubr.msk.f32.mxu0 %vm750_vm1, %v2382_v40  ;;  %v2572_v30 = vmul.f32 %v5306_v16, %v6391_v33  ;;  %v5396_v40 = vld [vmem:[%s7059_s25 + $0x3] ss:$0 sm:$0xff] }
 0xa0a   : > { %v5308_v51 = vpop.eup %5307  ;;  %4865 = vmatmul.mubr.msk.f32.gmra.mxu0 %vm750_vm1, %v2383_v52  ;;  %4876 = vmatmul.mubr.msk.f32.vlgmr.msra.gmra.mxu1 %vm750_vm1, %v2570_v47 }
 0xa0b   : > { %v2571_v50 = vmul.f32 %v5308_v51, %v6399_v25  ;;  %4889 = vmatprep.mubr.msk.f32.mxu0 %vm750_vm1, %v2758_v58  ;;  %4896 = vmatpush3.msra.mxu1 %v5377_v31 }
 0xa0c   : > { %4897 = vmatprep.subr.mxu1 %v5378_v34 }
 0xa0d   : > { %4878 = vmatprep.mubr.msk.f32.mxu1 %vm750_vm1, %v2571_v50  ;;  %4898 = vmatpush3.msra.mxu1 %v5378_v34 }
 0xa0e   : > { %v5310_v62 = vpop.eup %5309  ;;  %4879 = vmatmul.mubr.msk.f32.gmra.mxu1 %vm750_vm1, %v2572_v30  ;;  %4890 = vmatmul.mubr.msk.f32.vlgmr.msra.gmra.mxu0 %vm750_vm1, %v2759_v38 }
 0xa0f   : > { %v2760_v25 = vmul.f32 %v5310_v62, %v6403_v54  ;;  %4899 = vmatprep.subr.mxu1 %v5379_v26  ;;  %v5381_v54 = vld [vmem:[%s7058_s4 + $0x58] sm:$0xff]  ;;  %4934 = vmatpush3.msra.mxu0 %v2966_v27 }
 0xa10   : > { %4900 = vmatpush3.msra.mxu1 %v5379_v26  ;;  %v3079_v27 = vld [vmem:[%s7028_s13 + $0x78] sm:$0xff] }
 0xa11   : > { %4892 = vmatprep.mubr.msk.f32.mxu0 %vm750_vm1, %v2760_v25  ;;  %4901 = vmatprep.subr.mxu1 %v5380_v53 }
 0xa12   : > { %v5312_v33 = vpop.eup %5311  ;;  %4902 = vmatpush3.msra.mxu1 %v5380_v53 }
 0xa13   : > { %v2761_v46 = vmul.f32 %v5312_v33, %v6407_v28  ;;  %4903 = vmatprep.subr.mxu1 %v5381_v54  ;;  %v5384_v28 = vld [vmem:[%s7058_s4 + $0x40] sm:$0xff]  ;;  %s5401_s4 = scalar_lea.vmem %s6968_s2, 512 }
 0xa14   : > { %4904 = vmatpush3.msra.mxu1 %v5381_v54  ;;  %p5402_p11 = scmp.ne.s32.totalorder %s6968_s2, %s5401_s4  ;;  %p5409_p1 = scmp.lt.s32.totalorder %s5407_s6, %s5401_s4 }
 0xa15   : > { %4893 = vmatmul.mubr.msk.f32.gmra.mxu0 %vm750_vm1, %v2761_v46  ;;  %4905 = vmatprep.subr.mxu1 %v5382_v45 }
 0xa16   : > { %4906 = vmatpush3.msra.mxu1 %v5382_v45  ;;  %p5403_p12 = pnand %p5402_p11, %p5609_p5  ;;  %p5410_p2 = por %p5409_p1, %p5408_p0 }
 0xa17   : > { %4907 = vmatprep.subr.mxu1 %v5383_v57 }
 0xa18   : > { %4908 = vmatpush3.msra.mxu1 %v5383_v57  ;;  %p5404_p13 = pneg %p5403_p12 }
 0xa19   : > { %4909 = vmatprep.subr.mxu1 %v5384_v28 }
 0xa1a   : > { %4910 = vmatpush3.msra.mxu1 %v5384_v28  ;;  %p5411_p3 = pnand %p5410_p2, %p5404_p13 }
 0xa1b   : > { %4911 = vmatprep.subr.mxu1 %v5385_v19 }
 0xa1c   : > { %4912 = vmatpush3.msra.mxu1 %v5385_v19 }
 0xa1d   : > { %4913 = vmatprep.subr.mxu1 %v5386_v41 }
 0xa1e   : > { %4914 = vmatpush3.msra.mxu1 %v5386_v41 }
 0xa1f   : > { %4915 = vmatprep.subr.mxu1 %v5387_v48 }
 0xa20   : > { %4916 = vmatpush3.msra.mxu1 %v5387_v48 }
 0xa21   : > { %4917 = vmatprep.subr.mxu1 %v5388_v22 }
 0xa22   : > { %4918 = vmatpush3.msra.mxu1 %v5388_v22 }
 0xa23   : > { %4919 = vmatprep.subr.mxu1 %v5389_v49 }
 0xa24   : > { %4920 = vmatpush3.msra.mxu1 %v5389_v49 }
 0xa25   : > { %4921 = vmatprep.subr.mxu1 %v5390_v61 }
 0xa26   : > { %4922 = vmatpush3.msra.mxu1 %v5390_v61  ;;  %v2965_v61 = vld [vmem:[%s7027_s12 + $0x10] sm:$0xff] }
 0xa27   : > { %4923 = vmatprep.subr.mxu1 %v5391_v59  ;;  %4935 = vmatprep.subr.mxu0 %v2965_v61 }
 0xa28   : > { %4924 = vmatpush3.msra.mxu1 %v5391_v59  ;;  %4936 = vmatpush3.msra.mxu0 %v2965_v61  ;;  %v2964_v59 = vld [vmem:[%s7027_s12 + $0x8] sm:$0xff] }
 0xa29   : > { %4925 = vmatprep.subr.mxu1 %v5392_v63  ;;  %4937 = vmatprep.subr.mxu0 %v2964_v59 }
 0xa2a   : > { %4926 = vmatpush3.msra.mxu1 %v5392_v63  ;;  %v2963_v63 = vld [vmem:[%s7027_s12] sm:$0xff]  ;;  %4938 = vmatpush3.msra.mxu0 %v2964_v59 }
 0xa2b   : > { %4939 = vmatprep.subr.mxu0 %v2963_v63 }
 0xa2c   : > { %4940 = vmatpush3.msra.mxu0 %v2963_v63 }
 0xa2d   : > { %4947 = vmatprep.subr.mxu0 %v3079_v27 }
 0xaa6   : > { %v4849_v29 = vpop.f32.mrf.mxu1 }
 0xaa7   : > { %v2293_v5 = vmul.f32 %v5394_v4, %v4849_v29  ;;  %v4342_v29 = vld [vmem:[%s7026_s11] ss:$0 sm:$0xff] }
 0xaa8   : > { %v2273_v0 = vpop.f32.mrf.mxu1 }
 0xaa9   : > { %v2292_v11 = vmul.f32 %v5394_v4, %v2273_v0 }
 0xaaa   : > { %v4863_v31 = vpop.f32.mrf.mxu0 }
 0xaab   : > { %v2482_v32 = vmul.f32 %v5393_v1, %v4863_v31 }
 0xaac   : > { %v2462_v3 = vpop.f32.mrf.mxu0 }
 0xaad   : > { %v2481_v20 = vmul.f32 %v5393_v1, %v2462_v3  ;;  %v2486_v6 = vadd.f32 %v2482_v32, %v2293_v5  ;;  %v3074_v5 = vld [vmem:[%s7028_s13 + $0x50] sm:$0xff] }
 0xaaf   : > { %v2485_v44 = vadd.f32 %v2481_v20, %v2292_v11  ;;  %v3076_v11 = vld [vmem:[%s7028_s13 + $0x60] sm:$0xff] }
 0xac6   : > { %v4852_v39 = vpop.f32.mrf.mxu1 }
 0xac7   : > { %v2295_v26 = vmul.f32 %v5394_v4, %v4852_v39 }
 0xac8   : > { %v2283_v55 = vpop.f32.mrf.mxu1 }
 0xac9   : > { %v2294_v34 = vmul.f32 %v5394_v4, %v2283_v55 }
 0xaca   : > { %v4866_v21 = vpop.f32.mrf.mxu0  ;;  %v4877_v15 = vpop.f32.mrf.mxu1 }
 0xacb   : > { %v2671_v13 = vmul.f32 %v5395_v18, %v4877_v15  ;;  %v2484_v38 = vmul.f32 %v5393_v1, %v4866_v21 }
 0xacc   : > { %v2472_v56 = vpop.f32.mrf.mxu0  ;;  %v2651_v37 = vpop.f32.mrf.mxu1 }
 0xacd   : > { %v2670_v60 = vmul.f32 %v5395_v18, %v2651_v37  ;;  %v2483_v51 = vmul.f32 %v5393_v1, %v2472_v56  ;;  %v2675_v30 = vadd.f32 %v2671_v13, %v2486_v6  ;;  %v2488_v45 = vadd.f32 %v2484_v38, %v2295_v26  ;;  %v3078_v1 = vld [vmem:[%s7028_s13 + $0x70] sm:$0xff]  ;;  %v3077_v37 = vld [vmem:[%s7028_s13 + $0x68] sm:$0xff] }
 0xace   : > { %v4880_v2 = vpop.f32.mrf.mxu1  ;;  %v4891_v14 = vpop.f32.mrf.mxu0  ;;  %v3073_v13 = vld [vmem:[%s7028_s13 + $0x48] sm:$0xff] }
 0xacf   : > { %v2860_v16 = vmul.f32 %v5396_v40, %v4891_v14  ;;  %v2674_v58 = vadd.f32 %v2670_v60, %v2485_v44  ;;  %v2673_v33 = vmul.f32 %v5395_v18, %v4880_v2  ;;  %v2487_v54 = vadd.f32 %v2483_v51, %v2294_v34  ;;  %v3075_v60 = vld [vmem:[%s7028_s13 + $0x58] sm:$0xff]  ;;  %v3072_v2 = vld [vmem:[%s7028_s13 + $0x40] sm:$0xff]  ;;  %v3070_v44 = vld [vmem:[%s7028_s13 + $0x30] sm:$0xff] }
 0xad0   : > { %v2661_v47 = vpop.f32.mrf.mxu1  ;;  %v2840_v52 = vpop.f32.mrf.mxu0  ;;  %v3071_v14 = vld [vmem:[%s7028_s13 + $0x38] sm:$0xff]  ;;  %v3069_v6 = vld [vmem:[%s7028_s13 + $0x28] sm:$0xff]  ;;  %v3064_v51 = vld [vmem:[%s7028_s13] sm:$0xff] }
 0xad1   : > { %v2859_v50 = vmul.f32 %v5396_v40, %v2840_v52  ;;  %v2672_v62 = vmul.f32 %v5395_v18, %v2661_v47  ;;  %v2864_v53 = vadd.f32 %v2860_v16, %v2675_v30  ;;  %v2677_v48 = vadd.f32 %v2673_v33, %v2488_v45  ;;  %v3067_v16 = vld [vmem:[%s7028_s13 + $0x18] sm:$0xff]  ;;  %v3066_v47 = vld [vmem:[%s7028_s13 + $0x10] sm:$0xff]  ;;  %v3065_v52 = vld [vmem:[%s7028_s13 + $0x8] sm:$0xff] }
 0xad3   : > { %v2863_v25 = vadd.f32 %v2859_v50, %v2674_v58  ;;  %v2676_v19 = vadd.f32 %v2672_v62, %v2487_v54 }
 0xad5   : > { %v4894_v46 = vpop.f32.mrf.mxu0  ;;  %4927 = vmatprep.mubr.f32.mxu1 %v2863_v25 }
 0xad6   : > { %v2862_v57 = vmul.f32 %v5396_v40, %v4894_v46  ;;  %4928 = vmatmul.mubr.f32.vlgmr.msra.gmra.mxu1 %v2864_v53 }
 0xad7   : > { %v2850_v28 = vpop.f32.mrf.mxu0 }
 0xad8   : > { %v2861_v41 = vmul.f32 %v5396_v40, %v2850_v28  ;;  %v2866_v49 = vadd.f32 %v2862_v57, %v2677_v48  ;;  %v3068_v40 = vld [vmem:[%s7028_s13 + $0x20] sm:$0xff] }
 0xada   : > { %v2865_v22 = vadd.f32 %v2861_v41, %v2676_v19 }
 0xadc   : > { %4930 = vmatprep.mubr.f32.mxu1 %v2865_v22 }
 0xadd   : > { %4931 = vmatmul.mubr.f32.gmra.mxu1 %v2866_v49 }
 0xb96   : > { %v4929_v0 = vpop.f32.mrf.mxu1 }
 0xb97   : > { %v2946_v31 = vadd.f32 %v4929_v0, %v4342_v29 }
 0xb98   : > { %v2940_v39 = vpop.f32.mrf.mxu1 }
 0xb99   : > { %v2941_v3 = vadd.f32 %v4342_v29, %v2940_v39  ;;  %v2960_v21 = vmax.f32 %v2946_v31, 0.0 }
 0xb9b   : > { %v2959_v55 = vmax.f32 %v2941_v3, 0.0 }
 0xb9d   : > { %v4932_v15 = vpop.f32.mrf.mxu1  ;;  %4941 = vmatprep.mubr.msk.f32.mxu0 %vm750_vm1, %v2959_v55 }
 0xb9e   : > { %v2956_v20 = vadd.f32 %v4932_v15, %v4342_v29  ;;  %4942 = vmatmul.mubr.msk.f32.vlgmr.msra.gmra.mxu0 %vm750_vm1, %v2960_v21 }
 0xb9f   : > { %v2950_v32 = vpop.f32.mrf.mxu1  ;;  %4948 = vmatpush3.msra.mxu0 %v3079_v27 }
 0xba0   : > { %v2951_v56 = vadd.f32 %v4342_v29, %v2950_v32  ;;  %4949 = vmatprep.subr.mxu0 %v3078_v1  ;;  %v2962_v18 = vmax.f32 %v2956_v20, 0.0 }
 0xba1   : > { %4950 = vmatpush3.msra.mxu0 %v3078_v1 }
 0xba2   : > { %v2961_v4 = vmax.f32 %v2951_v56, 0.0  ;;  %4951 = vmatprep.subr.mxu0 %v3077_v37 }
 0xba3   : > { %4952 = vmatpush3.msra.mxu0 %v3077_v37 }
 0xba4   : > { %4944 = vmatprep.mubr.msk.f32.mxu0 %vm750_vm1, %v2961_v4  ;;  %4953 = vmatprep.subr.mxu0 %v3076_v11 }
 0xba5   : > { %4945 = vmatmul.mubr.msk.f32.gmra.mxu0 %vm750_vm1, %v2962_v18 }
 0xba6   : > { %4954 = vmatpush3.msra.mxu0 %v3076_v11 }
 0xba7   : > { %4955 = vmatprep.subr.mxu0 %v3075_v60 }
 0xba8   : > { %4956 = vmatpush3.msra.mxu0 %v3075_v60 }
 0xba9   : > { %4957 = vmatprep.subr.mxu0 %v3074_v5 }
 0xbaa   : > { %4958 = vmatpush3.msra.mxu0 %v3074_v5 }
 0xbab   : > { %4959 = vmatprep.subr.mxu0 %v3073_v13 }
 0xbac   : > { %4960 = vmatpush3.msra.mxu0 %v3073_v13 }
 0xbad   : > { %4961 = vmatprep.subr.mxu0 %v3072_v2 }
 0xbae   : > { %4962 = vmatpush3.msra.mxu0 %v3072_v2 }
 0xbaf   : > { %4963 = vmatprep.subr.mxu0 %v3071_v14 }
 0xbb0   : > { %4964 = vmatpush3.msra.mxu0 %v3071_v14 }
 0xbb1   : > { %4965 = vmatprep.subr.mxu0 %v3070_v44 }
 0xbb2   : > { %4966 = vmatpush3.msra.mxu0 %v3070_v44 }
 0xbb3   : > { %4967 = vmatprep.subr.mxu0 %v3069_v6 }
 0xbb4   : > { %4968 = vmatpush3.msra.mxu0 %v3069_v6 }
 0xbb5   : > { %4969 = vmatprep.subr.mxu0 %v3068_v40 }
 0xbb6   : > { %4970 = vmatpush3.msra.mxu0 %v3068_v40 }
 0xbb7   : > { %4971 = vmatprep.subr.mxu0 %v3067_v16 }
 0xbb8   : > { %4972 = vmatpush3.msra.mxu0 %v3067_v16 }
 0xbb9   : > { %4973 = vmatprep.subr.mxu0 %v3066_v47 }
 0xbba   : > { %4974 = vmatpush3.msra.mxu0 %v3066_v47 }
 0xbbb   : > { %4975 = vmatprep.subr.mxu0 %v3065_v52 }
 0xbbc   : > { %4976 = vmatpush3.msra.mxu0 %v3065_v52 }
 0xbbd   : > { %4977 = vmatprep.subr.mxu0 %v3064_v51 }
 0xbbe   : > { %4978 = vmatpush3.msra.mxu0 %v3064_v51 }
 0xc5e   : > { %v6584_v58 = vpop.f32.mrf.mxu0 }
 0xc60   : > { %v6586_v50 = vpop.f32.mrf.mxu0 }
 0xc61   : > { %4979 = vmatprep.mubr.f32.mxu0 %v6586_v50 }
 0xc62   : > { %4980 = vmatmul.mubr.f32.vlgmr.msra.gmra.mxu0 %v6584_v58 }
 0xc65   : > { %v6590_v38 = vpop.f32.mrf.mxu0 }
 0xc66   : > { %4985 = vmatprep.subr.mxu1 %v6590_v38  ;;  %5013 = vmatprep.subr.mxu0 %v6590_v38 }
 0xc67   : > { %v6594_v30 = vpop.f32.mrf.mxu0  ;;  %4986 = vmatpush3.msra.mxu1 %v6590_v38  ;;  %5014 = vmatpush3.msra.mxu0 %v6590_v38 }
 0xc68   : > { %4982 = vmatprep.mubr.f32.mxu0 %v6594_v30  ;;  %4987 = vmatprep.subr.mxu1 %v6594_v30 }
 0xc69   : > { %5015 = vmatprep.subr.mxu0 %v6594_v30  ;;  %4983 = vmatmul.mubr.f32.gmra.mxu0 %v6590_v38 }
 0xc6a   : > { %4988 = vmatpush3.msra.mxu1 %v6594_v30  ;;  %5016 = vmatpush3.msra.mxu0 %v6594_v30 }
 0xc6b   : > { %4989 = vmatprep.subr.mxu1 %v6584_v58  ;;  %5017 = vmatprep.subr.mxu0 %v6584_v58 }
 0xc6c   : > { %4990 = vmatpush3.msra.mxu1 %v6584_v58  ;;  %5018 = vmatpush3.msra.mxu0 %v6584_v58 }
 0xc6d   : > { %4991 = vmatprep.subr.mxu1 %v6586_v50  ;;  %5019 = vmatprep.subr.mxu0 %v6586_v50 }
 0xc6e   : > { %4992 = vmatpush3.msra.mxu1 %v6586_v50  ;;  %5020 = vmatpush3.msra.mxu0 %v6586_v50 }
 0xc6f   : > { %4999 = vmatprep.subr.mxu1 %v6590_v38 }
 0xd22   : > { %v4981_v34 = vpop.f32.mrf.mxu0 }
 0xd23   : > { %3204 = vperm.xlu1 %5171, %v4981_v34  }
 0xd24   : > { %v3146_v62 = vpop.f32.mrf.mxu0 }
 0xd25   : > { %3199 = vperm.xlu0 %5174, %v3146_v62  }
 0xd27   : > { %5172 = vset.pattern.permute.xlu1 %v5463_v35 }
 0xd28   : > { %3395 = vperm.xlu1 %5172, %v4981_v34  }
 0xd29   : > { %5176 = vset.pattern.permute.xlu0 %v5466_v43  ;;  %v4984_v25 = vpop.f32.mrf.mxu0 }
 0xd2a   : > { %3580 = vperm.xlu0 %5176, %v3146_v62  }
 0xd2b   : > { %v3156_v26 = vpop.f32.mrf.mxu0 }
 0xd2c   : > { %5173 = vset.pattern.permute.xlu1 %v5466_v43 }
 0xd2d   : > { %3584 = vperm.xlu1 %5173, %v4981_v34  }
 0xd2e   : > { %5181 = vset.pattern.permute.xlu0 %v5465_v42 }
 0xd2f   : > { %3773 = vperm.xlu0 %5181, %v4981_v34  }
 0xd31   : > { %5175 = vset.pattern.permute.xlu1 %v5463_v35 }
 0xd32   : > { %3391 = vperm.xlu1 %5175, %v3146_v62  }
 0xd33   : > { %3777 = vperm.xlu0 %5181, %v3156_v26  }
 0xd36   : > { %5177 = vset.pattern.permute.xlu1 %v5464_v36 }
 0xd37   : > { %3214 = vperm.xlu1 %5177, %v4984_v25  }
 0xd3b   : > { %5178 = vset.pattern.permute.xlu1 %v5463_v35 }
 0xd3c   : > { %3403 = vperm.xlu1 %5178, %v4984_v25  }
 0xd40   : > { %5179 = vset.pattern.permute.xlu1 %v5464_v36 }
 0xd41   : > { %3209 = vperm.xlu1 %5179, %v3156_v26  }
 0xd45   : > { %5180 = vset.pattern.permute.xlu1 %v5465_v42 }
 0xd46   : > { %3769 = vperm.xlu1 %5180, %v3146_v62  }
 0xd4a   : > { %5182 = vset.pattern.permute.xlu1 %v5463_v35 }
 0xd4b   : > { %3399 = vperm.xlu1 %5182, %v3156_v26  }
 0xd4f   : > { %5183 = vset.pattern.permute.xlu1 %v5466_v43 }
 0xd50   : > { %3592 = vperm.xlu1 %5183, %v4984_v25  }
 0xd51   : > { %3165 = vxpose.xlu0.b32.start [1/4] (short) (narrow) %v3146_v62, 8 }
 0xd54   : > { %3588 = vperm.xlu1 %5183, %v3156_v26  }
 0xd55   : > { %3166 = vxpose.xlu0.b32.cont [2/4] (short) (narrow) %v4981_v34, 8 }
 0xd58   : > { %5184 = vset.pattern.permute.xlu1 %v5465_v42 }
 0xd59   : > { %3167 = vxpose.xlu0.b32.cont [3/4] (short) (narrow) %v3156_v26, 8  ;;  %3781 = vperm.xlu1 %5184, %v4984_v25  }
 0xd5d   : > { %3168 = vxpose.xlu0.b32.end [4/4] (short) (narrow) %v4984_v25, 8 }
 0xd9e   : > { %v3205_v33 = vpop.permute.xlu1 %3204 }
 0xda0   : > { %v3200_v45 = vpop.permute.xlu0 %3199 }
 0xda3   : > { %v3396_v36 = vpop.permute.xlu1 %3395 }
 0xda5   : > { %v3581_v43 = vpop.permute.xlu0 %3580 }
 0xda8   : > { %v3585_v53 = vpop.permute.xlu1 %3584 }
 0xdaa   : > { %v6629_v19 = vpop.permute.xlu0 %3773 }
 0xdad   : > { %v3392_v46 = vpop.permute.xlu1 %3391 }
 0xdae   : > { %v6633_v42 = vpop.permute.xlu0 %3777 }
 0xdb2   : > { %v3215_v54 = vpop.permute.xlu1 %3214 }
 0xdb7   : > { %v6625_v57 = vpop.permute.xlu1 %3403 }
 0xdbc   : > { %v6627_v35 = vpop.permute.xlu1 %3209 }
 0xdc1   : > { %v3770_v28 = vpop.permute.xlu1 %3769 }
 0xdc6   : > { %v6631_v41 = vpop.permute.xlu1 %3399 }
 0xdcb   : > { %v6635_v48 = vpop.permute.xlu1 %3592 }
 0xdcd   : > { %v3181_v22 = vpop.trf.xlu0 }
 0xdce   : > { %v6638_v49 = vrot.slane %v3181_v22, %v5767_v7  ;;  %v6641_v61 = vrot.slane %v3181_v22, %v5769_v8  ;;  %v6650_v31 = vrot.slane %v3181_v22, %v5773_v10  ;;  %v6653_v3 = vrot.slane %v3181_v22, %v5771_v9 }
 0xdcf   : > { %v6643_v59 = vpop.permute.xlu1 %3588 }
 0xdd0   : > { %v3224_v63 = vadd.f32 %v6638_v49, %v3215_v54  ;;  %v3222_v27 = vadd.f32 %v6638_v49, %v3205_v33  ;;  %v3221_v29 = vadd.f32 %v6638_v49, %v3200_v45  ;;  %v3410_v0 = vadd.f32 %v6641_v61, %v3392_v46 }
 0xdd1   : > { %v3411_v1 = vadd.f32 %v6641_v61, %v3396_v36  ;;  %v3599_v2 = vadd.f32 %v6653_v3, %v3581_v43  ;;  %v3600_v52 = vadd.f32 %v6653_v3, %v3585_v53  ;;  %v3788_v26 = vadd.f32 %v6650_v31, %v3770_v28 }
 0xdd2   : > { %vm3228_vm8 = vcmp.gt.f32.partialorder %v3224_v63, 0.0  ;;  %v3232_v39 = vmul.f32 0.2, %v3224_v63  ;;  %vm3226_vm9 = vcmp.gt.f32.partialorder %v3222_v27, 0.0  ;;  %v3230_v7 = vmul.f32 0.2, %v3222_v27 }
 0xdd3   : > { %vm3225_vm10 = vcmp.gt.f32.partialorder %v3221_v29, 0.0  ;;  %v3229_v8 = vmul.f32 0.2, %v3221_v29  ;;  %v3418_v15 = vmul.f32 0.2, %v3410_v0  ;;  %vm3414_vm11 = vcmp.gt.f32.partialorder %v3410_v0, 0.0 }
 0xdd4   : > { %v3782_v55 = vpop.permute.xlu1 %3781  ;;  %v3236_v21 = vsel %vm3228_vm8, %v3224_v63, %v3232_v39  ;;  %v3234_v10 = vsel %vm3226_vm9, %v3222_v27, %v3230_v7  ;;  %v3419_v13 = vmul.f32 0.2, %v3411_v1  ;;  %vm3415_vm13 = vcmp.gt.f32.partialorder %v3411_v1, 0.0 }
 0xdd5   : > { %v3791_v20 = vadd.f32 %v6650_v31, %v3782_v55  ;;  %v6658_v32 = vadd.f32 %v3236_v21, %v5798_v24  ;;  %v3233_v56 = vsel %vm3225_vm10, %v3221_v29, %v3229_v8  ;;  %v6661_v37 = vadd.f32 %v3234_v10, %v5795_v23 }
 0xdd6   : > { %v6668_v18 = vadd.f32 %v3233_v56, %v5788_v17  ;;  %v3422_v5 = vsel %vm3414_vm11, %v3410_v0, %v3418_v15  ;;  %v3423_v16 = vsel %vm3415_vm13, %v3411_v1, %v3419_v13  ;;  %v3607_v47 = vmul.f32 0.2, %v3599_v2 }
 0xdd7   : > { %vm3795_vm12 = vcmp.gt.f32.partialorder %v3791_v20, 0.0  ;;  %v3799_v4 = vmul.f32 0.2, %v3791_v20  ;;  %v3250_v9 = vsel %vm750_vm1, %v6658_v32, -inf  ;;  %v3244_v11 = vsel %vm750_vm1, %v6661_v37, -inf }
 0xdd8   : > { %3251 = vmax.xlane.f32.xlu0 %v3250_v9  ;;  %3245 = vmax.xlane.f32.xlu1 %v3244_v11  ;;  %v3241_v44 = vsel %vm750_vm1, %v6668_v18, -inf  ;;  %v6679_v40 = vadd.f32 %v3422_v5, %v5788_v17  ;;  %vm3603_vm14 = vcmp.gt.f32.partialorder %v3599_v2, 0.0  ;;  %v6685_v34 = vadd.f32 %v3423_v16, %v5795_v23 }
 0xdd9   : > { %v3803_v60 = vsel %vm3795_vm12, %v3791_v20, %v3799_v4  ;;  %v3611_v62 = vsel %vm3603_vm14, %v3599_v2, %v3607_v47  ;;  %v3608_v25 = vmul.f32 0.2, %v3600_v52  ;;  %vm3604_vm15 = vcmp.gt.f32.partialorder %v3600_v52, 0.0 }
 0xdda   : > { %v6672_v14 = vadd.f32 %v3803_v60, %v5798_v24  ;;  %v3430_v51 = vsel %vm750_vm1, %v6679_v40, -inf  ;;  %v3433_v33 = vsel %vm750_vm1, %v6685_v34, -inf  ;;  %v6691_v36 = vadd.f32 %v3611_v62, %v5788_v17 }
 0xddb   : > { %v3612_v53 = vsel %vm3604_vm15, %v3600_v52, %v3608_v25  ;;  %v3796_v46 = vmul.f32 0.2, %v3788_v26  ;;  %v3789_v54 = vadd.f32 %v6650_v31, %v6629_v19  ;;  %vm3792_vm0 = vcmp.gt.f32.partialorder %v3788_v26, 0.0 }
 0xddc   : > { %v3817_v6 = vsel %vm750_vm1, %v6672_v14, -inf  ;;  %3242 = vmax.xlane.f32.xlu1 %v3241_v44  ;;  %v3619_v45 = vsel %vm750_vm1, %v6691_v36, -inf  ;;  %v6698_v43 = vadd.f32 %v3612_v53, %v5795_v23  ;;  %v3413_v63 = vadd.f32 %v6641_v61, %v6625_v57 }
 0xddd   : > { %3818 = vmax.xlane.f32.xlu0 %v3817_v6  ;;  %v3800_v28 = vsel %vm3792_vm0, %v3788_v26, %v3796_v46  ;;  %v3797_v22 = vmul.f32 0.2, %v3789_v54  ;;  %vm3793_vm2 = vcmp.gt.f32.partialorder %v3789_v54, 0.0  ;;  %v3223_v39 = vadd.f32 %v6638_v49, %v6627_v35 }
 0xdde   : > { %v3622_v27 = vsel %vm750_vm1, %v6698_v43, -inf  ;;  %v6705_v29 = vadd.f32 %v3800_v28, %v5788_v17  ;;  %v3421_v0 = vmul.f32 0.2, %v3413_v63  ;;  %vm3417_vm3 = vcmp.gt.f32.partialorder %v3413_v63, 0.0 }
 0xddf   : > { %v3801_v19 = vsel %vm3793_vm2, %v3789_v54, %v3797_v22  ;;  %v3231_v55 = vmul.f32 0.2, %v3223_v39  ;;  %v3602_v17 = vadd.f32 %v6653_v3, %v6635_v48  ;;  %vm3227_vm4 = vcmp.gt.f32.partialorder %v3223_v39, 0.0 }
 0xde0   : > { %3431 = vmax.xlane.f32.xlu1 %v3430_v51  ;;  %v3808_v7 = vsel %vm750_vm1, %v6705_v29, -inf  ;;  %v6712_v8 = vadd.f32 %v3801_v19, %v5795_v23  ;;  %v3425_v57 = vsel %vm3417_vm3, %v3413_v63, %v3421_v0  ;;  %v3412_v23 = vadd.f32 %v6641_v61, %v6631_v41 }
 0xde1   : > { %v6719_v15 = vadd.f32 %v3425_v57, %v5798_v24  ;;  %v3235_v35 = vsel %vm3227_vm4, %v3223_v39, %v3231_v55  ;;  %v3610_v49 = vmul.f32 0.2, %v3602_v17  ;;  %vm3606_vm5 = vcmp.gt.f32.partialorder %v3602_v17, 0.0 }
 0xde2   : > { %v3811_v21 = vsel %vm750_vm1, %v6712_v8, -inf  ;;  %v6726_v20 = vadd.f32 %v3235_v35, %v5857_v12  ;;  %v3601_v48 = vadd.f32 %v6653_v3, %v6643_v59  ;;  %v3420_v56 = vmul.f32 0.2, %v3412_v23 }
 0xde3   : > { %v3439_v1 = vsel %vm750_vm1, %v6719_v15, -inf  ;;  %v3614_v10 = vsel %vm3606_vm5, %v3602_v17, %v3610_v49  ;;  %vm3416_vm6 = vcmp.gt.f32.partialorder %v3412_v23, 0.0  ;;  %v3790_v11 = vadd.f32 %v6650_v31, %v6633_v42 }
 0xde4   : > { %3434 = vmax.xlane.f32.xlu1 %v3433_v33  ;;  %v3247_v4 = vsel %vm750_vm1, %v6726_v20, -inf  ;;  %v6733_v9 = vadd.f32 %v3614_v10, %v5798_v24  ;;  %v3609_v41 = vmul.f32 0.2, %v3601_v48  ;;  %v3424_v61 = vsel %vm3416_vm6, %v3412_v23, %v3420_v56 }
 0xde5   : > { %vm3605_vm7 = vcmp.gt.f32.partialorder %v3601_v48, 0.0  ;;  %v6740_v3 = vadd.f32 %v3424_v61, %v5857_v12  ;;  %v3798_v5 = vmul.f32 0.2, %v3790_v11  ;;  %vm3794_vm8 = vcmp.gt.f32.partialorder %v3790_v11, 0.0 }
 0xde6   : > { %v3628_v59 = vsel %vm750_vm1, %v6733_v9, -inf  ;;  %v3613_v60 = vsel %vm3605_vm7, %v3601_v48, %v3609_v41 }
 0xde7   : > { %v3436_v24 = vsel %vm750_vm1, %v6740_v3, -inf  ;;  %v6745_v13 = vadd.f32 %v3613_v60, %v5857_v12  ;;  %v3802_v2 = vsel %vm3794_vm8, %v3790_v11, %v3798_v5 }
 0xde8   : > { %3620 = vmax.xlane.f32.xlu1 %v3619_v45  ;;  %v6750_v31 = vadd.f32 %v3802_v2, %v5857_v12 }
 0xde9   : > { %v3625_v42 = vsel %vm750_vm1, %v6745_v13, -inf }
 0xdea   : > { %v3814_v44 = vsel %vm750_vm1, %v6750_v31, -inf }
 0xdec   : > { %3623 = vmax.xlane.f32.xlu1 %v3622_v27 }
 0xdf0   : > { %3809 = vmax.xlane.f32.xlu1 %v3808_v7 }
 0xdf4   : > { %3812 = vmax.xlane.f32.xlu1 %v3811_v21 }
 0xdf8   : > { %3440 = vmax.xlane.f32.xlu1 %v3439_v1 }
 0xdfc   : > { %3248 = vmax.xlane.f32.xlu1 %v3247_v4 }
 0xe00   : > { %3629 = vmax.xlane.f32.xlu1 %v3628_v59 }
 0xe04   : > { %3437 = vmax.xlane.f32.xlu1 %v3436_v24 }
 0xe08   : > { %3626 = vmax.xlane.f32.xlu1 %v3625_v42 }
 0xe0c   : > { %3815 = vmax.xlane.f32.xlu1 %v3814_v44 }
 0xe61   : > { %v3246_v6 = vpop.xlane.xlu1 %3245  ;;  %v3252_v54 = vpop.xlane.xlu0 %3251 }
 0xe62   : > { %v3254_v16 = vsub.f32 %v6661_v37, %v3246_v6 }
 0xe64   : > { %v3259_v47 = vmul.f32 1.442695, %v3254_v16 }
 0xe65   : > { %v3243_v52 = vpop.xlane.xlu1 %3242 }
 0xe66   : > { %5313 = vpow2.f32 %v3259_v47  ;;  %v3253_v51 = vsub.f32 %v6668_v18, %v3243_v52  ;;  %v3256_v18 = vsub.f32 %v6658_v32, %v3252_v54  ;;  %v3819_v23 = vpop.xlane.xlu0 %3818 }
 0xe67   : > { %v3823_v61 = vsub.f32 %v6672_v14, %v3819_v23 }
 0xe68   : > { %v3257_v62 = vmul.f32 1.442695, %v3253_v51  ;;  %v3263_v19 = vmul.f32 1.442695, %v3256_v18 }
 0xe69   : > { %v3432_v25 = vpop.xlane.xlu1 %3431  ;;  %v3830_v24 = vmul.f32 1.442695, %v3823_v61 }
 0xe6a   : > { %5315 = vpow2.f32 %v3257_v62  ;;  %v3442_v26 = vsub.f32 %v6679_v40, %v3432_v25 }
 0xe6c   : > { %v3446_v12 = vmul.f32 1.442695, %v3442_v26 }
 0xe6d   : > { %v3435_v33 = vpop.xlane.xlu1 %3434 }
 0xe6e   : > { %5317 = vpow2.f32 %v3446_v12  ;;  %v3443_v53 = vsub.f32 %v6685_v34, %v3435_v33 }
 0xe70   : > { %v3448_v46 = vmul.f32 1.442695, %v3443_v53 }
 0xe71   : > { %v3621_v45 = vpop.xlane.xlu1 %3620 }
 0xe72   : > { %5319 = vpow2.f32 %v3448_v46  ;;  %v3631_v37 = vsub.f32 %v6691_v36, %v3621_v45 }
 0xe73   : > { %v6759_v28 = vpop.eup %5313 }
 0xe74   : > { %v3635_v22 = vmul.f32 1.442695, %v3631_v37  ;;  %v3268_v63 = vsel %vm750_vm1, %v6759_v28, 0.0 }
 0xe75   : > { %3269 = vadd.xlane.f32.xlu0 %v3268_v63  ;;  %v3624_v40 = vpop.xlane.xlu1 %3623 }
 0xe76   : > { %5321 = vpow2.f32 %v3635_v22  ;;  %v3632_v27 = vsub.f32 %v6698_v43, %v3624_v40 }
 0xe77   : > { %v6765_v34 = vpop.eup %5315 }
 0xe78   : > { %v3637_v0 = vmul.f32 1.442695, %v3632_v27  ;;  %v3265_v36 = vsel %vm750_vm1, %v6765_v34, 0.0 }
 0xe79   : > { %3266 = vadd.xlane.f32.xlu1 %v3265_v36  ;;  %v3810_v39 = vpop.xlane.xlu1 %3809 }
 0xe7a   : > { %5323 = vpow2.f32 %v3637_v0  ;;  %v3820_v1 = vsub.f32 %v6705_v29, %v3810_v39 }
 0xe7b   : > { %v6769_v32 = vpop.eup %5317  ;;  %5325 = vpow2.f32 %v3263_v19 }
 0xe7c   : > { %v3454_v7 = vsel %vm750_vm1, %v6769_v32, 0.0 }
 0xe7d   : > { %3455 = vadd.xlane.f32.xlu1 %v3454_v7  ;;  %v3813_v57 = vpop.xlane.xlu1 %3812 }
 0xe7e   : > { %v3821_v43 = vsub.f32 %v6712_v8, %v3813_v57 }
 0xe7f   : > { %v6773_v55 = vpop.eup %5319 }
 0xe80   : > { %v3457_v17 = vsel %vm750_vm1, %v6773_v55, 0.0  ;;  %v3826_v48 = vmul.f32 1.442695, %v3821_v43 }
 0xe81   : > { %3458 = vadd.xlane.f32.xlu0 %v3457_v17  ;;  %v3441_v21 = vpop.xlane.xlu1 %3440 }
 0xe82   : > { %v3445_v35 = vsub.f32 %v6719_v15, %v3441_v21  ;;  %v3824_v15 = vmul.f32 1.442695, %v3820_v1 }
 0xe83   : > { %v6779_v49 = vpop.eup %5321 }
 0xe84   : > { %v3452_v10 = vmul.f32 1.442695, %v3445_v35  ;;  %v3643_v56 = vsel %vm750_vm1, %v6779_v49, 0.0 }
 0xe85   : > { %3644 = vadd.xlane.f32.xlu1 %v3643_v56  ;;  %v3249_v4 = vpop.xlane.xlu1 %3248 }
 0xe86   : > { %5327 = vpow2.f32 %v3452_v10  ;;  %v3255_v8 = vsub.f32 %v6726_v20, %v3249_v4 }
 0xe87   : > { %v6785_v41 = vpop.eup %5323  ;;  %5329 = vpow2.f32 %v3826_v48 }
 0xe88   : > { %v3261_v11 = vmul.f32 1.442695, %v3255_v8  ;;  %v3646_v29 = vsel %vm750_vm1, %v6785_v41, 0.0  ;;  %v6790_v59 = vpop.eup %5325 }
 0xe89   : > { %3647 = vadd.xlane.f32.xlu0 %v3646_v29  ;;  %v3630_v60 = vpop.xlane.xlu1 %3629  ;;  %v3274_v2 = vsel %vm750_vm1, %v6790_v59, 0.0 }
 0xe8a   : > { %5331 = vpow2.f32 %v3261_v11  ;;  %v3634_v5 = vsub.f32 %v6733_v9, %v3630_v60 }
 0xe8b   : > { %5333 = vpow2.f32 %v3824_v15 }
 0xe8c   : > { %v3641_v20 = vmul.f32 1.442695, %v3634_v5 }
 0xe8d   : > { %3275 = vadd.xlane.f32.xlu0 %v3274_v2  ;;  %v3438_v14 = vpop.xlane.xlu1 %3437 }
 0xe8e   : > { %5335 = vpow2.f32 %v3641_v20  ;;  %v3444_v42 = vsub.f32 %v6740_v3, %v3438_v14 }
 0xe8f   : > { %5337 = vpow2.f32 %v3830_v24 }
 0xe90   : > { %v3450_v44 = vmul.f32 1.442695, %v3444_v42 }
 0xe91   : > { %v3627_v6 = vpop.xlane.xlu1 %3626 }
 0xe92   : > { %5339 = vpow2.f32 %v3450_v44  ;;  %v3633_v16 = vsub.f32 %v6745_v13, %v3627_v6 }
 0xe93   : > { %v6797_v47 = vpop.eup %5327 }
 0xe94   : > { %v3639_v9 = vmul.f32 1.442695, %v3633_v16  ;;  %v3463_v52 = vsel %vm750_vm1, %v6797_v47, 0.0  ;;  %v6801_v51 = vpop.eup %5329 }
 0xe95   : > { %3464 = vadd.xlane.f32.xlu0 %v3463_v52  ;;  %v3816_v62 = vpop.xlane.xlu1 %3815  ;;  %v3835_v12 = vsel %vm750_vm1, %v6801_v51, 0.0 }
 0xe96   : > { %5341 = vpow2.f32 %v3639_v9  ;;  %v3822_v25 = vsub.f32 %v6750_v31, %v3816_v62 }
 0xe97   : > { %v6804_v3 = vpop.eup %5331 }
 0xe98   : > { %v3828_v26 = vmul.f32 1.442695, %v3822_v25  ;;  %v3271_v13 = vsel %vm750_vm1, %v6804_v3, 0.0  ;;  %v6810_v33 = vpop.eup %5333 }
 0xe99   : > { %3836 = vadd.xlane.f32.xlu0 %v3835_v12  ;;  %3272 = vadd.xlane.f32.xlu1 %v3271_v13  ;;  %v3832_v46 = vsel %vm750_vm1, %v6810_v33, 0.0  ;;  %v3985_v12 = vld [vmem:[%s7030_s15 + $0x68] sm:$0xff]  ;;  %v3984_v13 = vld [vmem:[%s7030_s15 + $0x60] sm:$0xff] }
 0xe9a   : > { %5343 = vpow2.f32 %v3828_v26 }
 0xe9b   : > { %v6812_v53 = vpop.eup %5335 }
 0xe9c   : > { %v3652_v31 = vsel %vm750_vm1, %v6812_v53, 0.0  ;;  %v6818_v54 = vpop.eup %5337 }
 0xe9d   : > { %3833 = vadd.xlane.f32.xlu1 %v3832_v46  ;;  %3653 = vadd.xlane.f32.xlu0 %v3652_v31  ;;  %v3841_v37 = vsel %vm750_vm1, %v6818_v54, 0.0  ;;  %v3981_v46 = vld [vmem:[%s7030_s15 + $0x48] sm:$0xff]  ;;  %v3980_v31 = vld [vmem:[%s7030_s15 + $0x40] sm:$0xff] }
 0xe9f   : > { %v6820_v45 = vpop.eup %5339 }
 0xea0   : > { %v3460_v18 = vsel %vm750_vm1, %v6820_v45, 0.0 }
 0xea1   : > { %3842 = vadd.xlane.f32.xlu0 %v3841_v37  ;;  %3461 = vadd.xlane.f32.xlu1 %v3460_v18  ;;  %v3977_v37 = vld [vmem:[%s7030_s15 + $0x28] sm:$0xff]  ;;  %v3976_v18 = vld [vmem:[%s7030_s15 + $0x20] sm:$0xff] }
 0xea3   : > { %v6826_v22 = vpop.eup %5341 }
 0xea4   : > { %v3649_v63 = vsel %vm750_vm1, %v6826_v22, 0.0 }
 0xea5   : > { %3650 = vadd.xlane.f32.xlu1 %v3649_v63  ;;  %v3974_v63 = vld [vmem:[%s7030_s15 + $0x10] sm:$0xff] }
 0xea7   : > { %v6830_v40 = vpop.eup %5343 }
 0xea8   : > { %v3838_v27 = vsel %vm750_vm1, %v6830_v40, 0.0 }
 0xea9   : > { %3839 = vadd.xlane.f32.xlu1 %v3838_v27  ;;  %v3972_v27 = vld [vmem:[%s7030_s15] sm:$0xff] }
 0xefe   : > { %v3270_v19 = vpop.xlane.xlu0 %3269 }
 0xeff   : > { %5345 = vrcp.f32 %v3270_v19  ;;  %v4087_v19 = vld [vmem:[%s7032_s17 + $0x18] sm:$0xff] }
 0xf02   : > { %v3267_v0 = vpop.xlane.xlu1 %3266 }
 0xf03   : > { %5347 = vrcp.f32 %v3267_v0 }
 0xf06   : > { %v3456_v36 = vpop.xlane.xlu1 %3455 }
 0xf0a   : > { %v3459_v39 = vpop.xlane.xlu0 %3458 }
 0xf0c   : > { %v5346_v57 = vpop.eup %5345 }
 0xf0d   : > { %v3282_v21 = vmul.f32 %v5346_v57, %v6759_v28 }
 0xf0e   : > { %v3645_v7 = vpop.xlane.xlu1 %3644 }
 0xf0f   : > { %5349 = vrcp.f32 %v3645_v7 }
 0xf10   : > { %v5348_v43 = vpop.eup %5347 }
 0xf11   : > { %v3281_v17 = vmul.f32 %v5348_v43, %v6765_v34 }
 0xf12   : > { %v3648_v35 = vpop.xlane.xlu0 %3647 }
 0xf13   : > { %5351 = vrcp.f32 %v3648_v35  ;;  %4993 = vmatprep.mubr.msk.f32.mxu1 %vm750_vm1, %v3281_v17  ;;  %v5397_v17 = vld [vmem:[%s7059_s25 + $0x1] ss:$0 sm:$0xff] }
 0xf14   : > { %4994 = vmatmul.mubr.msk.f32.vlgmr.msra.gmra.mxu1 %vm750_vm1, %v3282_v21  ;;  %5353 = vrcp.f32 %v3456_v36 }
 0xf15   : > { %5000 = vmatpush3.msra.mxu1 %v6590_v38 }
 0xf16   : > { %5001 = vmatprep.subr.mxu1 %v6594_v30  ;;  %v3276_v23 = vpop.xlane.xlu0 %3275 }
 0xf17   : > { %5002 = vmatpush3.msra.mxu1 %v6594_v30  ;;  %5355 = vrcp.f32 %v3276_v23  ;;  %v5398_v23 = vld [vmem:[%s7059_s25] ss:$0 sm:$0xff] }
 0xf18   : > { %5003 = vmatprep.subr.mxu1 %v6584_v58 }
 0xf19   : > { %5004 = vmatpush3.msra.mxu1 %v6584_v58 }
 0xf1a   : > { %5005 = vmatprep.subr.mxu1 %v6586_v50 }
 0xf1b   : > { %5006 = vmatpush3.msra.mxu1 %v6586_v50 }
 0xf1c   : > { %v5350_v28 = vpop.eup %5349  ;;  %5027 = vmatprep.subr.mxu1 %v6590_v38 }
 0xf1d   : > { %v3659_v34 = vmul.f32 %v5350_v28, %v6779_v49 }
 0xf1e   : > { %v3465_v1 = vpop.xlane.xlu0 %3464 }
 0xf1f   : > { %5021 = vmatprep.mubr.msk.f32.mxu0 %vm750_vm1, %v3659_v34 }
 0xf20   : > { %v5352_v48 = vpop.eup %5351 }
 0xf21   : > { %v3660_v10 = vmul.f32 %v5352_v48, %v6785_v41  ;;  %v5354_v11 = vpop.eup %5353 }
 0xf22   : > { %v3273_v56 = vpop.xlane.xlu1 %3272  ;;  %v3837_v4 = vpop.xlane.xlu0 %3836  ;;  %v3470_v14 = vmul.f32 %v5354_v11, %v6769_v32 }
 0xf23   : > { %5022 = vmatmul.mubr.msk.f32.vlgmr.msra.gmra.mxu0 %vm750_vm1, %v3660_v10  ;;  %5357 = vrcp.f32 %v3273_v56 }
 0xf24   : > { %5359 = vrcp.f32 %v3459_v39  ;;  %v5356_v41 = vpop.eup %5355 }
 0xf25   : > { %5361 = vrcp.f32 %v3465_v1  ;;  %v3284_v20 = vmul.f32 %v5356_v41, %v6790_v59 }
 0xf26   : > { %v3834_v8 = vpop.xlane.xlu1 %3833  ;;  %v3654_v61 = vpop.xlane.xlu0 %3653 }
 0xf27   : > { %5363 = vrcp.f32 %v3834_v8 }
 0xf2a   : > { %v3462_v15 = vpop.xlane.xlu1 %3461  ;;  %v3843_v29 = vpop.xlane.xlu0 %3842 }
 0xf2b   : > { %5365 = vrcp.f32 %v3462_v15 }
 0xf2c   : > { %5367 = vrcp.f32 %v3837_v4 }
 0xf2d   : > { %5369 = vrcp.f32 %v3654_v61  ;;  %v5399_v61 = vld [vmem:[%s7059_s25 + $0x2] ss:$0 sm:$0xff] }
 0xf2e   : > { %v3651_v49 = vpop.xlane.xlu1 %3650 }
 0xf2f   : > { %5371 = vrcp.f32 %v3651_v49 }
 0xf30   : > { %v5358_v60 = vpop.eup %5357  ;;  %5373 = vrcp.f32 %v3843_v29 }
 0xf31   : > { %v3283_v24 = vmul.f32 %v5358_v60, %v6804_v3  ;;  %v5360_v2 = vpop.eup %5359 }
 0xf32   : > { %v3840_v5 = vpop.xlane.xlu1 %3839  ;;  %v5362_v42 = vpop.eup %5361  ;;  %v3471_v44 = vmul.f32 %v5360_v2, %v6773_v55  ;;  %v5400_v2 = vld [vmem:[%s7059_s25 + $0x3] ss:$0 sm:$0xff] }
 0xf33   : > { %5375 = vrcp.f32 %v3840_v5  ;;  %4996 = vmatprep.mubr.msk.f32.mxu1 %vm750_vm1, %v3283_v24  ;;  %v3473_v32 = vmul.f32 %v5362_v42, %v6797_v47 }
 0xf34   : > { %4997 = vmatmul.mubr.msk.f32.gmra.mxu1 %vm750_vm1, %v3284_v20  ;;  %v5364_v6 = vpop.eup %5363 }
 0xf35   : > { %5007 = vmatprep.mubr.msk.f32.mxu1 %vm750_vm1, %v3470_v14  ;;  %v3848_v55 = vmul.f32 %v5364_v6, %v6810_v33  ;;  %v3983_v33 = vld [vmem:[%s7030_s15 + $0x58] sm:$0xff] }
 0xf38   : > { %v5366_v16 = vpop.eup %5365  ;;  %5008 = vmatmul.mubr.msk.f32.vlgmr.msra.gmra.mxu1 %vm750_vm1, %v3471_v44 }
 0xf39   : > { %v5368_v9 = vpop.eup %5367  ;;  %5028 = vmatpush3.msra.mxu1 %v6590_v38  ;;  %v3472_v59 = vmul.f32 %v5366_v16, %v6820_v45  ;;  %v3978_v45 = vld [vmem:[%s7030_s15 + $0x30] sm:$0xff] }
 0xf3a   : > { %v5370_v52 = vpop.eup %5369  ;;  %5029 = vmatprep.subr.mxu1 %v6594_v30  ;;  %v3849_v3 = vmul.f32 %v5368_v9, %v6801_v51  ;;  %v3987_v51 = vld [vmem:[%s7030_s15 + $0x78] sm:$0xff] }
 0xf3b   : > { %5030 = vmatpush3.msra.mxu1 %v6594_v30  ;;  %5010 = vmatprep.mubr.msk.f32.mxu1 %vm750_vm1, %v3472_v59  ;;  %v3662_v25 = vmul.f32 %v5370_v52, %v6812_v53  ;;  %v3982_v53 = vld [vmem:[%s7030_s15 + $0x50] sm:$0xff]  ;;  %v4363_v59 = vld [vmem:[%s7029_s14] ss:$0 sm:$0xff] }
 0xf3c   : > { %v5372_v62 = vpop.eup %5371  ;;  %5031 = vmatprep.subr.mxu1 %v6584_v58  ;;  %5011 = vmatmul.mubr.msk.f32.gmra.mxu1 %vm750_vm1, %v3473_v32 }
 0xf3d   : > { %v3661_v38 = vmul.f32 %v5372_v62, %v6826_v22  ;;  %5032 = vmatpush3.msra.mxu1 %v6584_v58  ;;  %5035 = vmatprep.mubr.msk.f32.mxu1 %vm750_vm1, %v3848_v55  ;;  %v5374_v47 = vpop.eup %5373  ;;  %v3975_v22 = vld [vmem:[%s7030_s15 + $0x18] sm:$0xff] }
 0xf3e   : > { %5033 = vmatprep.subr.mxu1 %v6586_v50  ;;  %v3851_v26 = vmul.f32 %v5374_v47, %v6818_v54  ;;  %5041 = vmatprep.subr.mxu0 %v3987_v51  ;;  %v3979_v54 = vld [vmem:[%s7030_s15 + $0x38] sm:$0xff] }
 0xf3f   : > { %5024 = vmatprep.mubr.msk.f32.mxu0 %vm750_vm1, %v3661_v38  ;;  %5034 = vmatpush3.msra.mxu1 %v6586_v50  ;;  %v3986_v50 = vld [vmem:[%s7030_s15 + $0x70] sm:$0xff] }
 0xf40   : > { %v5376_v30 = vpop.eup %5375  ;;  %5025 = vmatmul.mubr.msk.f32.gmra.mxu0 %vm750_vm1, %v3662_v25  ;;  %5036 = vmatmul.mubr.msk.f32.vlgmr.msra.gmra.mxu1 %vm750_vm1, %v3849_v3 }
 0xf41   : > { %v3850_v58 = vmul.f32 %v5376_v30, %v6830_v40  ;;  %5042 = vmatpush3.msra.mxu0 %v3987_v51  ;;  %v3973_v40 = vld [vmem:[%s7030_s15 + $0x8] sm:$0xff]  ;;  %5079 = vmatprep.subr.mxu1 %v4087_v19 }
 0xf42   : > { %5043 = vmatprep.subr.mxu0 %v3986_v50  ;;  %5080 = vmatpush3.msra.mxu1 %v4087_v19 }
 0xf43   : > { %5038 = vmatprep.mubr.msk.f32.mxu1 %vm750_vm1, %v3850_v58  ;;  %5044 = vmatpush3.msra.mxu0 %v3986_v50 }
 0xf44   : > { %5039 = vmatmul.mubr.msk.f32.gmra.mxu1 %vm750_vm1, %v3851_v26  ;;  %5045 = vmatprep.subr.mxu0 %v3985_v12 }
 0xf45   : > { %5046 = vmatpush3.msra.mxu0 %v3985_v12 }
 0xf46   : > { %5047 = vmatprep.subr.mxu0 %v3984_v13 }
 0xf47   : > { %5048 = vmatpush3.msra.mxu0 %v3984_v13 }
 0xf48   : > { %5049 = vmatprep.subr.mxu0 %v3983_v33 }
 0xf49   : > { %5050 = vmatpush3.msra.mxu0 %v3983_v33 }
 0xf4a   : > { %5051 = vmatprep.subr.mxu0 %v3982_v53 }
 0xf4b   : > { %5052 = vmatpush3.msra.mxu0 %v3982_v53 }
 0xf4c   : > { %5053 = vmatprep.subr.mxu0 %v3981_v46 }
 0xf4d   : > { %5054 = vmatpush3.msra.mxu0 %v3981_v46 }
 0xf4e   : > { %5055 = vmatprep.subr.mxu0 %v3980_v31 }
 0xf4f   : > { %5056 = vmatpush3.msra.mxu0 %v3980_v31 }
 0xf50   : > { %5057 = vmatprep.subr.mxu0 %v3979_v54 }
 0xf51   : > { %5058 = vmatpush3.msra.mxu0 %v3979_v54 }
 0xf52   : > { %5059 = vmatprep.subr.mxu0 %v3978_v45 }
 0xf53   : > { %5060 = vmatpush3.msra.mxu0 %v3978_v45 }
 0xf54   : > { %5061 = vmatprep.subr.mxu0 %v3977_v37 }
 0xf55   : > { %5062 = vmatpush3.msra.mxu0 %v3977_v37  ;;  %v4086_v37 = vld [vmem:[%s7032_s17 + $0x10] sm:$0xff] }
 0xf56   : > { %5063 = vmatprep.subr.mxu0 %v3976_v18  ;;  %5081 = vmatprep.subr.mxu1 %v4086_v37 }
 0xf57   : > { %5064 = vmatpush3.msra.mxu0 %v3976_v18  ;;  %5082 = vmatpush3.msra.mxu1 %v4086_v37  ;;  %v4085_v18 = vld [vmem:[%s7032_s17 + $0x8] sm:$0xff] }
 0xf58   : > { %5065 = vmatprep.subr.mxu0 %v3975_v22  ;;  %5083 = vmatprep.subr.mxu1 %v4085_v18 }
 0xf59   : > { %5066 = vmatpush3.msra.mxu0 %v3975_v22  ;;  %5084 = vmatpush3.msra.mxu1 %v4085_v18  ;;  %v4084_v22 = vld [vmem:[%s7032_s17] sm:$0xff] }
 0xf5a   : > { %5067 = vmatprep.subr.mxu0 %v3974_v63  ;;  %5085 = vmatprep.subr.mxu1 %v4084_v22 }
 0xf5b   : > { %5068 = vmatpush3.msra.mxu0 %v3974_v63  ;;  %5086 = vmatpush3.msra.mxu1 %v4084_v22  ;;  %v4364_v63 = vld [vmem:[%s7031_s16] ss:$0 sm:$0xff] }
 0xf5c   : > { %5069 = vmatprep.subr.mxu0 %v3973_v40 }
 0xf5d   : > { %5070 = vmatpush3.msra.mxu0 %v3973_v40 }
 0xf5e   : > { %5071 = vmatprep.subr.mxu0 %v3972_v27 }
 0xf5f   : > { %5072 = vmatpush3.msra.mxu0 %v3972_v27 }
 0xfd4   : > { %v4995_v0 = vpop.f32.mrf.mxu1 }
 0xfd5   : > { %v3383_v28 = vmul.f32 %v5398_v23, %v4995_v0 }
 0xfd6   : > { %v3363_v36 = vpop.f32.mrf.mxu1 }
 0xfd7   : > { %v3382_v48 = vmul.f32 %v5398_v23, %v3363_v36 }
 0xfe3   : > { %v5023_v43 = vpop.f32.mrf.mxu0 }
 0xfe4   : > { %v3761_v15 = vmul.f32 %v5399_v61, %v5023_v43 }
 0xfe5   : > { %v3741_v10 = vpop.f32.mrf.mxu0 }
 0xfe6   : > { %v3760_v29 = vmul.f32 %v5399_v61, %v3741_v10 }
 0xff4   : > { %v4998_v39 = vpop.f32.mrf.mxu1 }
 0xff5   : > { %v3385_v41 = vmul.f32 %v5398_v23, %v4998_v39 }
 0xff6   : > { %v3373_v7 = vpop.f32.mrf.mxu1 }
 0xff7   : > { %v3384_v44 = vmul.f32 %v5398_v23, %v3373_v7  ;;  %v4365_v23 = vld [vmem:[%s7033_s18] ss:$0 sm:$0xff] }
 0xff8   : > { %v5009_v57 = vpop.f32.mrf.mxu1 }
 0xff9   : > { %v3572_v21 = vmul.f32 %v5397_v17, %v5009_v57 }
 0xffa   : > { %v3552_v35 = vpop.f32.mrf.mxu1 }
 0xffb   : > { %v3571_v34 = vmul.f32 %v5397_v17, %v3552_v35  ;;  %v3576_v56 = vadd.f32 %v3572_v21, %v3383_v28 }
 0xffc   : > { %v5012_v1 = vpop.f32.mrf.mxu1 }
 0xffd   : > { %v3574_v4 = vmul.f32 %v5397_v17, %v5012_v1  ;;  %v3575_v49 = vadd.f32 %v3571_v34, %v3382_v48  ;;  %v3765_v20 = vadd.f32 %v3761_v15, %v3576_v56 }
 0xffe   : > { %v3562_v8 = vpop.f32.mrf.mxu1 }
 0xfff   : > { %v3573_v5 = vmul.f32 %v5397_v17, %v3562_v8  ;;  %v3578_v6 = vadd.f32 %v3574_v4, %v3385_v41  ;;  %v3764_v32 = vadd.f32 %v3760_v29, %v3575_v49 }
0x1000   : > { %v5026_v11 = vpop.f32.mrf.mxu0  ;;  %v5037_v60 = vpop.f32.mrf.mxu1 }
0x1001   : > { %v3763_v24 = vmul.f32 %v5399_v61, %v5026_v11  ;;  %v3950_v14 = vmul.f32 %v5400_v2, %v5037_v60  ;;  %v3577_v38 = vadd.f32 %v3573_v5, %v3384_v44 }
0x1002   : > { %v3751_v42 = vpop.f32.mrf.mxu0  ;;  %v3930_v16 = vpop.f32.mrf.mxu1 }
0x1003   : > { %v3954_v9 = vadd.f32 %v3950_v14, %v3765_v20  ;;  %v3762_v52 = vmul.f32 %v5399_v61, %v3751_v42  ;;  %v3949_v62 = vmul.f32 %v5400_v2, %v3930_v16  ;;  %v3767_v25 = vadd.f32 %v3763_v24, %v3578_v6 }
0x1004   : > { %v5040_v55 = vpop.f32.mrf.mxu1 }
0x1005   : > { %v3953_v47 = vadd.f32 %v3949_v62, %v3764_v32  ;;  %v3952_v3 = vmul.f32 %v5400_v2, %v5040_v55  ;;  %v3965_v30 = vadd.f32 %v4363_v59, %v3954_v9  ;;  %v3766_v26 = vadd.f32 %v3762_v52, %v3577_v38 }
0x1006   : > { %v3940_v58 = vpop.f32.mrf.mxu1 }
0x1007   : > { %v3956_v51 = vadd.f32 %v3952_v3, %v3767_v25  ;;  %v3951_v50 = vmul.f32 %v5400_v2, %v3940_v58  ;;  %v3964_v12 = vadd.f32 %v4363_v59, %v3953_v47  ;;  %v3969_v53 = vmax.f32 %v3965_v30, 0.0 }
0x1009   : > { %v3955_v13 = vadd.f32 %v3951_v50, %v3766_v26  ;;  %v3968_v33 = vmax.f32 %v3964_v12, 0.0  ;;  %v3967_v46 = vadd.f32 %v4363_v59, %v3956_v51 }
0x100b   : > { %5073 = vmatprep.mubr.f32.mxu0 %v3968_v33  ;;  %v3966_v31 = vadd.f32 %v4363_v59, %v3955_v13  ;;  %v3971_v45 = vmax.f32 %v3967_v46, 0.0 }
0x100c   : > { %5074 = vmatmul.mubr.f32.vlgmr.msra.gmra.mxu0 %v3969_v53 }
0x100d   : > { %v3970_v54 = vmax.f32 %v3966_v31, 0.0 }
0x100f   : > { %5076 = vmatprep.mubr.f32.mxu0 %v3970_v54 }
0x1010   : > { %5077 = vmatmul.mubr.f32.gmra.mxu0 %v3971_v45 }
0x10cc   : > { %v5075_v40 = vpop.f32.mrf.mxu0 }
0x10cd   : > { %v4067_v27 = vadd.f32 %v5075_v40, %v4364_v63 }
0x10ce   : > { %v4061_v19 = vpop.f32.mrf.mxu0 }
0x10cf   : > { %v4062_v0 = vadd.f32 %v4364_v63, %v4061_v19  ;;  %v4081_v7 = vmax.f32 %v4067_v27, 0.0 }
0x10d0   : > { %v5078_v36 = vpop.f32.mrf.mxu0 }
0x10d1   : > { %v4080_v39 = vmax.f32 %v4062_v0, 0.0  ;;  %v4077_v57 = vadd.f32 %v5078_v36, %v4364_v63 }
0x10d2   : > { %v4071_v43 = vpop.f32.mrf.mxu0 }
0x10d3   : > { %v4072_v17 = vadd.f32 %v4364_v63, %v4071_v43  ;;  %5087 = vmatprep.mubr.msk.f32.mxu1 %vm750_vm1, %v4080_v39  ;;  %v4083_v35 = vmax.f32 %v4077_v57, 0.0 }
0x10d4   : > { %5088 = vmatmul.mubr.msk.f32.vlgmr.msra.gmra.mxu1 %vm750_vm1, %v4081_v7 }
0x10d5   : > { %v4082_v21 = vmax.f32 %v4072_v17, 0.0 }
0x10d7   : > { %5090 = vmatprep.mubr.msk.f32.mxu1 %vm750_vm1, %v4082_v21 }
0x10d8   : > { %5091 = vmatmul.mubr.msk.f32.gmra.mxu1 %vm750_vm1, %v4083_v35 }
0x1194   : > { %v5089_v28 = vpop.f32.mrf.mxu1 }
0x1195   : > { %v4179_v34 = vadd.f32 %v5089_v28, %v4365_v23 }
0x1196   : > { %v4173_v1 = vpop.f32.mrf.mxu1 }
0x1197   : > { %4193 = vst [vmem:[%s608_s23 + $0x8] sm:$0xff] %v4179_v34  ;;  %v4174_v48 = vadd.f32 %v4365_v23, %v4173_v1 }
0x1198   : > { %v5092_v10 = vpop.f32.mrf.mxu1 }
0x1199   : > { %4192 = vst [vmem:[%s608_s23] sm:$0xff] %v4174_v48  ;;  %v4189_v56 = vadd.f32 %v5092_v10, %v4365_v23 }
0x119a   : > { %v4183_v4 = vpop.f32.mrf.mxu1 }
0x119b   : > { %4195 = vst [vmem:[%s608_s23 + $0x18] sm:$0xff] %v4189_v56  ;;  %v4184_v8 = vadd.f32 %v4365_v23, %v4183_v4 }
0x119d   : > { %4194 = vst [vmem:[%s608_s23 + $0x10] sm:$0xff] %v4184_v8 }
0x119e   : > { %5414 = shalt.err (!%p5411_p3)
}
0x119f   : > { %s5415_s27 = scalar_lea.hbm %s6973_s28, 512  ;;  %s5419_s20 = scalar_lea.hbm %s7034_s19, 4096 }
0x11a0   : > { %p5416_p4 = scmp.ne.s32.totalorder %s6973_s28, %s5415_s27  ;;  %p5420_p9 = scmp.lt.s32.totalorder %s6973_s28, %s7034_s19 }
0x11a1   : > { %p5421_p10 = scmp.lt.s32.totalorder %s5419_s20, %s5415_s27 }
0x11a2   : > { %p5417_p7 = pnand %p5416_p4, %p5609_p5 }
0x11a3   : > { %p5422_p11 = por %p5421_p10, %p5420_p9 }
0x11a4   : > { %p5418_p8 = pneg %p5417_p7 }
0x11a6   : > { %p5423_p12 = pnand %p5422_p11, %p5418_p8 }
0x11a8   : > { %5426 = shalt.err (!%p5423_p12)
}
0x11a9   : > { %s5469_s5 = smov 128   ;;  %s5470_s6 = smov 8  }
0x11aa   : > { %5093 = dma.vmem_to_hbm [thread:$0]  (%p5609_p5), %s6968_s2, 512, %s6973_s28, %s6975_s22, %s5469_s5, %s5469_s5, %s5470_s6  }
0x11ab PF: > { %p5099_p13 = scmp.ge.s32.totalorder %s5461_s21, 2  ;;  %s4225_s4 = sand.u32 1, %s5449_s0  }
0x11ac   : > { %s4226_s27 = scalar_lea.sflag [#allocation3], %s4225_s4 }
0x11ad   : > { %p5096_p0 = pnand %p5099_p13, %p5613_p6 }
0x11af   : > { %p5097_p1 = pneg %p5096_p0 }
0x11b1   : > { %5444 = dma.done.wait (%p5097_p1), %s4226_s27, 512  }
0x11b2   : > { %5446 = vsyncadd (%p5097_p1), %s4226_s27, 4294966784  ;;  %s7060_s21 = sld [smem:[#allocation6_spill]]  ;;  %s7063_s0 = smov %s5453_s30 }
0x11b3   : > { %s7061_s23 = sld [smem:[#allocation5_spill]] }
0x11b4   : > { %s7062_s20 = sld [smem:[#allocation7_spill]] }
0x11b8   : > { %p29_p2 = scmp.ge.s32.totalorder %s7060_s21, 10  }
0x11b9   : > { %s7064_s30 = smov %s7061_s23 }
0x11ba   :  { %31 = sbr.rel (!%p29_p2) target bundleno = 11 (0xb), region = 134 }
0x11bf   :  { %4231 = vsyncpa [#allocation3], 1 }
0x11c0   :  { %4233 = vsyncpa [#allocation3 + $0x1], 1 }

</bundles_post_ra>
